<compile_context>
chip_gen: v6e
topology: v6e:2x2x1
jax: 0.10.0
libtpu: 0.0.40
codegen_flags: <defaults>
</compile_context>

<pallas_src>
import functools

import jax
import jax.numpy as jnp
from jax.experimental import pallas as pl
from jax.experimental.pallas import tpu as pltpu


def basic_block_kernel(x_ref, w1_ref, w2_ref, b_ref, o_ref, *, H, W):
    # x_ref : (1, H*W, C)  bf16, NHWC image with spatial flattened row-major
    # w*_ref: (9*C, C)     BN-scale-folded weights, bf16, (dy, dx, cin)-major rows
    # b_ref : (2, C)       folded BN biases (row 0: bn1, row 1: bn2), f32
    # o_ref : (1, H*W, C)  f32 output
    f32, bf16 = jnp.float32, jnp.bfloat16
    C = o_ref.shape[-1]
    HW = H * W
    HpW = (H + 2) * W                      # rows of the H-padded flat slab

    xin = x_ref[0]                         # (HW, C) bf16
    residual = xin.astype(f32)             # f32 residual (bf16-rounded input)

    # Edge-column masks in flattened row coordinates (col = row % W).
    row = jax.lax.broadcasted_iota(jnp.int32, (HpW, 1), 0)
    col = row % W
    left_edge = col == 0                   # dx=0 tap falls outside the image
    right_edge = col == (W - 1)            # dx=2 tap falls outside the image
    zero = jnp.zeros((), bf16)

    zblk = jnp.zeros((W, C), bf16)         # one padded image row (H halo)
    zrow = jnp.zeros((1, C), bf16)         # one flat row (W shift fill)

    def conv3x3(act_flat, w_ref):
        """3x3 conv, pad=1, stride=1.  act_flat: (HW, C) bf16 -> (HW, C) f32."""
        # H halo: zero row-blocks above / below.
        xh = jnp.concatenate([zblk, act_flat, zblk], axis=0)        # (HpW, C)
        # dx shifts: 1-row sublane shift + edge-column mask.
        s0 = jnp.where(left_edge, zero,
                       jnp.concatenate([zrow, xh[:-1]], axis=0))    # x-1 tap
        s2 = jnp.where(right_edge, zero,
                       jnp.concatenate([xh[1:], zrow], axis=0))     # x+1 tap
        cat = jnp.concatenate([s0, xh, s2], axis=-1)                # (HpW, 3C)
        # 3 MXU dots (one per dy), M = H*W, K = 3C, f32 accumulate on the VPU.
        acc = None
        for dy in range(3):
            cols = cat[dy * W:dy * W + HW, :]                       # (HW, 3C)
            part = jnp.dot(cols, w_ref[dy * 3 * C:(dy + 1) * 3 * C, :],
                           preferred_element_type=f32)
            acc = part if acc is None else acc + part
        return acc                                                   # (HW, C) f32

    # ---- conv1 (+ folded BN1) + relu --------------------------------------
    out1 = jnp.maximum(conv3x3(xin, w1_ref) + b_ref[0:1, :], 0.0)
    # ---- conv2 (+ folded BN2) + residual + relu ---------------------------
    out2 = conv3x3(out1.astype(bf16), w2_ref) + b_ref[1:2, :] + residual
    o_ref[0] = jnp.maximum(out2, 0.0).astype(o_ref.dtype)


@jax.jit
def basic_block_18(x_nchw, w1, g1, be1, m1, v1, w2, g2, be2, m2, v2, eps=1e-5):
    """x_nchw: (N, C, H, W) f32;  w*: (Cout, Cin, 3, 3) PyTorch layout."""
    N, C, H, W = x_nchw.shape
    Cout = w1.shape[0]
    assert Cout == C, "residual path requires inplanes == planes (downsample=None)"
    assert C % 128 == 0, "lane-dense layout requires C % 128 == 0 (pad channels upstream)"
    assert W % 8 == 0, "sublane-aligned row slices require W % 8 == 0"

    # Fold eval-mode BN into per-channel scale/bias; fold the scale into the
    # conv weights so only a bias add remains in-kernel.
    s1 = g1 / jnp.sqrt(v1 + eps)
    b1 = (be1 - m1 * s1).astype(jnp.float32)
    s2 = g2 / jnp.sqrt(v2 + eps)
    b2 = (be2 - m2 * s2).astype(jnp.float32)
    bias = jnp.stack([b1, b2])                                      # (2, C) f32

    # (Cout, Cin, kh, kw) -> (kh, kw, Cin, Cout) -> (9*Cin, Cout), bf16.
    w1_k = (jnp.transpose(w1, (2, 3, 1, 0)) * s1).reshape(9 * C, Cout).astype(jnp.bfloat16)
    w2_k = (jnp.transpose(w2, (2, 3, 1, 0)) * s2).reshape(9 * Cout, Cout).astype(jnp.bfloat16)

    # NCHW -> NHWC (channel on lanes), bf16, spatial flattened (free reshape).
    # TODO(synk): accept NHWC activations end-to-end to drop this transpose round trip.
    x_flat = jnp.transpose(x_nchw, (0, 2, 3, 1)).astype(jnp.bfloat16).reshape(N, H * W, C)

    # VMEM budget from the actual block footprint (double-buffered I/O +
    # weights + in-kernel value slabs) with headroom, floored at 32 MiB.
    est = (2 * H * W * C * 2                       # input block, 2 buffers, bf16
           + 2 * H * W * Cout * 4                  # output block, 2 buffers, f32
           + 2 * 2 * 9 * C * Cout * 2              # both weight mats, 2 buffers
           + 8 * (H + 2) * W * 3 * C * 2           # im2col / intermediate slabs
           + (8 << 20))
    vmem_limit = int(min(max(est, 32 << 20), 96 << 20))

    out_flat = pl.pallas_call(
        functools.partial(basic_block_kernel, H=H, W=W),
        out_shape=jax.ShapeDtypeStruct((N, H * W, Cout), jnp.float32),
        grid_spec=pltpu.PrefetchScalarGridSpec(
            num_scalar_prefetch=0,
            grid=(N,),
            in_specs=[
                pl.BlockSpec((1, H * W, C), lambda n: (n, 0, 0)),
                pl.BlockSpec((9 * C, Cout), lambda n: (0, 0)),
                pl.BlockSpec((9 * Cout, Cout), lambda n: (0, 0)),
                pl.BlockSpec((2, Cout), lambda n: (0, 0)),
            ],
            out_specs=pl.BlockSpec((1, H * W, Cout), lambda n: (n, 0, 0)),
        ),
        compiler_params=pltpu.CompilerParams(
            dimension_semantics=("parallel",),
            vmem_limit_bytes=vmem_limit),
        cost_estimate=pl.CostEstimate(
            flops=2 * 2 * N * H * W * 9 * C * Cout,
            transcendentals=0,
            bytes_accessed=(N * H * W * C * 2            # bf16 input
                            + N * H * W * Cout * 4       # f32 output
                            + 2 * 9 * C * Cout * 2       # bf16 weights
                            + 2 * Cout * 4)),
    )(x_flat, w1_k, w2_k, bias)

    # (N, H*W, C) -> NHWC -> NCHW to match the PyTorch output layout.
    return jnp.transpose(out_flat.reshape(N, H, W, Cout), (0, 3, 1, 2))


def _reference(x, w1, g1, be1, m1, v1, w2, g2, be2, m2, v2, eps=1e-5):
    """Pure-JAX f32 reference (NCHW convs), for correctness check only."""
    def conv(x, w):
        return jax.lax.conv_general_dilated(
            x, w, window_strides=(1, 1), padding=((1, 1), (1, 1)),
            dimension_numbers=("NCHW", "OIHW", "NCHW"))

    def bn(x, g, b, m, v):
        sh = (1, -1, 1, 1)
        return (x - m.reshape(sh)) / jnp.sqrt(v.reshape(sh) + eps) \
            * g.reshape(sh) + b.reshape(sh)

    out = jax.nn.relu(bn(conv(x, w1), g1, be1, m1, v1))
    out = bn(conv(out, w2), g2, be2, m2, v2)
    return jax.nn.relu(out + x)


if __name__ == "__main__":
    key = jax.random.PRNGKey(0)
    # Real ResNet-18 channel width (lane-dense: C == 128), small spatial/batch.
    N, C, H, W = 2, 128, 16, 16
    Cout = C

    ks = jax.random.split(key, 12)
    x = jax.random.normal(ks[0], (N, C, H, W), jnp.float32)

    wscale = (2.0 / (9 * C)) ** 0.5
    w1 = wscale * jax.random.normal(ks[1], (Cout, C, 3, 3), jnp.float32)
    g1 = 1.0 + 0.1 * jax.random.normal(ks[2], (Cout,), jnp.float32)
    be1 = 0.1 * jax.random.normal(ks[3], (Cout,), jnp.float32)
    m1 = 0.1 * jax.random.normal(ks[4], (Cout,), jnp.float32)
    v1 = jnp.abs(jax.random.normal(ks[5], (Cout,), jnp.float32)) + 0.5

    w2 = wscale * jax.random.normal(ks[6], (Cout, Cout, 3, 3), jnp.float32)
    g2 = 1.0 + 0.1 * jax.random.normal(ks[7], (Cout,), jnp.float32)
    be2 = 0.1 * jax.random.normal(ks[8], (Cout,), jnp.float32)
    m2 = 0.1 * jax.random.normal(ks[9], (Cout,), jnp.float32)
    v2 = jnp.abs(jax.random.normal(ks[10], (Cout,), jnp.float32)) + 0.5

    out = basic_block_18(x, w1, g1, be1, m1, v1, w2, g2, be2, m2, v2)
    out = jax.block_until_ready(out)

    ref = _reference(x, w1, g1, be1, m1, v1, w2, g2, be2, m2, v2)
    # bf16 MXU operands + bf16 input DMA vs f32 reference -> loosened tolerance
    # (f32 accumulate, f32 bias/residual/ReLU kept in-kernel).
    if not bool(jnp.allclose(out, ref, atol=2e-1, rtol=5e-2)):
        raise AssertionError("Pallas BasicBlock_18 output mismatch vs reference")

    print("KERNEL_OK")
</pallas_src>

<mosaic_0001>
module attributes {stable_mosaic.version = 11 : i64} {
  func.func @basic_block_kernel(%arg0: i32, %arg1: memref<1x256x128xbf16, #tpu.memory_space<vmem>>, %arg2: memref<1152x128xbf16, #tpu.memory_space<vmem>>, %arg3: memref<1152x128xbf16, #tpu.memory_space<vmem>>, %arg4: memref<2x128xf32, #tpu.memory_space<vmem>>, %arg5: memref<1x256x128xf32, #tpu.memory_space<vmem>>) attributes {dimension_semantics = [#tpu.dimension_semantics<parallel>], iteration_bounds = array<i64: 2>, scalar_prefetch = 0 : i64, scratch_operands = 0 : i64, tpu.core_type = #tpu.core_type<tc>, window_params = [{transform_indices = @transform_0, window_bounds = array<i64: 1, 256, 128>}, {pipeline_mode = #tpu.pipeline_mode<synchronous>, transform_indices = @transform_1, window_bounds = array<i64: 1152, 128>}, {pipeline_mode = #tpu.pipeline_mode<synchronous>, transform_indices = @transform_2, window_bounds = array<i64: 1152, 128>}, {pipeline_mode = #tpu.pipeline_mode<synchronous>, transform_indices = @transform_3, window_bounds = array<i64: 2, 128>}, {transform_indices = @transform_4, window_bounds = array<i64: 1, 256, 128>}]} {
    %c0 = arith.constant 0 : index
    %c0_0 = arith.constant 0 : index
    %c0_1 = arith.constant 0 : index
    %0 = vector.load %arg1[%c0, %c0_0, %c0_1] : memref<1x256x128xbf16, #tpu.memory_space<vmem>>, vector<1x256x128xbf16>
    %1 = vector.shape_cast %0 : vector<1x256x128xbf16> to vector<256x128xbf16>
    %2 = arith.extf %1 : vector<256x128xbf16> to vector<256x128xf32>
    %3 = tpu.iota {dimensions = array<i32: 0>} : vector<288x1xi32>
    %c16_i32 = arith.constant 16 : i32
    %c0_i32 = arith.constant 0 : i32
    %4 = arith.cmpi eq, %c16_i32, %c0_i32 : i32
    %c1_i32 = arith.constant 1 : i32
    %5 = arith.select %4, %c1_i32, %c16_i32 : i32
    %6 = vector.broadcast %5 : i32 to vector<288x1xi32>
    %7 = arith.remsi %3, %6 : vector<288x1xi32>
    %c0_i32_2 = arith.constant 0 : i32
    %8 = vector.broadcast %c0_i32_2 : i32 to vector<288x1xi32>
    %9 = arith.cmpi ne, %7, %8 : vector<288x1xi32>
    %c0_i32_3 = arith.constant 0 : i32
    %10 = vector.broadcast %c0_i32_3 : i32 to vector<288x1xi32>
    %11 = arith.cmpi slt, %7, %10 : vector<288x1xi32>
    %c0_i32_4 = arith.constant 0 : i32
    %12 = arith.cmpi slt, %5, %c0_i32_4 : i32
    %13 = vector.broadcast %12 : i1 to vector<288x1xi1>
    %14 = vector.broadcast %13 : vector<288x1xi1> to vector<288x1xi1>
    %15 = arith.xori %11, %14 : vector<288x1xi1>
    %16 = arith.andi %15, %9 : vector<288x1xi1>
    %17 = vector.broadcast %5 : i32 to vector<288x1xi32>
    %18 = arith.addi %7, %17 : vector<288x1xi32>
    %19 = arith.select %16, %18, %7 : vector<288x1xi1>, vector<288x1xi32>
    %c0_i32_5 = arith.constant 0 : i32
    %20 = vector.broadcast %c0_i32_5 : i32 to vector<288x1xi32>
    %21 = arith.cmpi eq, %19, %20 : vector<288x1xi32>
    %c15_i32 = arith.constant 15 : i32
    %22 = vector.broadcast %c15_i32 : i32 to vector<288x1xi32>
    %23 = arith.cmpi eq, %19, %22 : vector<288x1xi32>
    %cst = arith.constant 0.000000e+00 : bf16
    %24 = vector.broadcast %cst : bf16 to vector<16x128xbf16>
    %cst_6 = arith.constant 0.000000e+00 : bf16
    %25 = vector.broadcast %cst_6 : bf16 to vector<1x128xbf16>
    %26 = tpu.concatenate %24, %1, %24 in 0 : vector<16x128xbf16>, vector<256x128xbf16>, vector<16x128xbf16> -> vector<288x128xbf16>
    %27 = vector.extract_strided_slice %26 {offsets = [0, 0], sizes = [287, 128], strides = [1, 1]} : vector<288x128xbf16> to vector<287x128xbf16>
    %28 = tpu.concatenate %25, %27 in 0 : vector<1x128xbf16>, vector<287x128xbf16> -> vector<288x128xbf16>
    %cst_7 = arith.constant 0.000000e+00 : bf16
    %29 = vector.shape_cast %21 : vector<288x1xi1> to vector<288x1xi1>
    %30 = vector.broadcast %29 : vector<288x1xi1> to vector<288x128xi1>
    %31 = vector.broadcast %cst_7 : bf16 to vector<288x128xbf16>
    %32 = arith.select %30, %31, %28 : vector<288x128xi1>, vector<288x128xbf16>
    %33 = vector.extract_strided_slice %26 {offsets = [1, 0], sizes = [287, 128], strides = [1, 1]} : vector<288x128xbf16> to vector<287x128xbf16>
    %34 = tpu.concatenate %33, %25 in 0 : vector<287x128xbf16>, vector<1x128xbf16> -> vector<288x128xbf16>
    %cst_8 = arith.constant 0.000000e+00 : bf16
    %35 = vector.shape_cast %23 : vector<288x1xi1> to vector<288x1xi1>
    %36 = vector.broadcast %35 : vector<288x1xi1> to vector<288x128xi1>
    %37 = vector.broadcast %cst_8 : bf16 to vector<288x128xbf16>
    %38 = arith.select %36, %37, %34 : vector<288x128xi1>, vector<288x128xbf16>
    %39 = tpu.concatenate %32, %26, %38 in 1 : vector<288x128xbf16>, vector<288x128xbf16>, vector<288x128xbf16> -> vector<288x384xbf16>
    %40 = vector.extract_strided_slice %39 {offsets = [0, 0], sizes = [256, 384], strides = [1, 1]} : vector<288x384xbf16> to vector<256x384xbf16>
    %c0_9 = arith.constant 0 : index
    %c0_10 = arith.constant 0 : index
    %41 = vector.load %arg2[%c0_9, %c0_10] : memref<1152x128xbf16, #tpu.memory_space<vmem>>, vector<384x128xbf16>
    %cst_11 = arith.constant dense<0.000000e+00> : vector<256x128xf32>
    %42 = tpu.matmul %40, %41, %cst_11 {dimension_numbers = #tpu.dot_dimension_numbers<[1], [0], [0], [1], [0, 0, 1, 1], [], []>} : vector<256x384xbf16>, vector<384x128xbf16>, vector<256x128xf32> -> vector<256x128xf32>
    %43 = vector.extract_strided_slice %39 {offsets = [16, 0], sizes = [256, 384], strides = [1, 1]} : vector<288x384xbf16> to vector<256x384xbf16>
    %c384 = arith.constant 384 : index
    %c0_12 = arith.constant 0 : index
    %44 = vector.load %arg2[%c384, %c0_12] : memref<1152x128xbf16, #tpu.memory_space<vmem>>, vector<384x128xbf16>
    %cst_13 = arith.constant dense<0.000000e+00> : vector<256x128xf32>
    %45 = tpu.matmul %43, %44, %cst_13 {dimension_numbers = #tpu.dot_dimension_numbers<[1], [0], [0], [1], [0, 0, 1, 1], [], []>} : vector<256x384xbf16>, vector<384x128xbf16>, vector<256x128xf32> -> vector<256x128xf32>
    %46 = arith.addf %42, %45 : vector<256x128xf32>
    %47 = vector.extract_strided_slice %39 {offsets = [32, 0], sizes = [256, 384], strides = [1, 1]} : vector<288x384xbf16> to vector<256x384xbf16>
    %c768 = arith.constant 768 : index
    %c0_14 = arith.constant 0 : index
    %48 = vector.load %arg2[%c768, %c0_14] : memref<1152x128xbf16, #tpu.memory_space<vmem>>, vector<384x128xbf16>
    %cst_15 = arith.constant dense<0.000000e+00> : vector<256x128xf32>
    %49 = tpu.matmul %47, %48, %cst_15 {dimension_numbers = #tpu.dot_dimension_numbers<[1], [0], [0], [1], [0, 0, 1, 1], [], []>} : vector<256x384xbf16>, vector<384x128xbf16>, vector<256x128xf32> -> vector<256x128xf32>
    %50 = arith.addf %46, %49 : vector<256x128xf32>
    %c0_16 = arith.constant 0 : index
    %c0_17 = arith.constant 0 : index
    %51 = vector.load %arg4[%c0_16, %c0_17] : memref<2x128xf32, #tpu.memory_space<vmem>>, vector<1x128xf32>
    %52 = vector.broadcast %51 : vector<1x128xf32> to vector<256x128xf32>
    %53 = arith.addf %50, %52 : vector<256x128xf32>
    %cst_18 = arith.constant 0.000000e+00 : f32
    %54 = vector.broadcast %cst_18 : f32 to vector<256x128xf32>
    %55 = arith.maximumf %53, %54 : vector<256x128xf32>
    %56 = arith.truncf %55 : vector<256x128xf32> to vector<256x128xbf16>
    %57 = tpu.concatenate %24, %56, %24 in 0 : vector<16x128xbf16>, vector<256x128xbf16>, vector<16x128xbf16> -> vector<288x128xbf16>
    %58 = vector.extract_strided_slice %57 {offsets = [0, 0], sizes = [287, 128], strides = [1, 1]} : vector<288x128xbf16> to vector<287x128xbf16>
    %59 = tpu.concatenate %25, %58 in 0 : vector<1x128xbf16>, vector<287x128xbf16> -> vector<288x128xbf16>
    %cst_19 = arith.constant 0.000000e+00 : bf16
    %60 = vector.shape_cast %21 : vector<288x1xi1> to vector<288x1xi1>
    %61 = vector.broadcast %60 : vector<288x1xi1> to vector<288x128xi1>
    %62 = vector.broadcast %cst_19 : bf16 to vector<288x128xbf16>
    %63 = arith.select %61, %62, %59 : vector<288x128xi1>, vector<288x128xbf16>
    %64 = vector.extract_strided_slice %57 {offsets = [1, 0], sizes = [287, 128], strides = [1, 1]} : vector<288x128xbf16> to vector<287x128xbf16>
    %65 = tpu.concatenate %64, %25 in 0 : vector<287x128xbf16>, vector<1x128xbf16> -> vector<288x128xbf16>
    %cst_20 = arith.constant 0.000000e+00 : bf16
    %66 = vector.shape_cast %23 : vector<288x1xi1> to vector<288x1xi1>
    %67 = vector.broadcast %66 : vector<288x1xi1> to vector<288x128xi1>
    %68 = vector.broadcast %cst_20 : bf16 to vector<288x128xbf16>
    %69 = arith.select %67, %68, %65 : vector<288x128xi1>, vector<288x128xbf16>
    %70 = tpu.concatenate %63, %57, %69 in 1 : vector<288x128xbf16>, vector<288x128xbf16>, vector<288x128xbf16> -> vector<288x384xbf16>
    %71 = vector.extract_strided_slice %70 {offsets = [0, 0], sizes = [256, 384], strides = [1, 1]} : vector<288x384xbf16> to vector<256x384xbf16>
    %c0_21 = arith.constant 0 : index
    %c0_22 = arith.constant 0 : index
    %72 = vector.load %arg3[%c0_21, %c0_22] : memref<1152x128xbf16, #tpu.memory_space<vmem>>, vector<384x128xbf16>
    %cst_23 = arith.constant dense<0.000000e+00> : vector<256x128xf32>
    %73 = tpu.matmul %71, %72, %cst_23 {dimension_numbers = #tpu.dot_dimension_numbers<[1], [0], [0], [1], [0, 0, 1, 1], [], []>} : vector<256x384xbf16>, vector<384x128xbf16>, vector<256x128xf32> -> vector<256x128xf32>
    %74 = vector.extract_strided_slice %70 {offsets = [16, 0], sizes = [256, 384], strides = [1, 1]} : vector<288x384xbf16> to vector<256x384xbf16>
    %c384_24 = arith.constant 384 : index
    %c0_25 = arith.constant 0 : index
    %75 = vector.load %arg3[%c384_24, %c0_25] : memref<1152x128xbf16, #tpu.memory_space<vmem>>, vector<384x128xbf16>
    %cst_26 = arith.constant dense<0.000000e+00> : vector<256x128xf32>
    %76 = tpu.matmul %74, %75, %cst_26 {dimension_numbers = #tpu.dot_dimension_numbers<[1], [0], [0], [1], [0, 0, 1, 1], [], []>} : vector<256x384xbf16>, vector<384x128xbf16>, vector<256x128xf32> -> vector<256x128xf32>
    %77 = arith.addf %73, %76 : vector<256x128xf32>
    %78 = vector.extract_strided_slice %70 {offsets = [32, 0], sizes = [256, 384], strides = [1, 1]} : vector<288x384xbf16> to vector<256x384xbf16>
    %c768_27 = arith.constant 768 : index
    %c0_28 = arith.constant 0 : index
    %79 = vector.load %arg3[%c768_27, %c0_28] : memref<1152x128xbf16, #tpu.memory_space<vmem>>, vector<384x128xbf16>
    %cst_29 = arith.constant dense<0.000000e+00> : vector<256x128xf32>
    %80 = tpu.matmul %78, %79, %cst_29 {dimension_numbers = #tpu.dot_dimension_numbers<[1], [0], [0], [1], [0, 0, 1, 1], [], []>} : vector<256x384xbf16>, vector<384x128xbf16>, vector<256x128xf32> -> vector<256x128xf32>
    %81 = arith.addf %77, %80 : vector<256x128xf32>
    %c1 = arith.constant 1 : index
    %c0_30 = arith.constant 0 : index
    %82 = vector.load %arg4[%c1, %c0_30] : memref<2x128xf32, #tpu.memory_space<vmem>>, vector<1x128xf32>
    %83 = vector.broadcast %82 : vector<1x128xf32> to vector<256x128xf32>
    %84 = arith.addf %81, %83 : vector<256x128xf32>
    %85 = arith.addf %84, %2 : vector<256x128xf32>
    %cst_31 = arith.constant 0.000000e+00 : f32
    %86 = vector.broadcast %cst_31 : f32 to vector<256x128xf32>
    %87 = arith.maximumf %85, %86 : vector<256x128xf32>
    %c0_32 = arith.constant 0 : index
    %c0_33 = arith.constant 0 : index
    %c0_34 = arith.constant 0 : index
    %88 = vector.load %arg5[%c0_32, %c0_33, %c0_34] : memref<1x256x128xf32, #tpu.memory_space<vmem>>, vector<1x256x128xf32>
    %89 = vector.shape_cast %88 : vector<1x256x128xf32> to vector<256x128xf32>
    %90 = vector.shape_cast %87 : vector<256x128xf32> to vector<1x256x128xf32>
    tpu.vector_store %arg5[%c0_32, %c0_33, %c0_34], %90 {strides = array<i32>} : memref<1x256x128xf32, #tpu.memory_space<vmem>>, vector<1x256x128xf32>,
    return
  }
  func.func @transform_0(%arg0: i32) -> (i32, i32, i32) {
    %c0_i32 = arith.constant 0 : i32
    %c0_i32_0 = arith.constant 0 : i32
    %c0_i32_1 = arith.constant 0 : i32
    return %arg0, %c0_i32, %c0_i32_0 : i32, i32, i32
  }
  func.func @transform_1(%arg0: i32) -> (i32, i32) {
    %c0_i32 = arith.constant 0 : i32
    %c0_i32_0 = arith.constant 0 : i32
    %c0_i32_1 = arith.constant 0 : i32
    return %c0_i32, %c0_i32_0 : i32, i32
  }
  func.func @transform_2(%arg0: i32) -> (i32, i32) {
    %c0_i32 = arith.constant 0 : i32
    %c0_i32_0 = arith.constant 0 : i32
    %c0_i32_1 = arith.constant 0 : i32
    return %c0_i32, %c0_i32_0 : i32, i32
  }
  func.func @transform_3(%arg0: i32) -> (i32, i32) {
    %c0_i32 = arith.constant 0 : i32
    %c0_i32_0 = arith.constant 0 : i32
    %c0_i32_1 = arith.constant 0 : i32
    return %c0_i32, %c0_i32_0 : i32, i32
  }
  func.func @transform_4(%arg0: i32) -> (i32, i32, i32) {
    %c0_i32 = arith.constant 0 : i32
    %c0_i32_0 = arith.constant 0 : i32
    %c0_i32_1 = arith.constant 0 : i32
    return %arg0, %c0_i32, %c0_i32_0 : i32, i32, i32
  }
}

</mosaic_0001>

<bundles_post_ra>
// kernel: basic_block_18.1
= control target key start
LH: loop header
LB: loop body
LE: loop exit
PB: predicated region body
PF: predicated region fallthrough
CT: control target
= control target key end

     0   :  { %9 = vsyncpa [#allocation3], 0  ;;  %s10356_s0 = inlined_call_operand.vmem [shape: bf16[2,256,128], index: 0, kind: input, shape index: {}]   ;;  %s10357_s1 = inlined_call_operand.vmem [shape: bf16[1152,128], index: 1, kind: input, shape index: {}]   ;;  %s10358_s2 = inlined_call_operand.vmem [shape: bf16[1152,128], index: 2, kind: input, shape index: {}]   ;;  %s10359_s3 = inlined_call_operand.vmem [shape: f32[2,128], index: 3, kind: input, shape index: {}]   ;;  %s10360_s4 = inlined_call_operand.hbm [shape: f32[2,256,128], index: 4, kind: output, shape index: {}]  }
   0x1   :  { %11 = vsyncpa [#allocation3 + $0x1], 0  ;;  %s7350_s15 = smov 0   ;;  %s7352_s16 = smov 0  }
   0x2   :  { %s7354_s17 = smov 0   ;;  %s7356_s18 = smov 0  }
   0x3 LB: > { %s7371_s19 = sadd.s32 4294967295, %s7318_s18   ;;  %s5287_s20 = sadd.s32 4294967294, %s7318_s18   ;;  %s7318_s18 = sphi %s7356_s18, %s11170_s18   ;;  %s7314_s17 = sphi %s7354_s17, %s11169_s17   ;;  %s7310_s16 = sphi %s7352_s16, %s11168_s16   ;;  %s7306_s15 = sphi %s7350_s15, %s11167_s15  }
   0x4   : > { %s7375_s21 = sadd.s32 1, %s7318_s18   ;;  %s113_s22 = sadd.s32 1, %s7314_s17 }
   0x5   : > { %s110_s23 = ssub.s32 %s7318_s18, %s7375_s21  ;;  %p123_p0 = scmp.ne.s32.totalorder %s7314_s17, %s7310_s16 }
   0x6   : > { %p111_p1 = scmp.eq.s32.totalorder %s110_s23, 0  ;;  %p124_p2 = scmp.eq.s32.totalorder %s7371_s19, 1 }
   0x7   : > { %p129_p3 = scmp.ne.s32.totalorder %s7310_s16, %s7306_s15  ;;  %p130_p4 = scmp.eq.s32.totalorder %s5287_s20, 1 }
   0x8   : > { %s7386_s24 = scalar_select %p111_p1, %s7314_s17, %s113_s22  }
   0x9   : > { %p7388_p5 = por %p124_p2, %p123_p0  ;;  %p7392_p6 = por %p130_p4, %p129_p3 }
   0xa   : > { %p5290_p7 = scmp.ge.s32.totalorder %s7318_s18, 1  ;;  %p165_p8 = scmp.lt.s32.totalorder %s7318_s18, 3 }
   0xc   : > { %p166_p9 = pnand %p5290_p7, %p165_p8 }
   0xe   : > { %169 = sbr.rel (%p166_p9) target bundleno = 1003 (0x3eb), region = 36 }
  0x13   : > { %v7066_v0 = vld [vmem:[%s10357_s1 + $0x138] sm:$0xff]   ;;  %v263_v1 = vlaneseq  ;;  %p191_p10 = scmp.lt.s32.totalorder %s7371_s19, 1  ;;  %v7069_v4 = vld [vmem:[%s10357_s1 + $0x130] sm:$0xff]   ;;  %v7072_v8 = vld [vmem:[%s10357_s1 + $0x128] sm:$0xff]   ;;  %v10375_v22 = vmov 0   ;;  %vm7321_vm5 = vmmov 0  }
  0x14   : > { %v7067_v2 = vld [vmem:[%s10357_s1 + $0x178] sm:$0xff]   ;;  %5919 = vmatprep.subr.bf16.mxu0 %v7066_v0  ;;  %v7070_v6 = vld [vmem:[%s10357_s1 + $0x170] sm:$0xff]   ;;  %v7073_v10 = vld [vmem:[%s10357_s1 + $0x168] sm:$0xff]   ;;  %v7455_v23 = vrot.slane %v10375_v22, 7  ;;  %vm10374_vm7 = vsmask.f32 7424 }
  0x15   : > { %v7068_v3 = vld [vmem:[%s10357_s1 + $0xf8] sm:$0xff]   ;;  %6735 = vmatprep.subr.bf16.mxu1 %v7067_v2  ;;  %v7411_v5 = vshrl.u32 %v263_v1, 7  ;;  %v7071_v7 = vld [vmem:[%s10357_s1 + $0xf0] sm:$0xff]   ;;  %s7427_s23 = scalar_select %p191_p10, %s7371_s19, 1  ;;  %v7074_v11 = vld [vmem:[%s10357_s1 + $0xe8] sm:$0xff]  }
  0x16   : > { %5920 = vmatpush3.bf16.msra.mxu0 %v7068_v3  ;;  %6736 = vmatpush3.bf16.msra.mxu1 %v7067_v2  ;;  %v7075_v13 = vld [vmem:[%s10357_s1 + $0x120] sm:$0xff]   ;;  %v7078_v17 = vld [vmem:[%s10357_s1 + $0x118] sm:$0xff]   ;;  %10635 = vst [vmem:[#allocation6_spill] sm:$0xff] %v7455_v23  ;;  %v7081_v27 = vld [vmem:[%s10357_s1 + $0x110] sm:$0xff]   ;;  %vm10363_vm8 = vsmask.f32 256 }
  0x17   : > { %10632 = vst [vmem:[#allocation5_spill] sm:$0xff] %v7411_v5  ;;  %5921 = vmatprep.subr.bf16.mxu0 %v7069_v4  ;;  %6737 = vmatprep.subr.bf16.mxu1 %v7070_v6  ;;  %v267_v9 = vadd.s32 24, %v7411_v5  ;;  %v266_v12 = vadd.s32 16, %v7411_v5  ;;  %v7076_v14 = vld [vmem:[%s10357_s1 + $0x160] sm:$0xff]   ;;  %s5881_s9 = sshll.u32 %s7427_s23, 7  ;;  %v7079_v19 = vld [vmem:[%s10357_s1 + $0x158] sm:$0xff]   ;;  %vm1131_vm6 = vmpackc.low %vm7321_vm5, %vm7321_vm5 }
  0x18   : > { %v7077_v16 = vld [vmem:[%s10357_s1 + $0xe0] sm:$0xff]   ;;  %v269_v20 = vadd.s32 40, %v7411_v5  ;;  %v271_v24 = vadd.s32 56, %v7411_v5  ;;  %v7080_v25 = vld [vmem:[%s10357_s1 + $0xd8] sm:$0xff]   ;;  %v7082_v29 = vld [vmem:[%s10357_s1 + $0x150] sm:$0xff]   ;;  %v268_v34 = vadd.s32 32, %v7411_v5  ;;  %s7495_s13 = scalar_lea.vmem %s10356_s0, %s5881_s9 }
  0x19   : > { %v325_v15 = vand.u32 15, %v267_v9  ;;  %v318_v18 = vand.u32 15, %v266_v12  ;;  %v7083_v31 = vld [vmem:[%s10357_s1 + $0xd0] sm:$0xff]   ;;  %v7084_v33 = vld [vmem:[%s10357_s1 + $0x108] sm:$0xff]   ;;  %v273_v36 = vadd.s32 72, %v7411_v5  ;;  %v7087_v41 = vld [vmem:[%s10357_s1 + $0x100] sm:$0xff]  }
  0x1a   : > { %5922 = vmatpush3.bf16.msra.mxu0 %v7071_v7  ;;  %6738 = vmatpush3.bf16.msra.mxu1 %v7070_v6  ;;  %v339_v26 = vand.u32 15, %v269_v20  ;;  %v353_v28 = vand.u32 15, %v271_v24  ;;  %v7085_v37 = vld [vmem:[%s10357_s1 + $0x148] sm:$0xff]   ;;  %v332_v38 = vand.u32 15, %v268_v34  ;;  %v7088_v42 = vld [vmem:[%s10357_s1 + $0x140] sm:$0xff]   ;;  %v7517_v46 = vsel %vm1131_vm6, 65537, %v10375_v22 }
  0x1b   : > { %5923 = vmatprep.subr.bf16.mxu0 %v7072_v8  ;;  %6739 = vmatprep.subr.bf16.mxu1 %v7073_v10  ;;  %vm7450_vm0 = vcmp.eq.s32.totalorder %v325_v15, 15  ;;  %vm7467_vm1 = vcmp.eq.s32.totalorder %v318_v18, 0  ;;  %v7086_v39 = vld [vmem:[%s10357_s1 + $0xc8] sm:$0xff]   ;;  %v367_v40 = vand.u32 15, %v273_v36  ;;  %v7511_v44 = vld [vmem:[%s7495_s13] sm:$0xff]   ;;  %v7523_v47 = vld [vmem:[%s7495_s13 + $0x10] sm:$0xff]  }
  0x1c   : > { %vm7474_vm2 = vcmp.eq.s32.totalorder %v339_v26, 15  ;;  %vm7482_vm3 = vcmp.eq.s32.totalorder %v353_v28, 15  ;;  %vm7506_vm4 = vcmp.eq.s32.totalorder %v332_v38, 0  ;;  %v7514_v45 = vld [vmem:[%s7495_s13 + $0x8] sm:$0xff]   ;;  %vm1440_vm9 = vmpackc.low %vm7450_vm0, %vm7450_vm0  ;;  %v7089_v49 = vld [vmem:[%s10357_s1 + $0xc0] sm:$0xff]   ;;  %v7537_v51 = vadd.s32 88, %v7411_v5  ;;  %1871 = vmatprep.mubr.bf16.mxu0 %v7511_v44 }
  0x1d   : > { %vm7525_vm10 = vcmp.eq.s32.totalorder %v367_v40, 15  ;;  %v1476_v50 = vsel %vm1440_vm9, 65537, %v10375_v22  ;;  %vm1132_vm11 = vmpackc.low %vm7467_vm1, %vm7467_vm1  ;;  %v7540_v52 = vadd.s32 48, %v7411_v5  ;;  %v909_v53 = vshrl.u32 %v7511_v44, 16  ;;  %v7093_v61 = vld [vmem:[%s10357_s1 + $0xb8] sm:$0xff]   ;;  %v7098_v24 = vld [vmem:[%s10357_s1 + $0x70] sm:$0xff]  }
  0x1e   : > { %5924 = vmatpush3.bf16.msra.mxu0 %v7074_v11  ;;  %6740 = vmatpush3.bf16.msra.mxu1 %v7073_v10  ;;  %v912_v54 = vshll.u32 %v7511_v44, 16  ;;  %v917_v55 = vshrl.u32 %v7514_v45, 16  ;;  %v920_v56 = vshll.u32 %v7514_v45, 16  ;;  %vm1442_vm12 = vmpackc.low %vm7474_vm2, %vm7474_vm2  ;;  %v5329_v57 = vcombine.low %v7517_v46, %v1476_v50  ;;  %v7094_v2 = vld [vmem:[%s10357_s1 + $0x78] sm:$0xff]   ;;  %v7652_v34 = vld [vmem:[%s7495_s13 + $0x30] sm:$0xff]   ;;  %s188_s6 = sand.u32 1, %s7310_s16  }
  0x1f   : > { %5925 = vmatprep.subr.bf16.mxu0 %v7075_v13  ;;  %6741 = vmatprep.subr.bf16.mxu1 %v7076_v14  ;;  %v1168_v58 = vsel %vm1132_vm11, 65537, %v10375_v22  ;;  %v928_v59 = vshll.u32 %v7523_v47, 16  ;;  %v1478_v60 = vsel %vm1442_vm12, 65537, %v10375_v22  ;;  %v911_v62 = vrot.slane %v909_v53, 7  ;;  %vm1444_vm13 = vmpackc.low %vm7482_vm3, %vm7482_vm3  ;;  %v7574_v7 = vld [vmem:[%s7495_s13 + $0x18] sm:$0xff]   ;;  %v7586_v13 = vld [vmem:[%s7495_s13 + $0x20] sm:$0xff]  }
  0x20   : > { %v7557_v63 = vrot.slane %v912_v54, 1  ;;  %v1298_v0 = vrot.slane %v920_v56, 1  ;;  %v5311_v1 = vcombine.low %v1168_v58, %v7517_v46  ;;  %vm7566_vm14 = vcmp.eq.s16.totalorder %v5329_v57, 0  ;;  %vm1134_vm15 = vmpackc.low %vm7506_vm4, %vm7506_vm4  ;;  %v7095_v15 = vld [vmem:[%s10357_s1 + $0x38] sm:$0xff]   ;;  %v7102_v35 = vld [vmem:[%s10357_s1 + $0xb0] sm:$0xff]   ;;  %s5291_s10 = sshll.u32 %s188_s6, 8 }
  0x21   : > { %v10646_v3 = vmov 0  ;;  %v1301_v4 = vrot.slane %v928_v59, 1  ;;  %v5330_v6 = vcombine.low %v7517_v46, %v1478_v60  ;;  %v925_v8 = vshrl.u32 %v7523_v47, 16  ;;  %vm1446_vm2 = vmpackc.low %vm7525_vm10, %vm7525_vm10  ;;  %v7103_v40 = vld [vmem:[%s10357_s1 + $0x68] sm:$0xff]   ;;  %s10136_s11 = scalar_lea.vmem [#allocation2], %s5291_s10  ;;  %s10316_s27 = scalar_lea.sflag [#allocation3], %s188_s6 }
  0x22   : > { %5926 = vmatpush3.bf16.msra.mxu0 %v7077_v16  ;;  %6742 = vmatpush3.bf16.msra.mxu1 %v7076_v14  ;;  %v10647_v3 = vsel %vm7566_vm14, 4294967295, %v10646_v3  ;;  %v1297_v9 = vor.u32 %v7557_v63, %v909_v53  ;;  %v1300_v10 = vor.u32 %v1298_v0, %v917_v55  ;;  %v914_v11 = vor.u32 %v912_v54, %v911_v62  ;;  %v7104_v60 = vld [vmem:[%s10357_s1 + $0x28] sm:$0xff]   ;;  %s5225_s12 = sshll.u32 %s10136_s11, 4  ;;  %s7322_s28 = smov [#allocation2]   ;;  %s10311_s12 = int_to_ptr.vmem [resolvable:$true] %s5225_s12 }
  0x23   : > { %5927 = vmatprep.subr.bf16.mxu0 %v7078_v17  ;;  %6743 = vmatprep.subr.bf16.mxu1 %v7079_v19  ;;  %10648 = vst [vmem:[#allocation7_spill] sm:$0xff] %v10647_v3  ;;  %vm7581_vm0 = vcmp.eq.s16.totalorder %v5311_v1, 0  ;;  %v10649_v12 = vmov 0  ;;  %vm7588_vm1 = vcmp.eq.s16.totalorder %v5330_v6, 0  ;;  %v10652_v14 = vmov 0  ;;  %s7262_s23 = sshll.u32 %s7322_s28, 4  ;;  %s7263_s23 = int_to_ptr.vmem [resolvable:$false] %s7262_s23 }
  0x24   : > { %v10650_v12 = vsel %vm7581_vm0, 4294967295, %v10649_v12  ;;  %v10653_v14 = vsel %vm7588_vm1, 4294967295, %v10652_v14  ;;  %v1303_v16 = vor.u32 %v1301_v4, %v925_v8  ;;  %v1480_v17 = vsel %vm1444_vm13, 65537, %v10375_v22  ;;  %s7264_s9 = scalar_lea.vmem %s7263_s23, 8192  ;;  %p7265_p0 = scmp.lt.s32.totalorder %s10311_s12, %s7263_s23 }
  0x25   : > { %10651 = vst [vmem:[#allocation8_spill] sm:$0xff] %v10650_v12  ;;  %10654 = vst [vmem:[#allocation9_spill] sm:$0xff] %v10653_v14  ;;  %v7605_v18 = vsel %vm10374_vm7, %v1297_v9, %v1298_v0  ;;  %v7612_v20 = vsel %vm10374_vm7, %v1300_v10, %v1301_v4  ;;  %v7614_v21 = vrot.slane %v917_v55, 7  ;;  %v936_v26 = vshll.u32 %v7574_v7, 16  ;;  %v7107_v0 = vld [vmem:[%s10357_s1 + $0x60] sm:$0xff]  }
  0x26   : > { %5928 = vmatpush3.bf16.msra.mxu0 %v7080_v25  ;;  %6744 = vmatpush3.bf16.msra.mxu1 %v7079_v19  ;;  %v7609_v19 = vsel %vm10363_vm8, %v7455_v23, %v914_v11  ;;  %v7620_v25 = vld [vmem:[%s7495_s13 + $0x28] sm:$0xff]   ;;  %v1170_v28 = vsel %vm1134_vm15, 65537, %v10375_v22  ;;  %v933_v32 = vshrl.u32 %v7574_v7, 16  ;;  %v944_v38 = vshll.u32 %v7586_v13, 16  ;;  %v7108_v9 = vld [vmem:[%s10357_s1 + $0x20] sm:$0xff]  }
  0x27   : > { %5929 = vmatprep.subr.bf16.mxu0 %v7081_v27  ;;  %6745 = vmatprep.subr.bf16.mxu1 %v7082_v29  ;;  %v5331_v27 = vcombine.low %v7517_v46, %v1480_v17  ;;  %v922_v30 = vor.u32 %v920_v56, %v7614_v21  ;;  %v1304_v36 = vrot.slane %v936_v26, 1  ;;  %v381_v43 = vand.u32 15, %v7537_v51 }
  0x28   : > { %6751 = vmatprep.mubr.msk.bf16.mxu1 %vm7566_vm14, %v7605_v18  ;;  %v1307_v50 = vrot.slane %v944_v38, 1  ;;  %v10660_v53 = vmov 0  ;;  %v941_v51 = vshrl.u32 %v7586_v13, 16  ;;  %v10373_v54 = vshll.u32 %v7620_v25, 16 }
  0x29   : > { %vm7659_vm3 = vcmp.eq.s16.totalorder %v5331_v27, 0  ;;  %v7678_v48 = vsel %vm10374_vm7, %v1303_v16, %v1304_v36  ;;  %vm779_vm6 = vcmp.eq.s32.totalorder %v381_v43, 15  ;;  %v346_v55 = vand.u32 15, %v7540_v52  ;;  %v7111_v16 = vld [vmem:[%s10357_s1 + $0xa8] sm:$0xff]  }
  0x2a   : > { %5930 = vmatpush3.bf16.msra.mxu0 %v7083_v31  ;;  %6746 = vmatpush3.bf16.msra.mxu1 %v7082_v29  ;;  %v7099_v29 = vld [vmem:[%s10357_s1 + $0x30] sm:$0xff]   ;;  %v5312_v31 = vcombine.low %v1170_v28, %v7517_v46  ;;  %vm1448_vm9 = vmpackc.low %vm779_vm6, %vm779_vm6  ;;  %v7697_v57 = vrot.slane %v925_v8, 7  ;;  %v277_v58 = vadd.s32 104, %v7411_v5  ;;  %v1310_v52 = vrot.slane %v10373_v54, 1  ;;  %v7717_v8 = vld [vmem:[%s7495_s13 + $0x38] sm:$0xff]  }
  0x2b   : > { %5931 = vmatprep.subr.bf16.mxu0 %v7084_v33  ;;  %6747 = vmatprep.subr.bf16.mxu1 %v7085_v37  ;;  %v1482_v33 = vsel %vm1446_vm2, 65537, %v10375_v22  ;;  %vm738_vm10 = vcmp.eq.s32.totalorder %v346_v55, 0  ;;  %v949_v6 = vshrl.u32 %v7620_v25, 16  ;;  %v10371_v11 = vshll.u32 %v7652_v34, 16  ;;  %v7748_v28 = vld [vmem:[%s7495_s13 + $0x40] sm:$0xff]   ;;  %v7953_v54 = vld [vmem:[%s7495_s13 + $0x68] sm:$0xff]  }
  0x2c   : > { %vm7672_vm4 = vcmp.eq.s16.totalorder %v5312_v31, 0  ;;  %vm1136_vm11 = vmpackc.low %vm738_vm10, %vm738_vm10  ;;  %v395_v4 = vand.u32 15, %v277_v58  ;;  %v10663_v17 = vmov 0  ;;  %v7776_v58 = vrot.slane %v933_v32, 7  ;;  %10698 = vst [vmem:[#allocation28_spill] sm:$0xff] %v7953_v54 }
  0x2d   : > { %v1172_v10 = vsel %vm1136_vm11, 65537, %v10375_v22 }
  0x2e   : > { %5932 = vmatpush3.bf16.msra.mxu0 %v7086_v39  ;;  %6748 = vmatpush3.bf16.msra.mxu1 %v7085_v37  ;;  %v10655_v37 = vmov 0  ;;  %v5332_v39 = vcombine.low %v7517_v46, %v1482_v33  ;;  %v5313_v27 = vcombine.low %v1172_v10, %v7517_v46  ;;  %vm781_vm13 = vcmp.eq.s32.totalorder %v395_v4, 15 }
  0x2f   : > { %5933 = vmatprep.subr.bf16.mxu0 %v7087_v41  ;;  %6749 = vmatprep.subr.bf16.mxu1 %v7088_v42  ;;  %v10656_v37 = vsel %vm7659_vm3, 4294967295, %v10655_v37  ;;  %v7670_v41 = vsel %vm10363_vm8, %v911_v62, %v922_v30  ;;  %v1484_v62 = vsel %vm1448_vm9, 65537, %v10375_v22  ;;  %v1313_v30 = vrot.slane %v10371_v11, 1  ;;  %vm1450_vm15 = vmpackc.low %vm781_vm13, %vm781_vm13 }
  0x30   : > { %vm7684_vm5 = vcmp.eq.s16.totalorder %v5332_v39, 0  ;;  %v5333_v1 = vcombine.low %v7517_v46, %v1484_v62  ;;  %vm7760_vm2 = vcmp.eq.s16.totalorder %v5313_v27, 0  ;;  %v272_v39 = vadd.s32 64, %v7411_v5 }
  0x31   : > { %v10661_v53 = vsel %vm7684_vm5, 4294967295, %v10660_v53  ;;  %v10368_v10 = vshrl.u32 %v7717_v8, 16  ;;  %v10674_v27 = vmov 0 }
  0x32   : > { %5934 = vmatpush3.bf16.msra.mxu0 %v7089_v49  ;;  %6750 = vmatpush3.bf16.msra.mxu1 %v7088_v42  ;;  %v10657_v42 = vmov 0  ;;  %v1306_v49 = vor.u32 %v1304_v36, %v933_v32  ;;  %vm7738_vm12 = vcmp.eq.s16.totalorder %v5333_v1, 0  ;;  %v10372_v36 = vshrl.u32 %v7652_v34, 16  ;;  %v7116_v32 = vld [vmem:[%s10357_s1 + $0x50] sm:$0xff]  }
  0x33   : > { %6783 = vmatprep.subr.bf16.mxu0 %v7093_v61  ;;  %6055 = vmatprep.subr.bf16.mxu1 %v7094_v2  ;;  %v10658_v42 = vsel %vm7672_vm4, 4294967295, %v10657_v42  ;;  %v930_v2 = vor.u32 %v928_v59, %v7697_v57  ;;  %v10664_v17 = vsel %vm7738_vm12, 4294967295, %v10663_v17  ;;  %v360_v55 = vand.u32 15, %v272_v39 }
  0x34   : > { %10659 = vst [vmem:[#allocation10_spill] sm:$0xff] %v10658_v42  ;;  %v7695_v56 = vsel %vm10374_vm7, %v1306_v49, %v1307_v50  ;;  %10665 = vst [vmem:[#allocation12_spill] sm:$0xff] %v10664_v17  ;;  %v10367_v49 = vshll.u32 %v7717_v8, 16 }
  0x35   : > { %5371 = vmatmul.mubr.msk.bf16.vlgmr.msra.gmra.mxu0 %vm7581_vm0, %v7609_v19  ;;  %6752 = vmatmul.mubr.msk.bf16.vlgmr.msra.gmra.mxu1 %vm7588_vm1, %v7612_v20  ;;  %vm740_vm11 = vcmp.eq.s32.totalorder %v360_v55, 0 }
  0x36   : > { %6784 = vmatpush3.bf16.msra.mxu0 %v7093_v61  ;;  %6056 = vmatpush3.bf16.msra.mxu1 %v7095_v15  ;;  %v1309_v61 = vor.u32 %v1307_v50, %v941_v51  ;;  %v279_v15 = vadd.s32 120, %v7411_v5  ;;  %v1315_v50 = vor.u32 %v1313_v30, %v10372_v36  ;;  %v1316_v62 = vrot.slane %v10367_v49, 1  ;;  %vm1138_vm13 = vmpackc.low %vm740_vm11, %vm740_vm11  ;;  %v7913_v49 = vld [vmem:[%s7495_s13 + $0x60] sm:$0xff]  }
  0x37   : > { %1879 = vmatprep.mubr.bf16.mxu0 %v7514_v45  ;;  %6057 = vmatprep.subr.bf16.mxu1 %v7098_v24  ;;  %v7744_v24 = vsel %vm10363_vm8, %v7614_v21, %v930_v2  ;;  %v7112_v21 = vld [vmem:[%s10357_s1 + $0x58] sm:$0xff]   ;;  %v938_v2 = vor.u32 %v936_v26, %v7776_v58  ;;  %v283_v26 = vadd.s32 152, %v7411_v5  ;;  %10693 = vst [vmem:[#allocation25_spill] sm:$0xff] %v7913_v49 }
  0x38   : > { %6785 = vmatprep.subr.bf16.mxu0 %v7102_v35  ;;  %6755 = vmatprep.mubr.msk.bf16.mxu1 %vm7659_vm3, %v7678_v48  ;;  %v7729_v59 = vsel %vm10374_vm7, %v1309_v61, %v1310_v52  ;;  %v409_v31 = vand.u32 15, %v279_v15  ;;  %v7113_v61 = vld [vmem:[%s10357_s1 + $0x18] sm:$0xff]   ;;  %v10362_v15 = vshll.u32 %v7748_v28, 16 }
  0x39   : > { %10662 = vst [vmem:[#allocation11_spill] sm:$0xff] %v7729_v59 }
  0x3a   : > { %6058 = vmatpush3.bf16.msra.mxu1 %v7099_v29  ;;  %6786 = vmatpush3.bf16.msra.mxu0 %v7102_v35  ;;  %v1312_v29 = vor.u32 %v1310_v52, %v949_v6  ;;  %v1486_v35 = vsel %vm1450_vm15, 65537, %v10375_v22  ;;  %vm783_vm6 = vcmp.eq.s32.totalorder %v409_v31, 15  ;;  %v10669_v52 = vmov 0  ;;  %v7822_v31 = vld [vmem:[%s7495_s13 + $0x50] sm:$0xff]  }
  0x3b   : > { %6059 = vmatprep.subr.bf16.mxu1 %v7103_v40  ;;  %6787 = vmatprep.subr.bf16.mxu0 %v7111_v16  ;;  %v5334_v43 = vcombine.low %v7517_v46, %v1486_v35  ;;  %vm1452_vm9 = vmpackc.low %vm783_vm6, %vm783_vm6  ;;  %10677 = vst [vmem:[#allocation18_spill] sm:$0xff] %v7822_v31  ;;  %v1319_v39 = vrot.slane %v10362_v15, 1 }
  0x3c   : > { %v7768_v40 = vsel %vm10374_vm7, %v1312_v29, %v1313_v30  ;;  %v7818_v29 = vsel %vm10363_vm8, %v7697_v57, %v938_v2  ;;  %v1174_v30 = vsel %vm1138_vm13, 65537, %v10375_v22  ;;  %v1318_v57 = vor.u32 %v1316_v62, %v10368_v10 }
  0x3d   : > { %5373 = vmatmul.mubr.msk.bf16.gmra.mxu0 %vm7672_vm4, %v7670_v41  ;;  %6756 = vmatmul.mubr.msk.bf16.gmra.mxu1 %vm7684_vm5, %v7695_v56  ;;  %10668 = vst [vmem:[#allocation13_spill] sm:$0xff] %v7768_v40  ;;  %vm7782_vm10 = vcmp.eq.s16.totalorder %v5334_v43, 0  ;;  %v5314_v35 = vcombine.low %v1174_v30, %v7517_v46  ;;  %v437_v43 = vand.u32 15, %v283_v26  ;;  %v7857_v30 = vrot.slane %v941_v51, 7 }
  0x3e   : > { %1887 = vmatprep.mubr.bf16.mxu0 %v7523_v47  ;;  %6060 = vmatpush3.bf16.msra.mxu1 %v7104_v60  ;;  %v281_v60 = vadd.s32 136, %v7411_v5  ;;  %v10670_v52 = vsel %vm7782_vm10, 4294967295, %v10669_v52 }
  0x3f   : > { %6759 = vmatprep.mubr.msk.bf16.mxu1 %vm7738_vm12, %v7729_v59  ;;  %6061 = vmatprep.subr.bf16.mxu1 %v7107_v0  ;;  %10671 = vst [vmem:[#allocation14_spill] sm:$0xff] %v10670_v52  ;;  %v1488_v0 = vsel %vm1452_vm9, 65537, %v10375_v22  ;;  %vm7844_vm11 = vcmp.eq.s16.totalorder %v5314_v35, 0  ;;  %vm787_vm13 = vcmp.eq.s32.totalorder %v437_v43, 15  ;;  %v7122_v35 = vld [vmem:[%s10357_s1 + $0x8] sm:$0xff]   ;;  %v10744_v52 = vmov 0 }
  0x40   : > { %6788 = vmatpush3.bf16.msra.mxu0 %v7111_v16  ;;  %v5335_v1 = vcombine.low %v7517_v46, %v1488_v0  ;;  %v423_v4 = vand.u32 15, %v281_v60  ;;  %v7808_v16 = vld [vmem:[%s7495_s13 + $0x48] sm:$0xff]   ;;  %v10364_v60 = vshrl.u32 %v7748_v28, 16  ;;  %v10678_v0 = vmov 0 }
  0x41   : > { %10673 = vst [vmem:[#allocation16_spill] sm:$0xff] %v7808_v16  ;;  %v10679_v0 = vsel %vm7844_vm11, 4294967295, %v10678_v0  ;;  %v10361_v2 = vshll.u32 %v7808_v16, 16 }
  0x42   : > { %6062 = vmatpush3.bf16.msra.mxu1 %v7108_v9  ;;  %v7803_v9 = vsel %vm10374_vm7, %v1315_v50, %v1316_v62  ;;  %vm7812_vm15 = vcmp.eq.s16.totalorder %v5335_v1, 0  ;;  %vm785_vm6 = vcmp.eq.s32.totalorder %v423_v4, 15  ;;  %v7120_v50 = vld [vmem:[%s10357_s1 + $0xa0] sm:$0xff]   ;;  %v7121_v62 = vld [vmem:[%s10357_s1 + $0x48] sm:$0xff]   ;;  %10680 = vst [vmem:[#allocation19_spill] sm:$0xff] %v10679_v0  ;;  %v1321_v4 = vor.u32 %v1319_v39, %v10364_v60 }
  0x43   : > { %6063 = vmatprep.subr.bf16.mxu1 %v7112_v21  ;;  %10672 = vst [vmem:[#allocation15_spill] sm:$0xff] %v7803_v9  ;;  %v10675_v27 = vsel %vm7812_vm15, 4294967295, %v10674_v27  ;;  %v7117_v21 = vld [vmem:[%s10357_s1 + $0x10] sm:$0xff]   ;;  %vm1454_vm9 = vmpackc.low %vm785_vm6, %vm785_vm6  ;;  %6789 = vmatprep.subr.bf16.mxu0 %v7120_v50  ;;  %v1322_v51 = vrot.slane %v10361_v2, 1  ;;  %v287_v2 = vadd.s32 184, %v7411_v5  ;;  %v10689_v60 = vmov 0 }
  0x44   : > { %10676 = vst [vmem:[#allocation17_spill] sm:$0xff] %v10675_v27  ;;  %v1490_v55 = vsel %vm1454_vm9, 65537, %v10375_v22  ;;  %vm1456_vm6 = vmpackc.low %vm787_vm13, %vm787_vm13  ;;  %6790 = vmatpush3.bf16.msra.mxu0 %v7120_v50 }
  0x45   : > { %5375 = vmatmul.mubr.msk.bf16.gmra.mxu0 %vm7760_vm2, %v7744_v24  ;;  %6760 = vmatmul.mubr.msk.bf16.gmra.mxu1 %vm7782_vm10, %v7768_v40  ;;  %v5336_v1 = vcombine.low %v7517_v46, %v1490_v55  ;;  %v1492_v43 = vsel %vm1456_vm6, 65537, %v10375_v22  ;;  %v7869_v55 = vld [vmem:[%s7495_s13 + $0x58] sm:$0xff]   ;;  %v7901_v15 = vsel %vm10374_vm7, %v1321_v4, %v1322_v51 }
  0x46   : > { %1895 = vmatprep.mubr.bf16.mxu0 %v7574_v7  ;;  %6064 = vmatpush3.bf16.msra.mxu1 %v7113_v61  ;;  %v274_v61 = vadd.s32 80, %v7411_v5  ;;  %10685 = vst [vmem:[#allocation22_spill] sm:$0xff] %v7869_v55  ;;  %10688 = vst [vmem:[#allocation23_spill] sm:$0xff] %v7901_v15  ;;  %v10381_v36 = vshll.u32 %v7869_v55, 16 }
  0x47   : > { %6763 = vmatprep.mubr.msk.bf16.mxu1 %vm7812_vm15, %v7803_v9  ;;  %6065 = vmatprep.subr.bf16.mxu1 %v7116_v32  ;;  %v7849_v32 = vsel %vm10374_vm7, %v1318_v57, %v1319_v39  ;;  %vm7862_vm9 = vcmp.eq.s16.totalorder %v5336_v1, 0  ;;  %v10682_v57 = vmov 0  ;;  %v285_v39 = vadd.s32 168, %v7411_v5  ;;  %v7124_v1 = vld [vmem:[%s10357_s1 + $0x40] sm:$0xff]  }
  0x48   : > { %10681 = vst [vmem:[#allocation20_spill] sm:$0xff] %v7849_v32  ;;  %v374_v26 = vand.u32 15, %v274_v61  ;;  %v10683_v57 = vsel %vm7862_vm9, 4294967295, %v10682_v57  ;;  %v946_v61 = vor.u32 %v944_v38, %v7857_v30 }
  0x49   : > { %10684 = vst [vmem:[#allocation21_spill] sm:$0xff] %v10683_v57  ;;  %v451_v38 = vand.u32 15, %v285_v39  ;;  %v10718_v57 = vshll.u32 %v7953_v54, 16 }
  0x4a   : > { %6066 = vmatpush3.bf16.msra.mxu1 %v7117_v21  ;;  %v5337_v21 = vcombine.low %v7517_v46, %v1492_v43  ;;  %vm7874_vm13 = vcmp.eq.s32.totalorder %v374_v26, 0  ;;  %v10370_v26 = vshrl.u32 %v7808_v16, 16  ;;  %v10369_v43 = vshll.u32 %v7822_v31, 16 }
  0x4b   : > { %6067 = vmatprep.subr.bf16.mxu1 %v7121_v62  ;;  %v7125_v62 = vld [vmem:[%s10357_s1] sm:$0xff]   ;;  %vm1140_vm6 = vmpackc.low %vm7874_vm13, %vm7874_vm13  ;;  %vm789_vm13 = vcmp.eq.s32.totalorder %v451_v38, 15  ;;  %v10382_v38 = vshrl.u32 %v7822_v31, 16 }
  0x4c   : > { %vm7903_vm8 = vcmp.eq.s16.totalorder %v5337_v21, 0  ;;  %v1176_v39 = vsel %vm1140_vm6, 65537, %v10375_v22  ;;  %v1324_v21 = vor.u32 %v1322_v51, %v10370_v26  ;;  %v1325_v10 = vrot.slane %v10369_v43, 1 }
  0x4d   : > { %5377 = vmatmul.mubr.msk.bf16.gmra.mxu0 %vm7844_vm11, %v7818_v29  ;;  %6764 = vmatmul.mubr.msk.bf16.gmra.mxu1 %vm7862_vm9, %v7849_v32  ;;  %v10690_v60 = vsel %vm7903_vm8, 4294967295, %v10689_v60  ;;  %vm10692_vm9 = vsmask.f32 256  ;;  %v5315_v4 = vcombine.low %v1176_v39, %v7517_v46  ;;  %v276_v51 = vadd.s32 96, %v7411_v5 }
  0x4e   : > { %1903 = vmatprep.mubr.bf16.mxu0 %v7586_v13  ;;  %10691 = vst [vmem:[#allocation24_spill] sm:$0xff] %v10690_v60  ;;  %v7909_v50 = vsel %vm10692_vm9, %v7776_v58, %v946_v61  ;;  %6068 = vmatpush3.bf16.msra.mxu1 %v7122_v35  ;;  %v7126_v58 = vld [vmem:[%s10357_s1 + $0x98] sm:$0xff]   ;;  %vm1458_vm9 = vmpackc.low %vm789_vm13, %vm789_vm13  ;;  %v465_v61 = vand.u32 15, %v287_v2  ;;  %v10694_v39 = vmov 0  ;;  %v7941_v43 = vsel %vm10374_vm7, %v1324_v21, %v1325_v10 }
  0x4f   : > { %6767 = vmatprep.mubr.msk.bf16.mxu1 %vm7903_vm8, %v7901_v15  ;;  %6069 = vmatprep.subr.bf16.mxu1 %v7124_v1  ;;  %v7929_v35 = vld [vmem:[%s10357_s1 + $0x238] sm:$0xff]   ;;  %v7128_v1 = vld [vmem:[%s10357_s1 + $0x90] sm:$0xff]   ;;  %vm7936_vm6 = vcmp.eq.s16.totalorder %v5315_v4, 0  ;;  %10697 = vst [vmem:[#allocation27_spill] sm:$0xff] %v7941_v43  ;;  %v1494_v26 = vsel %vm1458_vm9, 65537, %v10375_v22  ;;  %v7946_v2 = vrot.slane %v949_v6, 7  ;;  %v1327_v4 = vor.u32 %v1325_v10, %v10382_v38 }
  0x50   : > { %v10695_v39 = vsel %vm7936_vm6, 4294967295, %v10694_v39  ;;  %6791 = vmatprep.subr.bf16.mxu0 %v7126_v58  ;;  %v5338_v11 = vcombine.low %v7517_v46, %v1494_v26  ;;  %vm791_vm13 = vcmp.eq.s32.totalorder %v465_v61, 15  ;;  %v388_v21 = vand.u32 15, %v276_v51 }
  0x51   : > { %10696 = vst [vmem:[#allocation26_spill] sm:$0xff] %v10695_v39  ;;  %6792 = vmatpush3.bf16.msra.mxu0 %v7126_v58  ;;  %vm1460_vm7 = vmpackc.low %vm791_vm13, %vm791_vm13  ;;  %v10699_v22 = vshll.u32 %v7620_v25, 16  ;;  %v289_v60 = vadd.s32 200, %v7411_v5  ;;  %v10700_v26 = vmov 0  ;;  %v1328_v10 = vrot.slane %v10381_v36, 1  ;;  %v7130_v36 = vld [vmem:[%s10357_s1 + $0x88] sm:$0xff]  }
  0x52   : > { %6070 = vmatpush3.bf16.msra.mxu1 %v7125_v62  ;;  %6793 = vmatprep.subr.bf16.mxu0 %v7128_v1  ;;  %vm7960_vm9 = vcmp.eq.s16.totalorder %v5338_v11, 0  ;;  %v10703_v62 = vmov 0   ;;  %vm744_vm13 = vcmp.eq.s32.totalorder %v388_v21, 0  ;;  %vm10704_vm8 = vsmask.f32 256 }
  0x53   : > { %v954_v6 = vor.u32 %v10699_v22, %v7946_v2  ;;  %6831 = vmatprep.subr.bf16.mxu1 %v7929_v35  ;;  %v10701_v26 = vsel %vm7960_vm9, 4294967295, %v10700_v26  ;;  %v1496_v58 = vsel %vm1460_vm7, 65537, %v10703_v62  ;;  %v479_v51 = vand.u32 15, %v289_v60  ;;  %vm1142_vm15 = vmpackc.low %vm744_vm13, %vm744_vm13 }
  0x54   : > { %10702 = vst [vmem:[#allocation29_spill] sm:$0xff] %v10701_v26  ;;  %v5339_v22 = vcombine.low %v7517_v46, %v1496_v58  ;;  %vm10705_vm7 = vsmask.f32 7424  ;;  %v10397_v61 = vshll.u32 %v7913_v49, 16  ;;  %v10707_v21 = vshrl.u32 %v7869_v55, 16  ;;  %v8006_v26 = vld [vmem:[%s7495_s13 + $0x70] sm:$0xff]  }
  0x55   : > { %5379 = vmatmul.mubr.msk.bf16.gmra.mxu0 %vm7936_vm6, %v7909_v50  ;;  %6768 = vmatmul.mubr.msk.bf16.gmra.mxu1 %vm7960_vm9, %v7941_v43  ;;  %v7977_v11 = vsel %vm10704_vm8, %v7857_v30, %v954_v6  ;;  %v7984_v38 = vsel %vm10705_vm7, %v1327_v4, %v1328_v10  ;;  %v291_v30 = vadd.s32 216, %v7411_v5  ;;  %v10708_v60 = vmov 0  ;;  %v7132_v4 = vld [vmem:[%s10357_s1 + $0x80] sm:$0xff]   ;;  %10711 = vst [vmem:[#allocation32_spill] sm:$0xff] %v8006_v26 }
  0x56   : > { %1911 = vmatprep.mubr.bf16.mxu0 %v7620_v25  ;;  %10706 = vst [vmem:[#allocation30_spill] sm:$0xff] %v7984_v38  ;;  %v1330_v58 = vor.u32 %v1328_v10, %v10707_v21  ;;  %6794 = vmatpush3.bf16.msra.mxu0 %v7128_v1  ;;  %vm7990_vm8 = vcmp.eq.s16.totalorder %v5339_v22, 0  ;;  %v1178_v6 = vsel %vm1142_vm15, 65537, %v10703_v62  ;;  %vm793_vm9 = vcmp.eq.s32.totalorder %v479_v51, 15 }
  0x57   : > { %v10709_v60 = vsel %vm7990_vm8, 4294967295, %v10708_v60  ;;  %6795 = vmatprep.subr.bf16.mxu0 %v7130_v36  ;;  %6771 = vmatprep.mubr.msk.bf16.mxu1 %vm7990_vm8, %v7984_v38  ;;  %v5316_v10 = vcombine.low %v1178_v6, %v7517_v46  ;;  %v1331_v1 = vrot.slane %v10397_v61, 1  ;;  %vm1462_vm13 = vmpackc.low %vm793_vm9, %vm793_vm9  ;;  %v493_v22 = vand.u32 15, %v291_v30 }
  0x58   : > { %10710 = vst [vmem:[#allocation31_spill] sm:$0xff] %v10709_v60  ;;  %v10408_v21 = vshrl.u32 %v7913_v49, 16  ;;  %v1498_v51 = vsel %vm1462_vm13, 65537, %v10703_v62  ;;  %v278_v15 = vadd.s32 112, %v7411_v5  ;;  %v10712_v60 = vshrl.u32 %v7652_v34, 16  ;;  %vm10716_vm9 = vmmov %vm10705_vm7 }
  0x59   : > { %vm8015_vm15 = vcmp.eq.s16.totalorder %v5316_v10, 0  ;;  %v10713_v6 = vmov 0  ;;  %v8020_v30 = vsel %vm10716_vm9, %v1330_v58, %v1331_v1  ;;  %v5340_v61 = vcombine.low %v7517_v46, %v1498_v51  ;;  %v7134_v58 = vld [vmem:[%s10357_s1 + $0x1f8] sm:$0xff]  }
  0x5a   : > { %v8013_v38 = vrot.slane %v10712_v60, 7  ;;  %v10714_v6 = vsel %vm8015_vm15, 4294967295, %v10713_v6  ;;  %10717 = vst [vmem:[#allocation34_spill] sm:$0xff] %v8020_v30  ;;  %vm795_vm7 = vcmp.eq.s32.totalorder %v493_v22, 15  ;;  %6796 = vmatpush3.bf16.msra.mxu0 %v7130_v36  ;;  %v1333_v43 = vor.u32 %v1331_v1, %v10408_v21 }
  0x5b   : > { %10715 = vst [vmem:[#allocation33_spill] sm:$0xff] %v10714_v6  ;;  %v1334_v32 = vrot.slane %v10718_v57, 1  ;;  %vm1464_vm13 = vmpackc.low %vm795_vm7, %vm795_vm7  ;;  %v402_v60 = vand.u32 15, %v278_v15  ;;  %v10719_v10 = vshll.u32 %v7652_v34, 16  ;;  %6797 = vmatprep.subr.bf16.mxu0 %v7132_v4  ;;  %vm8033_vm9 = vcmp.eq.s16.totalorder %v5340_v61, 0  ;;  %v8040_v57 = vld [vmem:[%s7495_s13 + $0x78] sm:$0xff]  }
  0x5c   : > { %v10720_v22 = vmov 0  ;;  %v1500_v36 = vsel %vm1464_vm13, 65537, %v10703_v62  ;;  %v293_v1 = vadd.s32 232, %v7411_v5  ;;  %10723 = vst [vmem:[#allocation36_spill] sm:$0xff] %v8040_v57  ;;  %vm10724_vm7 = vsmask.f32 7424 }
  0x5d   : > { %v962_v27 = vor.u32 %v10719_v10, %v8013_v38  ;;  %v10721_v22 = vsel %vm8033_vm9, 4294967295, %v10720_v22  ;;  %5381 = vmatmul.mubr.msk.bf16.gmra.mxu0 %vm8015_vm15, %v7977_v11  ;;  %6772 = vmatmul.mubr.msk.bf16.gmra.mxu1 %vm8033_vm9, %v8020_v30  ;;  %v8049_v15 = vsel %vm10724_vm7, %v1333_v43, %v1334_v32  ;;  %v5341_v61 = vcombine.low %v7517_v46, %v1500_v36 }
  0x5e   : > { %10722 = vst [vmem:[#allocation35_spill] sm:$0xff] %v10721_v22  ;;  %10725 = vst [vmem:[#allocation37_spill] sm:$0xff] %v8049_v15  ;;  %vm746_vm8 = vcmp.eq.s32.totalorder %v402_v60, 0  ;;  %vm10726_vm13 = vsmask.f32 256  ;;  %1919 = vmatprep.mubr.bf16.mxu0 %v7652_v34  ;;  %v507_v10 = vand.u32 15, %v293_v1  ;;  %6798 = vmatpush3.bf16.msra.mxu0 %v7132_v4 }
  0x5f   : > { %v8054_v51 = vsel %vm10726_vm13, %v7946_v2, %v962_v27  ;;  %vm1144_vm10 = vmpackc.low %vm746_vm8, %vm746_vm8  ;;  %v10420_v21 = vshrl.u32 %v7953_v54, 16  ;;  %v10419_v9 = vshll.u32 %v8006_v26, 16  ;;  %v295_v22 = vadd.s32 248, %v7411_v5  ;;  %6191 = vmatprep.subr.bf16.mxu0 %v7134_v58 }
  0x60   : > { %vm8060_vm7 = vcmp.eq.s16.totalorder %v5341_v61, 0  ;;  %v10727_v43 = vmov 0  ;;  %v1180_v60 = vsel %vm1144_vm10, 65537, %v10703_v62  ;;  %vm797_vm8 = vcmp.eq.s32.totalorder %v507_v10, 15 }
  0x61   : > { %v10728_v43 = vsel %vm8060_vm7, 4294967295, %v10727_v43  ;;  %6775 = vmatprep.mubr.msk.bf16.mxu1 %vm8060_vm7, %v8049_v15  ;;  %v5317_v2 = vcombine.low %v1180_v60, %v7517_v46  ;;  %v1336_v36 = vor.u32 %v1334_v32, %v10420_v21  ;;  %v1337_v4 = vrot.slane %v10419_v9, 1  ;;  %vm1466_vm13 = vmpackc.low %vm797_vm8, %vm797_vm8 }
  0x62   : > { %10729 = vst [vmem:[#allocation38_spill] sm:$0xff] %v10728_v43  ;;  %v521_v1 = vand.u32 15, %v295_v22  ;;  %v10427_v61 = vshll.u32 %v8040_v57, 16  ;;  %v280_v27 = vadd.s32 128, %v7411_v5  ;;  %v10730_v58 = vshrl.u32 %v7717_v8, 16 }
  0x63   : > { %vm8080_vm10 = vcmp.eq.s16.totalorder %v5317_v2, 0  ;;  %v10731_v43 = vmov 0  ;;  %vm10734_vm7 = vsmask.f32 7424  ;;  %v1502_v32 = vsel %vm1466_vm13, 65537, %v10703_v62 }
  0x64   : > { %v8078_v30 = vrot.slane %v10730_v58, 7  ;;  %v10732_v43 = vsel %vm8080_vm10, 4294967295, %v10731_v43  ;;  %v8085_v10 = vsel %vm10734_vm7, %v1336_v36, %v1337_v4  ;;  %v10736_v60 = vshrl.u32 %v8006_v26, 16 }
  0x65   : > { %10733 = vst [vmem:[#allocation39_spill] sm:$0xff] %v10732_v43  ;;  %10735 = vst [vmem:[#allocation40_spill] sm:$0xff] %v8085_v10  ;;  %v5342_v9 = vcombine.low %v7517_v46, %v1502_v32  ;;  %vm799_vm8 = vcmp.eq.s32.totalorder %v521_v1, 15  ;;  %v1340_v21 = vrot.slane %v10427_v61, 1  ;;  %v416_v58 = vand.u32 15, %v280_v27  ;;  %5383 = vmatmul.mubr.msk.bf16.gmra.mxu0 %vm8080_vm10, %v8054_v51 }
  0x66   : > { %v1339_v22 = vor.u32 %v1337_v4, %v10736_v60  ;;  %vm1468_vm9 = vmpackc.low %vm799_vm8, %vm799_vm8  ;;  %v297_v2 = vadd.s32 264, %v7411_v5  ;;  %v10438_v15 = vshrl.u32 %v8040_v57, 16  ;;  %v10737_v36 = vmov 0  ;;  %1927 = vmatprep.mubr.bf16.mxu0 %v7717_v8 }
  0x67   : > { %vm8098_vm7 = vcmp.eq.s16.totalorder %v5342_v9, 0  ;;  %v1504_v4 = vsel %vm1468_vm9, 65537, %v10703_v62  ;;  %vm748_vm13 = vcmp.eq.s32.totalorder %v416_v58, 0  ;;  %v10740_v1 = vshll.u32 %v7717_v8, 16 }
  0x68   : > { %v10738_v36 = vsel %vm8098_vm7, 4294967295, %v10737_v36  ;;  %6776 = vmatmul.mubr.msk.bf16.gmra.mxu1 %vm8098_vm7, %v8085_v10  ;;  %vm10741_vm8 = vsmask.f32 7424  ;;  %v5343_v9 = vcombine.low %v7517_v46, %v1504_v4  ;;  %vm1146_vm12 = vmpackc.low %vm748_vm13, %vm748_vm13  ;;  %v535_v60 = vand.u32 15, %v297_v2 }
  0x69   : > { %10739 = vst [vmem:[#allocation41_spill] sm:$0xff] %v10738_v36  ;;  %v970_v27 = vor.u32 %v10740_v1, %v8078_v30  ;;  %v8111_v32 = vsel %vm10741_vm8, %v1339_v22, %v1340_v21  ;;  %v8115_v61 = vrot.slane %v10703_v62, 1  ;;  %v1182_v58 = vsel %vm1146_vm12, 65537, %v10703_v62 }
  0x6a   : > { %10742 = vst [vmem:[#allocation42_spill] sm:$0xff] %v8111_v32  ;;  %v1342_v1 = vor.u32 %v1340_v21, %v10438_v15  ;;  %v282_v36 = vadd.s32 144, %v7411_v5  ;;  %v304_v10 = vand.u32 15, %v7411_v5  ;;  %vm8122_vm9 = vcmp.eq.s16.totalorder %v5343_v9, 0 }
  0x6b   : > { %10743 = vst [vmem:[#allocation43_spill] sm:$0xff] %v8115_v61  ;;  %v10745_v52 = vsel %vm8122_vm9, 4294967295, %v10744_v52  ;;  %v5318_v22 = vcombine.low %v1182_v58, %v7517_v46  ;;  %vm801_vm13 = vcmp.eq.s32.totalorder %v535_v60, 15  ;;  %6779 = vmatprep.mubr.msk.bf16.mxu1 %vm8122_vm9, %v8111_v32  ;;  %vm10747_vm12 = vsmask.f32 256 }
  0x6c   : > { %10746 = vst [vmem:[#allocation44_spill] sm:$0xff] %v10745_v52  ;;  %v8132_v2 = vsel %vm10747_vm12, %v8013_v38, %v970_v27  ;;  %vm1470_vm8 = vmpackc.low %vm801_vm13, %vm801_vm13  ;;  %v430_v21 = vand.u32 15, %v282_v36  ;;  %vm732_vm7 = vcmp.eq.s32.totalorder %v304_v10, 0  ;;  %v10748_v4 = vmov 0 }
  0x6d   : > { %vm8134_vm5 = vcmp.eq.s16.totalorder %v5318_v22, 0  ;;  %v1506_v9 = vsel %vm1470_vm8, 65537, %v10703_v62  ;;  %v10751_v58 = vshrl.u32 %v7748_v28, 16  ;;  %v284_v15 = vadd.s32 160, %v7411_v5  ;;  %vm1130_vm12 = vmpackc.low %vm732_vm7, %vm732_vm7 }
  0x6e   : > { %v10749_v4 = vsel %vm8134_vm5, 4294967295, %v10748_v4  ;;  %vm10752_vm9 = vsmask.f32 7424  ;;  %v5344_v38 = vcombine.low %v7517_v46, %v1506_v9  ;;  %vm750_vm13 = vcmp.eq.s32.totalorder %v430_v21, 0  ;;  %5385 = vmatmul.mubr.msk.bf16.gmra.mxu0 %vm8134_vm5, %v8132_v2 }
  0x6f   : > { %10750 = vst [vmem:[#allocation45_spill] sm:$0xff] %v10749_v4  ;;  %v975_v60 = vrot.slane %v10751_v58, 7  ;;  %v8144_v52 = vsel %vm10752_vm9, %v1342_v1, %v8115_v61  ;;  %vm1148_vm3 = vmpackc.low %vm750_vm13, %vm750_vm13  ;;  %v1166_v10 = vsel %vm1130_vm12, 65537, %v10703_v62  ;;  %v444_v36 = vand.u32 15, %v284_v15  ;;  %1935 = vmatprep.mubr.bf16.mxu0 %v7748_v28 }
  0x70   : > { %10753 = vst [vmem:[#allocation46_spill] sm:$0xff] %v8144_v52  ;;  %v286_v27 = vadd.s32 176, %v7411_v5  ;;  %vm8152_vm8 = vcmp.eq.s16.totalorder %v5344_v38, 0  ;;  %v10754_v22 = vmov 0  ;;  %v1184_v1 = vsel %vm1148_vm3, 65537, %v10703_v62 }
  0x71   : > { %v10755_v22 = vsel %vm8152_vm8, 4294967295, %v10754_v22  ;;  %vm1055_vm9 = vcmask 1040384   ;;  %6780 = vmatmul.mubr.msk.bf16.gmra.mxu1 %vm8152_vm8, %v8144_v52  ;;  %v10757_v15 = vshll.u32 %v7748_v28, 16  ;;  %v5319_v9 = vcombine.low %v1184_v1, %v7517_v46 }
  0x72   : > { %10756 = vst [vmem:[#allocation47_spill] sm:$0xff] %v10755_v22  ;;  %vm752_vm7 = vcmp.eq.s32.totalorder %v444_v36, 0  ;;  %v458_v58 = vand.u32 15, %v286_v27  ;;  %2337 = vmatprep.mubr.bf16.mxu1 %v10703_v62  ;;  %v5310_v38 = vcombine.low %v1166_v10, %v7517_v46  ;;  %v288_v32 = vadd.s32 192, %v7411_v5 }
  0x73   : > { %v978_v21 = vor.u32 %v10757_v15, %v975_v60  ;;  %vm1150_vm13 = vmpackc.low %vm752_vm7, %vm752_vm7  ;;  %vm10758_vm3 = vsmask.f32 256  ;;  %v10759_v22 = vshrl.u32 %v7808_v16, 16  ;;  %v290_v1 = vadd.s32 208, %v7411_v5 }
  0x74   : > { %vm1056_vm12 = vmand %vm1055_vm9, %vm10758_vm3  ;;  %v1186_v40 = vsel %vm1150_vm13, 65537, %v10703_v62  ;;  %v472_v15 = vand.u32 15, %v288_v32  ;;  %vm8178_vm1 = vcmp.eq.s16.totalorder %v5319_v9, 0  ;;  %v10761_v10 = vmov 0  ;;  %v7141_v9 = vld [vmem:[%s10357_s1 + $0x210] sm:$0xff]  }
  0x75   : > { %v8170_v52 = vrot.slane %v10759_v22, 7  ;;  %vm10760_vm8 = vmmov %vm10758_vm3  ;;  %v10762_v10 = vsel %vm8178_vm1, 4294967295, %v10761_v10  ;;  %vm8182_vm7 = vcmp.eq.s32.totalorder %v458_v58, 0  ;;  %v292_v22 = vadd.s32 224, %v7411_v5 }
  0x76   : > { %v8176_v36 = vsel %vm10760_vm8, %v8078_v30, %v978_v21  ;;  %10763 = vst [vmem:[#allocation48_spill] sm:$0xff] %v10762_v10  ;;  %v8188_v17 = vsel %vm1056_vm12, 0, %v7455_v23  ;;  %vm8190_vm9 = vcmp.eq.s16.totalorder %v5310_v38, 0  ;;  %v10767_v32 = vmov 0  ;;  %v7129_v21 = vld [vmem:[%s10357_s1 + $0x230] sm:$0xff]   ;;  %vm1152_vm8 = vmpackc.low %vm8182_vm7, %vm8182_vm7 }
  0x77   : > { %10766 = vst [vmem:[#allocation49_spill] sm:$0xff] %v8188_v17  ;;  %v10768_v32 = vsel %vm8190_vm9, 4294967295, %v10767_v32  ;;  %v5320_v30 = vcombine.low %v1186_v40, %v7517_v46  ;;  %5387 = vmatmul.mubr.msk.bf16.gmra.mxu0 %vm8178_vm1, %v8176_v36  ;;  %vm8204_vm13 = vcmp.eq.s32.totalorder %v472_v15, 0  ;;  %v486_v58 = vand.u32 15, %v290_v1 }
  0x78   : > { %10769 = vst [vmem:[#allocation50_spill] sm:$0xff] %v10768_v32  ;;  %v500_v38 = vand.u32 15, %v292_v22  ;;  %v294_v40 = vadd.s32 240, %v7411_v5  ;;  %1943 = vmatprep.mubr.bf16.mxu0 %v7808_v16  ;;  %v10772_v23 = vshll.u32 %v7808_v16, 16  ;;  %v1188_v1 = vsel %vm1152_vm8, 65537, %v10703_v62  ;;  %vm1154_vm3 = vmpackc.low %vm8204_vm13, %vm8204_vm13  ;;  %v7131_v22 = vld [vmem:[%s10357_s1 + $0x228] sm:$0xff]  }
  0x79   : > { %5459 = vmatmul.mubr.msk.bf16.vlgmr.msra.gmra.mxu1 %vm8190_vm9, %v8188_v17  ;;  %v296_v32 = vadd.s32 256, %v7411_v5  ;;  %vm8226_vm12 = vcmp.eq.s16.totalorder %v5320_v30, 0  ;;  %vm8232_vm7 = vcmp.eq.s32.totalorder %v486_v58, 0  ;;  %vm10781_vm13 = vsmask.f32 256  ;;  %v7133_v30 = vld [vmem:[%s10357_s1 + $0x220] sm:$0xff]  }
  0x7a   : > { %v986_v27 = vor.u32 %v10772_v23, %v8170_v52  ;;  %6832 = vmatpush3.bf16.msra.mxu1 %v7929_v35  ;;  %2345 = vmatprep.mubr.bf16.mxu1 %v7511_v44  ;;  %v514_v15 = vand.u32 15, %v294_v40  ;;  %v10773_v23 = vmov 0  ;;  %v10776_v44 = vshrl.u32 %v7822_v31, 16 }
  0x7b   : > { %6833 = vmatprep.subr.bf16.mxu1 %v7129_v21  ;;  %v10774_v23 = vsel %vm8226_vm12, 4294967295, %v10773_v23  ;;  %vm8236_vm8 = vcmp.eq.s32.totalorder %v500_v38, 0  ;;  %v528_v59 = vand.u32 15, %v296_v32  ;;  %v265_v16 = vadd.s32 8, %v7411_v5 }
  0x7c   : > { %10775 = vst [vmem:[#allocation51_spill] sm:$0xff] %v10774_v23  ;;  %v991_v35 = vrot.slane %v10776_v44, 7  ;;  %v8241_v17 = vsel %vm10781_vm13, %v975_v60, %v986_v27  ;;  %v5321_v44 = vcombine.low %v1188_v1, %v7517_v46  ;;  %v1190_v58 = vsel %vm1154_vm3, 65537, %v10703_v62  ;;  %vm1158_vm3 = vmpackc.low %vm8236_vm8, %vm8236_vm8 }
  0x7d   : > { %vm8249_vm9 = vcmp.eq.s32.totalorder %v514_v15, 0  ;;  %vm8256_vm1 = vcmp.eq.s32.totalorder %v528_v59, 0  ;;  %v311_v32 = vand.u32 15, %v265_v16  ;;  %v10787_v15 = vshrl.u32 %v7869_v55, 16 }
  0x7e   : > { %6834 = vmatpush3.bf16.msra.mxu1 %v7129_v21  ;;  %v10786_v21 = vshll.u32 %v7822_v31, 16  ;;  %v5322_v59 = vcombine.low %v1190_v58, %v7517_v46  ;;  %v10788_v16 = vshrl.u32 %v7913_v49, 16  ;;  %vm1160_vm13 = vmpackc.low %vm8249_vm9, %vm8249_vm9  ;;  %v10792_v58 = vmov 0 }
  0x7f   : > { %6835 = vmatprep.subr.bf16.mxu1 %v7131_v22  ;;  %5389 = vmatmul.mubr.msk.bf16.gmra.mxu0 %vm8226_vm12, %v8241_v17  ;;  %v999_v1 = vrot.slane %v10787_v15, 7  ;;  %vm8284_vm8 = vcmp.eq.s32.totalorder %v311_v32, 15  ;;  %v10795_v15 = vshrl.u32 %v8006_v26, 16  ;;  %vm1162_vm9 = vmpackc.low %vm8256_vm1, %vm8256_vm1  ;;  %v10797_v60 = vshrl.u32 %v8040_v57, 16 }
  0x80   : > { %v994_v27 = vor.u32 %v10786_v21, %v991_v35  ;;  %1951 = vmatprep.mubr.bf16.mxu0 %v7822_v31  ;;  %v1007_v5 = vrot.slane %v10788_v16, 7  ;;  %v10789_v21 = vshrl.u32 %v7953_v54, 16  ;;  %vm10796_vm12 = vmpackc.low %vm8232_vm7, %vm8232_vm7  ;;  %vm10799_vm1 = vsmask.f32 256 }
  0x81   : > { %5461 = vmatmul.mubr.msk.bf16.gmra.mxu1 %vm7581_vm0, %v7609_v19  ;;  %v7136_v19 = vld [vmem:[%s10357_s1 + $0x218] sm:$0xff]   ;;  %vm8292_vm0 = vcmp.eq.s16.totalorder %v5321_v44, 0  ;;  %v8298_v38 = vrot.slane %v10795_v15, 7  ;;  %v1192_v32 = vsel %vm10796_vm12, 65537, %v10703_v62  ;;  %v1194_v44 = vsel %vm1158_vm3, 65537, %v10703_v62  ;;  %vm1438_vm5 = vmpackc.low %vm8284_vm8, %vm8284_vm8 }
  0x82   : > { %v8279_v23 = vrot.slane %v10789_v21, 7  ;;  %2353 = vmatprep.mubr.bf16.mxu1 %v7514_v45  ;;  %v10793_v58 = vsel %vm8292_vm0, 4294967295, %v10792_v58  ;;  %6836 = vmatpush3.bf16.msra.mxu1 %v7131_v22  ;;  %v1196_v22 = vsel %vm1160_vm13, 65537, %v10703_v62  ;;  %v8316_v16 = vrot.slane %v10797_v60, 7  ;;  %vm10811_vm7 = vmmov %vm10799_vm1 }
  0x83   : > { %10794 = vst [vmem:[#allocation52_spill] sm:$0xff] %v10793_v58  ;;  %6837 = vmatprep.subr.bf16.mxu1 %v7133_v30  ;;  %v8320_v21 = vsel %vm10799_vm1, %v8170_v52, %v994_v27  ;;  %vm8322_vm14 = vcmp.eq.s16.totalorder %v5322_v59, 0  ;;  %v10801_v40 = vmov 0  ;;  %v1198_v15 = vsel %vm1162_vm9, 65537, %v10703_v62  ;;  %v7146_v59 = vld [vmem:[%s10357_s1 + $0x208] sm:$0xff]   ;;  %vm10817_vm3 = vmmov %vm10799_vm1  ;;  %v10860_v58 = vld [vmem:[#allocation29_spill] sm:$0xff] }
  0x84   : > { %10798 = vst [vmem:[#allocation53_spill] sm:$0xff] %v8316_v16  ;;  %10800 = vst [vmem:[#allocation54_spill] sm:$0xff] %v8320_v21  ;;  %v10802_v40 = vsel %vm8322_vm14, 4294967295, %v10801_v40  ;;  %v1474_v12 = vsel %vm1438_vm5, 65537, %v10703_v62  ;;  %v10804_v52 = vshll.u32 %v7869_v55, 16  ;;  %v10807_v62 = vmov 0 }
  0x85   : > { %10803 = vst [vmem:[#allocation55_spill] sm:$0xff] %v10802_v40  ;;  %vm10805_vm5 = vmmov %vm10799_vm1  ;;  %v10868_v40 = vld [vmem:[#allocation37_spill] sm:$0xff] }
  0x86   : > { %6838 = vmatpush3.bf16.msra.mxu1 %v7133_v30  ;;  %v1002_v27 = vor.u32 %v10804_v52, %v999_v1  ;;  %v5323_v30 = vcombine.low %v1192_v32, %v7517_v46  ;;  %v7151_v52 = vld [vmem:[%s10357_s1 + $0x200] sm:$0xff]   ;;  %v5324_v32 = vcombine.low %v1194_v44, %v7517_v46  ;;  %v10816_v44 = vshll.u32 %v7953_v54, 16  ;;  %vm10823_vm9 = vmmov %vm10799_vm1 }
  0x87   : > { %6839 = vmatprep.subr.bf16.mxu1 %v7136_v19  ;;  %5391 = vmatmul.mubr.msk.bf16.gmra.mxu0 %vm8292_vm0, %v8320_v21 }
  0x88   : > { %1959 = vmatprep.mubr.bf16.mxu0 %v7869_v55  ;;  %v8346_v60 = vsel %vm10805_vm5, %v991_v35, %v1002_v27  ;;  %vm8348_vm12 = vcmp.eq.s16.totalorder %v5323_v30, 0  ;;  %v10810_v35 = vshll.u32 %v7913_v49, 16  ;;  %vm8369_vm13 = vcmp.eq.s16.totalorder %v5324_v32, 0 }
  0x89   : > { %5463 = vmatmul.mubr.msk.bf16.gmra.mxu1 %vm7672_vm4, %v7670_v41  ;;  %10806 = vst [vmem:[#allocation56_spill] sm:$0xff] %v8346_v60  ;;  %v10808_v62 = vsel %vm8348_vm12, 4294967295, %v10807_v62  ;;  %v10813_v27 = vmov 0  ;;  %v5325_v30 = vcombine.low %v1196_v22, %v7517_v46  ;;  %v10822_v22 = vshll.u32 %v8006_v26, 16 }
  0x8a   : > { %2361 = vmatprep.mubr.bf16.mxu1 %v7523_v47  ;;  %6840 = vmatpush3.bf16.msra.mxu1 %v7136_v19  ;;  %10809 = vst [vmem:[#allocation57_spill] sm:$0xff] %v10808_v62  ;;  %v1010_v19 = vor.u32 %v10810_v35, %v1007_v5  ;;  %v10814_v27 = vsel %vm8369_vm13, 4294967295, %v10813_v27  ;;  %v10874_v62 = vld [vmem:[#allocation42_spill] sm:$0xff] }
  0x8b   : > { %6841 = vmatprep.subr.bf16.mxu1 %v7141_v9  ;;  %10815 = vst [vmem:[#allocation59_spill] sm:$0xff] %v10814_v27  ;;  %vm8388_vm8 = vcmp.eq.s16.totalorder %v5325_v30, 0  ;;  %v1026_v35 = vor.u32 %v10822_v22, %v8298_v38  ;;  %v7138_v22 = vld [vmem:[%s10357_s1 + $0x1b0] sm:$0xff]  }
  0x8d   : > { %v8407_v32 = vsel %vm10823_vm9, %v8279_v23, %v1026_v35  ;;  %vm10835_vm9 = vnez %v10647_v3  ;;  %v7139_v35 = vld [vmem:[%s10357_s1 + $0x1e8] sm:$0xff]   ;;  %v7152_v3 = vld [vmem:[%s10357_s1 + $0x1c0] sm:$0xff]  }
  0x8e   : > { %6842 = vmatpush3.bf16.msra.mxu1 %v7141_v9  ;;  %v8367_v9 = vsel %vm10811_vm7, %v999_v1, %v1010_v19  ;;  %v1018_v1 = vor.u32 %v10816_v44, %v8279_v23  ;;  %v5328_v19 = vcombine.low %v7517_v46, %v1474_v12  ;;  %10824 = vst [vmem:[#allocation62_spill] sm:$0xff] %v8407_v32  ;;  %v10825_v44 = vmov 0  ;;  %vm10832_vm7 = vmmov %vm10817_vm3 }
  0x8f   : > { %6843 = vmatprep.subr.bf16.mxu1 %v7146_v59  ;;  %5393 = vmatmul.mubr.msk.bf16.gmra.mxu0 %vm8322_vm14, %v8346_v60  ;;  %10812 = vst [vmem:[#allocation58_spill] sm:$0xff] %v8367_v9  ;;  %v10831_v12 = vshll.u32 %v8040_v57, 16 }
  0x90   : > { %1967 = vmatprep.mubr.bf16.mxu0 %v7913_v49  ;;  %vm8413_vm5 = vcmp.eq.s16.totalorder %v5328_v19, 0  ;;  %v10841_v19 = vld [vmem:[#allocation16_spill] sm:$0xff] }
  0x91   : > { %5465 = vmatmul.mubr.msk.bf16.gmra.mxu1 %vm7760_vm2, %v7744_v24  ;;  %v1034_v23 = vor.u32 %v10831_v12, %v8316_v16  ;;  %v7143_v12 = vld [vmem:[%s10357_s1 + $0x1a0] sm:$0xff]  }
  0x92   : > { %2369 = vmatprep.mubr.bf16.mxu1 %v7574_v7  ;;  %6844 = vmatpush3.bf16.msra.mxu1 %v7146_v59  ;;  %v8386_v59 = vsel %vm10817_vm3, %v1007_v5, %v1018_v1  ;;  %v5326_v5 = vcombine.low %v1198_v15, %v7517_v46  ;;  %v10828_v1 = vmov 0  ;;  %vm10834_vm3 = vsmask.f32 7424  ;;  %v10851_v16 = vld [vmem:[#allocation17_spill] sm:$0xff] }
  0x93   : > { %6845 = vmatprep.subr.bf16.mxu1 %v7151_v52  ;;  %10818 = vst [vmem:[#allocation60_spill] sm:$0xff] %v8386_v59  ;;  %v10829_v1 = vsel %vm8413_vm5, 4294967295, %v10828_v1  ;;  %v8430_v15 = vsel %vm10832_vm7, %v8298_v38, %v1034_v23  ;;  %v1296_v30 = vsel %vm10834_vm3, %v8115_v61, %v7557_v63  ;;  %v7135_v38 = vld [vmem:[%s10357_s1 + $0x1b8] sm:$0xff]   ;;  %v7137_v63 = vld [vmem:[%s10357_s1 + $0x1f0] sm:$0xff]   ;;  %vm10836_vm7 = vnez %v10749_v4 }
  0x94   : > { %vm8409_vm1 = vcmp.eq.s16.totalorder %v5326_v5, 0  ;;  %10830 = vst [vmem:[#allocation64_spill] sm:$0xff] %v10829_v1  ;;  %10833 = vst [vmem:[#allocation65_spill] sm:$0xff] %v8430_v15  ;;  %vm10837_vm3 = vnez %v10653_v14  ;;  %v7142_v5 = vld [vmem:[%s10357_s1 + $0x1e0] sm:$0xff]   ;;  %v7144_v23 = vld [vmem:[%s10357_s1 + $0x1d8] sm:$0xff]  }
  0x95   : > { %v10826_v44 = vsel %vm8409_vm1, 4294967295, %v10825_v44  ;;  %v7150_v1 = vld [vmem:[%s10357_s1 + $0x188] sm:$0xff]  }
  0x96   : > { %6846 = vmatpush3.bf16.msra.mxu1 %v7151_v52  ;;  %v10819_v52 = vmov 0  ;;  %10827 = vst [vmem:[#allocation63_spill] sm:$0xff] %v10826_v44  ;;  %v10854_v44 = vld [vmem:[#allocation21_spill] sm:$0xff] }
  0x97   : > { %5395 = vmatmul.mubr.msk.bf16.gmra.mxu0 %vm8348_vm12, %v8367_v9  ;;  %v10820_v52 = vsel %vm8388_vm8, 4294967295, %v10819_v52 }
  0x98   : > { %1975 = vmatprep.mubr.bf16.mxu0 %v7953_v54  ;;  %10821 = vst [vmem:[#allocation61_spill] sm:$0xff] %v10820_v52 }
  0x99   : > { %5467 = vmatmul.mubr.msk.bf16.gmra.mxu1 %vm7844_vm11, %v7818_v29 }
  0x9a   : > { %2377 = vmatprep.mubr.bf16.mxu1 %v7586_v13 }
  0x9f   : > { %5397 = vmatmul.mubr.msk.bf16.gmra.mxu0 %vm8369_vm13, %v8386_v59 }
  0xa0   : > { %1983 = vmatprep.mubr.bf16.mxu0 %v8006_v26 }
  0xa1   : > { %5469 = vmatmul.mubr.msk.bf16.gmra.mxu1 %vm7936_vm6, %v7909_v50 }
  0xa2   : > { %2385 = vmatprep.mubr.bf16.mxu1 %v7620_v25 }
  0xa7   : > { %5399 = vmatmul.mubr.msk.bf16.gmra.mxu0 %vm8388_vm8, %v8407_v32 }
  0xa8   : > { %1991 = vmatprep.mubr.bf16.mxu0 %v8040_v57  ;;  %v10859_v57 = vld [vmem:[#allocation27_spill] sm:$0xff] }
  0xa9   : > { %5471 = vmatmul.mubr.msk.bf16.gmra.mxu1 %vm8015_vm15, %v7977_v11  ;;  %vm10855_vm15 = vnez %v10854_v44 }
  0xaa   : > { %2393 = vmatprep.mubr.bf16.mxu1 %v7652_v34 }
  0xaf   : > { %5401 = vmatmul.mubr.msk.bf16.gmra.mxu0 %vm8409_vm1, %v8430_v15  ;;  %vm10840_vm1 = vnez %v10661_v53  ;;  %v10857_v15 = vld [vmem:[#allocation24_spill] sm:$0xff] }
  0xb0   : > { %6799 = vmatprep.mubr.msk.bf16.mxu0 %vm8413_vm5, %v1296_v30  ;;  %vm10838_vm5 = vnez %v10656_v37  ;;  %v7145_v30 = vld [vmem:[%s10357_s1 + $0x198] sm:$0xff]   ;;  %vm10858_vm6 = vnez %v10857_v15 }
  0xb1   : > { %5473 = vmatmul.mubr.msk.bf16.gmra.mxu1 %vm8080_vm10, %v8054_v51 }
  0xb2   : > { %2401 = vmatprep.mubr.bf16.mxu1 %v7717_v8 }
  0xb7   : > { %6800 = vmatmul.mubr.msk.bf16.vlgmr.msra.gmra.mxu0 %vm10835_vm9, %v7605_v18  ;;  %v7140_v18 = vld [vmem:[%s10357_s1 + $0x1a8] sm:$0xff]   ;;  %vm10839_vm9 = vnez %v10762_v10 }
  0xb8   : > { %6192 = vmatpush3.bf16.msra.mxu0 %v7135_v38  ;;  %6803 = vmatprep.mubr.msk.bf16.mxu0 %vm10837_vm3, %v7612_v20  ;;  %v7147_v38 = vld [vmem:[%s10357_s1 + $0x1d0] sm:$0xff]  }
  0xb9   : > { %5475 = vmatmul.mubr.msk.bf16.gmra.mxu1 %vm10836_vm7, %v8132_v2  ;;  %6193 = vmatprep.subr.bf16.mxu0 %v7137_v63  ;;  %v10842_v63 = vld [vmem:[#allocation11_spill] sm:$0xff] }
  0xba   : > { %2409 = vmatprep.mubr.bf16.mxu1 %v7748_v28 }
  0xbc   : > { %6194 = vmatpush3.bf16.msra.mxu0 %v7138_v22  ;;  %v10843_v22 = vld [vmem:[#allocation12_spill] sm:$0xff] }
  0xbd   : > { %6195 = vmatprep.subr.bf16.mxu0 %v7139_v35  ;;  %v10845_v35 = vld [vmem:[#allocation51_spill] sm:$0xff] }
  0xbe   : > { %vm10846_vm7 = vnez %v10845_v35 }
  0xbf   : > { %6804 = vmatmul.mubr.msk.bf16.gmra.mxu0 %vm10838_vm5, %v7678_v48 }
  0xc0   : > { %6807 = vmatprep.mubr.msk.bf16.mxu0 %vm10840_vm1, %v7695_v56  ;;  %6196 = vmatpush3.bf16.msra.mxu0 %v7140_v18  ;;  %v10847_v18 = vld [vmem:[#allocation13_spill] sm:$0xff] }
  0xc1   : > { %5477 = vmatmul.mubr.msk.bf16.gmra.mxu1 %vm10839_vm9, %v8176_v36  ;;  %6197 = vmatprep.subr.bf16.mxu0 %v7142_v5  ;;  %vm10844_vm9 = vnez %v10843_v22  ;;  %v10848_v5 = vld [vmem:[#allocation14_spill] sm:$0xff] }
  0xc2   : > { %2417 = vmatprep.mubr.bf16.mxu1 %v10841_v19  ;;  %vm10849_vm10 = vnez %v10848_v5 }
  0xc4   : > { %6198 = vmatpush3.bf16.msra.mxu0 %v7143_v12  ;;  %v7148_v12 = vld [vmem:[%s10357_s1 + $0x190] sm:$0xff]  }
  0xc5   : > { %6199 = vmatprep.subr.bf16.mxu0 %v7144_v23  ;;  %v7149_v23 = vld [vmem:[%s10357_s1 + $0x1c8] sm:$0xff]  }
  0xc7   : > { %6808 = vmatmul.mubr.msk.bf16.gmra.mxu0 %vm10844_vm9, %v10842_v63 }
  0xc8   : > { %6811 = vmatprep.mubr.msk.bf16.mxu0 %vm10849_vm10, %v10847_v18  ;;  %6200 = vmatpush3.bf16.msra.mxu0 %v7145_v30  ;;  %v10850_v30 = vld [vmem:[#allocation15_spill] sm:$0xff] }
  0xc9   : > { %5479 = vmatmul.mubr.msk.bf16.gmra.mxu1 %vm10846_vm7, %v8241_v17  ;;  %6201 = vmatprep.subr.bf16.mxu0 %v7147_v38  ;;  %vm10852_vm7 = vnez %v10851_v16  ;;  %v10853_v38 = vld [vmem:[#allocation20_spill] sm:$0xff] }
  0xca   : > { %2425 = vmatprep.mubr.bf16.mxu1 %v7822_v31 }
  0xcc   : > { %6202 = vmatpush3.bf16.msra.mxu0 %v7148_v12  ;;  %v7153_v12 = vld [vmem:[%s10357_s1 + $0x180] sm:$0xff]  }
  0xcd   : > { %6203 = vmatprep.subr.bf16.mxu0 %v7149_v23  ;;  %v10856_v23 = vld [vmem:[#allocation23_spill] sm:$0xff] }
  0xcf   : > { %6812 = vmatmul.mubr.msk.bf16.gmra.mxu0 %vm10852_vm7, %v10850_v30 }
  0xd0   : > { %6815 = vmatprep.mubr.msk.bf16.mxu0 %vm10855_vm15, %v10853_v38  ;;  %6204 = vmatpush3.bf16.msra.mxu0 %v7150_v1  ;;  %v10862_v1 = vld [vmem:[#allocation30_spill] sm:$0xff] }
  0xd1   : > { %5481 = vmatmul.mubr.msk.bf16.gmra.mxu1 %vm8292_vm0, %v8320_v21  ;;  %6205 = vmatprep.subr.bf16.mxu0 %v7152_v3  ;;  %vm10861_vm0 = vnez %v10860_v58  ;;  %v10865_v3 = vld [vmem:[#allocation34_spill] sm:$0xff]  ;;  %v10872_v21 = vld [vmem:[#allocation41_spill] sm:$0xff] }
  0xd2   : > { %2433 = vmatprep.mubr.bf16.mxu1 %v7869_v55  ;;  %v10863_v55 = vld [vmem:[#allocation31_spill] sm:$0xff] }
  0xd3   : > { %vm10864_vm15 = vnez %v10863_v55 }
  0xd4   : > { %6206 = vmatpush3.bf16.msra.mxu0 %v7153_v12  ;;  %v10866_v12 = vld [vmem:[#allocation35_spill] sm:$0xff] }
  0xd7   : > { %6816 = vmatmul.mubr.msk.bf16.gmra.mxu0 %vm10858_vm6, %v10856_v23  ;;  %vm10867_vm6 = vnez %v10866_v12 }
  0xd8   : > { %6819 = vmatprep.mubr.msk.bf16.mxu0 %vm10861_vm0, %v10859_v57 }
  0xd9   : > { %5483 = vmatmul.mubr.msk.bf16.gmra.mxu1 %vm8322_vm14, %v8346_v60  ;;  %v10869_v60 = vld [vmem:[#allocation38_spill] sm:$0xff] }
  0xda   : > { %2441 = vmatprep.mubr.bf16.mxu1 %v7913_v49  ;;  %vm10870_vm14 = vnez %v10869_v60  ;;  %v10871_v49 = vld [vmem:[#allocation40_spill] sm:$0xff] }
  0xdf   : > { %6820 = vmatmul.mubr.msk.bf16.gmra.mxu0 %vm10864_vm15, %v10862_v1  ;;  %vm10873_vm15 = vnez %v10872_v21 }
  0xe0   : > { %6823 = vmatprep.mubr.msk.bf16.mxu0 %vm10867_vm6, %v10865_v3 }
  0xe1   : > { %5485 = vmatmul.mubr.msk.bf16.gmra.mxu1 %vm8348_vm12, %v8367_v9  ;;  %v10875_v9 = vld [vmem:[#allocation44_spill] sm:$0xff] }
  0xe2   : > { %2449 = vmatprep.mubr.bf16.mxu1 %v7953_v54  ;;  %vm10876_vm12 = vnez %v10875_v9 }
  0xe7   : > { %6824 = vmatmul.mubr.msk.bf16.gmra.mxu0 %vm10870_vm14, %v10868_v40 }
  0xe8   : > { %6827 = vmatprep.mubr.msk.bf16.mxu0 %vm10873_vm15, %v10871_v49 }
  0xe9   : > { %5487 = vmatmul.mubr.msk.bf16.gmra.mxu1 %vm8369_vm13, %v8386_v59 }
  0xea   : > { %2457 = vmatprep.mubr.bf16.mxu1 %v8006_v26 }
  0xef   : > { %6828 = vmatmul.mubr.msk.bf16.gmra.mxu0 %vm10876_vm12, %v10874_v62 }
  0xf0   : > { %2851 = vmatprep.mubr.bf16.mxu0 %v7514_v45 }
  0xf1   : > { %5489 = vmatmul.mubr.msk.bf16.gmra.mxu1 %vm8388_vm8, %v8407_v32 }
  0xf2   : > { %6847 = vmatprep.mubr.msk.bf16.mxu1 %vm10837_vm3, %v7612_v20 }
  0xf5   : > { %v5935_v27 = vpop.f32.mrf.mxu0  ;;  %v6753_v59 = vpop.f32.mrf.mxu1 }
  0xf7   : > { %5547 = vmatmul.mubr.msk.bf16.vlgmr.msra.gmra.mxu0 %vm7672_vm4, %v7670_v41  ;;  %v5936_v52 = vpop.f32.mrf.mxu0  ;;  %v2034_v32 = vpop.f32.mrf.mxu1 }
  0xf8   : > { %2859 = vmatprep.mubr.bf16.mxu0 %v7523_v47  ;;  %v5937_v45 = vadd.f32 %v5936_v52, %v5935_v27 }
  0xf9   : > { %6848 = vmatmul.mubr.msk.bf16.vlgmr.msra.gmra.mxu1 %vm10838_vm5, %v7678_v48  ;;  %v5938_v20 = vpop.f32.mrf.mxu0  ;;  %v6754_v14 = vpop.f32.mrf.mxu1 }
  0xfa   : > { %6851 = vmatprep.mubr.msk.bf16.mxu1 %vm10840_vm1, %v7695_v56  ;;  %v8579_v26 = vadd.f32 %v5937_v45, %v2034_v32 }
  0xfb   : > { %v5939_v54 = vpop.f32.mrf.mxu0  ;;  %v2037_v42 = vpop.f32.mrf.mxu1 }
  0xfc   : > { %v5940_v41 = vadd.f32 %v5939_v54, %v5938_v20 }
  0xfd   : > { %v5941_v31 = vpop.f32.mrf.mxu0  ;;  %v6757_v35 = vpop.f32.mrf.mxu1 }
  0xfe   : > { %v8584_v47 = vadd.f32 %v5940_v41, %v2037_v42 }
  0xff   : > { %5549 = vmatmul.mubr.msk.bf16.gmra.mxu0 %vm7760_vm2, %v7744_v24  ;;  %v5942_v48 = vpop.f32.mrf.mxu0  ;;  %v2050_v56 = vpop.f32.mrf.mxu1 }
 0x100   : > { %2867 = vmatprep.mubr.bf16.mxu0 %v7574_v7  ;;  %v5943_v54 = vadd.f32 %v5942_v48, %v5941_v31 }
 0x101   : > { %6852 = vmatmul.mubr.msk.bf16.gmra.mxu1 %vm10844_vm9, %v10842_v63  ;;  %v5944_v27 = vpop.f32.mrf.mxu0  ;;  %v6758_v52 = vpop.f32.mrf.mxu1 }
 0x102   : > { %6855 = vmatprep.mubr.msk.bf16.mxu1 %vm10849_vm10, %v10847_v18  ;;  %v8593_v32 = vadd.f32 %v6753_v59, %v5943_v54  ;;  %vm10877_vm10 = vnez %v10854_v44  ;;  %v10900_v44 = vld [vmem:[#allocation54_spill] sm:$0xff] }
 0x103   : > { %v5945_v24 = vpop.f32.mrf.mxu0  ;;  %v2053_v42 = vpop.f32.mrf.mxu1 }
 0x104   : > { %v5946_v45 = vadd.f32 %v5945_v24, %v5944_v27 }
 0x105   : > { %v5947_v20 = vpop.f32.mrf.mxu0  ;;  %v8595_v41 = vpop.f32.mrf.mxu1 }
 0x106   : > { %v8600_v7 = vadd.f32 %v6754_v14, %v5946_v45 }
 0x107   : > { %5551 = vmatmul.mubr.msk.bf16.gmra.mxu0 %vm7844_vm11, %v7818_v29  ;;  %v5948_v31 = vpop.f32.mrf.mxu0  ;;  %v2066_v59 = vpop.f32.mrf.mxu1 }
 0x108   : > { %2875 = vmatprep.mubr.bf16.mxu0 %v7586_v13  ;;  %v5949_v63 = vadd.f32 %v5948_v31, %v5947_v20 }
 0x109   : > { %6856 = vmatmul.mubr.msk.bf16.gmra.mxu1 %vm10852_vm7, %v10850_v30  ;;  %v5950_v18 = vpop.f32.mrf.mxu0  ;;  %v8609_v48 = vpop.f32.mrf.mxu1  ;;  %vm10878_vm7 = vnez %v10695_v39 }
 0x10a   : > { %6859 = vmatprep.mubr.msk.bf16.mxu1 %vm10877_vm10, %v10853_v38  ;;  %v8611_v54 = vadd.f32 %v5949_v63, %v2050_v56  ;;  %vm10879_vm10 = vnez %v10857_v15 }
 0x10b   : > { %v5951_v14 = vpop.f32.mrf.mxu0  ;;  %v2069_v29 = vpop.f32.mrf.mxu1 }
 0x10c   : > { %v5952_v27 = vadd.f32 %v5951_v14, %v5950_v18 }
 0x10d   : > { %v5953_v13 = vpop.f32.mrf.mxu0  ;;  %v8613_v24 = vpop.f32.mrf.mxu1 }
 0x10e   : > { %v8618_v30 = vadd.f32 %v5952_v27, %v2053_v42  ;;  %v7156_v42 = vld [vmem:[%s10358_s2 + $0x178] sm:$0xff]  }
 0x10f   : > { %5553 = vmatmul.mubr.msk.bf16.gmra.mxu0 %vm10878_vm7, %v7909_v50  ;;  %v5954_v38 = vpop.f32.mrf.mxu0  ;;  %v8624_v56 = vpop.f32.mrf.mxu1  ;;  %v7154_v50 = vld [vmem:[%s10358_s2 + $0x138] sm:$0xff]   ;;  %6879 = vmatprep.subr.bf16.mxu0 %v7156_v42 }
 0x110   : > { %2883 = vmatprep.mubr.bf16.mxu0 %v7620_v25  ;;  %v5955_v45 = vadd.f32 %v5954_v38, %v5953_v13  ;;  %v7155_v25 = vld [vmem:[%s10358_s2 + $0xf8] sm:$0xff]   ;;  %6327 = vmatprep.subr.bf16.mxu1 %v7154_v50  ;;  %v10882_v13 = vld [vmem:[#allocation5_spill] sm:$0xff] }
 0x111   : > { %6860 = vmatmul.mubr.msk.bf16.gmra.mxu1 %vm10879_vm10, %v10856_v23  ;;  %v5956_v20 = vpop.f32.mrf.mxu0  ;;  %v8629_v31 = vpop.f32.mrf.mxu1  ;;  %vm10881_vm10 = vnez %v10863_v55  ;;  %v299_v38 = vadd.s32 280, %v10882_v13  ;;  %6880 = vmatpush3.bf16.msra.mxu0 %v7156_v42 }
 0x112   : > { %6863 = vmatprep.mubr.msk.bf16.mxu1 %vm10861_vm0, %v10859_v57  ;;  %v8637_v23 = vadd.f32 %v6757_v35, %v5955_v45  ;;  %6328 = vmatpush3.bf16.msra.mxu1 %v7155_v25  ;;  %vm10880_vm0 = vnez %v10714_v6 }
 0x113   : > { %v5957_v63 = vpop.f32.mrf.mxu0  ;;  %v8642_v57 = vpop.f32.mrf.mxu1 }
 0x114   : > { %v5958_v18 = vadd.f32 %v5957_v63, %v5956_v20  ;;  %v549_v63 = vand.u32 15, %v299_v38 }
 0x115   : > { %v5959_v14 = vpop.f32.mrf.mxu0  ;;  %v8644_v27 = vpop.f32.mrf.mxu1 }
 0x116   : > { %v8649_v35 = vadd.f32 %v6758_v52, %v5958_v18 }
 0x117   : > { %5555 = vmatmul.mubr.msk.bf16.gmra.mxu0 %vm10880_vm0, %v7977_v11  ;;  %v5960_v45 = vpop.f32.mrf.mxu0  ;;  %v8656_v20 = vpop.f32.mrf.mxu1 }
 0x118   : > { %2891 = vmatprep.mubr.bf16.mxu0 %v7652_v34  ;;  %v5961_v50 = vadd.f32 %v5960_v45, %v5959_v14  ;;  %v7157_v34 = vld [vmem:[%s10358_s2 + $0x130] sm:$0xff]  }
 0x119   : > { %6864 = vmatmul.mubr.msk.bf16.gmra.mxu1 %vm10881_vm10, %v10862_v1  ;;  %v5962_v11 = vpop.f32.mrf.mxu0  ;;  %v8661_v52 = vpop.f32.mrf.mxu1  ;;  %v7158_v1 = vld [vmem:[%s10358_s2 + $0xf0] sm:$0xff]   ;;  %6329 = vmatprep.subr.bf16.mxu1 %v7157_v34  ;;  %vm8684_vm10 = vcmp.eq.s32.totalorder %v549_v63, 15 }
 0x11a   : > { %6867 = vmatprep.mubr.msk.bf16.mxu1 %vm10867_vm6, %v10865_v3  ;;  %v8669_v25 = vadd.f32 %v5961_v50, %v2066_v59  ;;  %6330 = vmatpush3.bf16.msra.mxu1 %v7158_v1  ;;  %vm10883_vm6 = vnez %v10732_v43 }
 0x11b   : > { %v5963_v18 = vpop.f32.mrf.mxu0  ;;  %v8671_v55 = vpop.f32.mrf.mxu1 }
 0x11c   : > { %v5964_v3 = vadd.f32 %v5963_v18, %v5962_v11 }
 0x11d   : > { %v5965_v42 = vpop.f32.mrf.mxu0  ;;  %v8673_v14 = vpop.f32.mrf.mxu1 }
 0x11e   : > { %v8678_v45 = vadd.f32 %v5964_v3, %v2069_v29  ;;  %v10886_v3 = vmov 0  }
 0x11f   : > { %5557 = vmatmul.mubr.msk.bf16.gmra.mxu0 %vm10883_vm6, %v8054_v51  ;;  %v5966_v38 = vpop.f32.mrf.mxu0  ;;  %v8688_v50 = vpop.f32.mrf.mxu1  ;;  %vm1472_vm6 = vmpackc.low %vm8684_vm10, %vm8684_vm10  ;;  %vm10887_vm10 = vnez %v10749_v4 }
 0x120   : > { %2899 = vmatprep.mubr.bf16.mxu0 %v7717_v8  ;;  %v5967_v51 = vadd.f32 %v5966_v38, %v5965_v42  ;;  %v7159_v8 = vld [vmem:[%s10358_s2 + $0x128] sm:$0xff]   ;;  %v1508_v42 = vsel %vm1472_vm6, 65537, %v10886_v3 }
 0x121   : > { %6868 = vmatmul.mubr.msk.bf16.gmra.mxu1 %vm10870_vm14, %v10868_v40  ;;  %v5968_v29 = vpop.f32.mrf.mxu0  ;;  %v8693_v11 = vpop.f32.mrf.mxu1  ;;  %v7160_v40 = vld [vmem:[%s10358_s2 + $0xe8] sm:$0xff]   ;;  %6331 = vmatprep.subr.bf16.mxu1 %v7159_v8  ;;  %v10889_v8 = vld [vmem:[#allocation47_spill] sm:$0xff]  ;;  %vm10891_vm14 = vsmask.f32 7424 }
 0x122   : > { %6871 = vmatprep.mubr.msk.bf16.mxu1 %vm10873_vm15, %v10871_v49  ;;  %v8705_v34 = vadd.f32 %v8595_v41, %v5967_v51  ;;  %v7161_v49 = vld [vmem:[%s10358_s2 + $0x170] sm:$0xff]   ;;  %6332 = vmatpush3.bf16.msra.mxu1 %v7160_v40  ;;  %vm1362_vm15 = vcmask 1047552   ;;  %vm10890_vm6 = vnez %v10889_v8  ;;  %v5345_v40 = vcombine.low %v7517_v46, %v1508_v42 }
 0x123   : > { %v5969_v1 = vpop.f32.mrf.mxu0  ;;  %v8710_v63 = vpop.f32.mrf.mxu1  ;;  %6881 = vmatprep.subr.bf16.mxu0 %v7161_v49 }
 0x124   : > { %v5970_v18 = vadd.f32 %v5969_v1, %v5968_v29  ;;  %v10888_v29 = vld [vmem:[#allocation46_spill] sm:$0xff]  ;;  %6882 = vmatpush3.bf16.msra.mxu0 %v7161_v49 }
 0x125   : > { %v5971_v59 = vpop.f32.mrf.mxu0 }
 0x126   : > { %v8717_v41 = vadd.f32 %v8609_v48, %v5970_v18 }
 0x127   : > { %5559 = vmatmul.mubr.msk.bf16.gmra.mxu0 %vm10887_vm10, %v8132_v2  ;;  %v5972_v51 = vpop.f32.mrf.mxu0  ;;  %vm1363_vm10 = vmand %vm1362_vm15, %vm10891_vm14  ;;  %vm10896_vm14 = vnez %v10762_v10 }
 0x128   : > { %v8719_v38 = vpop.f32.mrf.mxu1  ;;  %2907 = vmatprep.mubr.bf16.mxu0 %v7748_v28  ;;  %v5973_v2 = vadd.f32 %v5972_v51, %v5971_v59  ;;  %v7162_v28 = vld [vmem:[%s10358_s2 + $0x120] sm:$0xff]   ;;  %v8744_v42 = vsel %vm1363_vm10, %v8115_v61, 0  ;;  %v10893_v59 = vmov 0 }
 0x129   : > { %6872 = vmatmul.mubr.msk.bf16.gmra.mxu1 %vm10876_vm12, %v10874_v62  ;;  %v5974_v48 = vpop.f32.mrf.mxu0  ;;  %v7163_v62 = vld [vmem:[%s10358_s2 + $0xe0] sm:$0xff]   ;;  %10892 = vst [vmem:[#allocation16_spill] sm:$0xff] %v8744_v42  ;;  %6333 = vmatprep.subr.bf16.mxu1 %v7162_v28 }
 0x12a   : > { %6875 = vmatprep.mubr.msk.bf16.mxu1 %vm10890_vm6, %v10888_v29  ;;  %v8729_v1 = vpop.f32.mrf.mxu1  ;;  %v8739_v18 = vadd.f32 %v5973_v2, %v8624_v56  ;;  %vm8746_vm6 = vcmp.eq.s16.totalorder %v5345_v40, 0  ;;  %6334 = vmatpush3.bf16.msra.mxu1 %v7163_v62 }
 0x12b   : > { %v5975_v49 = vpop.f32.mrf.mxu0  ;;  %v10894_v59 = vsel %vm8746_vm6, 4294967295, %v10893_v59 }
 0x12c   : > { %v8741_v29 = vpop.f32.mrf.mxu1  ;;  %10895 = vst [vmem:[#allocation11_spill] sm:$0xff] %v10894_v59  ;;  %v5976_v51 = vadd.f32 %v5975_v49, %v5974_v48 }
 0x12e   : > { %v8750_v8 = vpop.f32.mrf.mxu1  ;;  %v5977_v9 = vpop.f32.mrf.mxu0  ;;  %v8756_v56 = vadd.f32 %v5976_v51, %v8642_v57 }
 0x12f   : > { %5561 = vmatmul.mubr.msk.bf16.gmra.mxu0 %vm10896_vm14, %v8176_v36 }
 0x130   : > { %2915 = vmatprep.mubr.bf16.mxu0 %v10841_v19  ;;  %v5978_v40 = vpop.f32.mrf.mxu0  ;;  %v10897_v19 = vld [vmem:[#allocation51_spill] sm:$0xff] }
 0x131   : > { %v8758_v2 = vpop.f32.mrf.mxu1  ;;  %6876 = vmatmul.mubr.msk.bf16.gmra.mxu1 %vm8746_vm6, %v8744_v42  ;;  %v5979_v48 = vadd.f32 %v5978_v40, %v5977_v9  ;;  %vm10898_vm15 = vnez %v10897_v19  ;;  %v7164_v9 = vld [vmem:[%s10358_s2 + $0x118] sm:$0xff]   ;;  %v7166_v40 = vld [vmem:[%s10358_s2 + $0x168] sm:$0xff]  }
 0x132   : > { %v5980_v62 = vpop.f32.mrf.mxu0  ;;  %6335 = vmatprep.subr.bf16.mxu1 %v7164_v9  ;;  %6883 = vmatprep.subr.bf16.mxu0 %v7166_v40 }
 0x133   : > { %v8764_v28 = vpop.f32.mrf.mxu1  ;;  %v8767_v49 = vadd.f32 %v8613_v24, %v5979_v48  ;;  %v7165_v24 = vld [vmem:[%s10358_s2 + $0xd8] sm:$0xff]   ;;  %6884 = vmatpush3.bf16.msra.mxu0 %v7166_v40 }
 0x134   : > { %v5981_v57 = vpop.f32.mrf.mxu0  ;;  %6336 = vmatpush3.bf16.msra.mxu1 %v7165_v24 }
 0x135   : > { %v8769_v36 = vpop.f32.mrf.mxu1  ;;  %v5982_v51 = vadd.f32 %v5981_v57, %v5980_v62  ;;  %v10899_v57 = vld [vmem:[#allocation18_spill] sm:$0xff] }
 0x137   : > { %v8771_v61 = vpop.f32.mrf.mxu1  ;;  %v5983_v21 = vpop.f32.mrf.mxu0  ;;  %5563 = vmatmul.mubr.msk.bf16.gmra.mxu0 %vm10898_vm15, %v8241_v17  ;;  %v8786_v48 = vadd.f32 %v8629_v31, %v5982_v51 }
 0x138   : > { %2923 = vmatprep.mubr.bf16.mxu0 %v10899_v57 }
 0x139   : > { %v6071_v62 = vpop.f32.mrf.mxu1  ;;  %v5984_v59 = vpop.f32.mrf.mxu0 }
 0x13a   : > { %v5985_v17 = vadd.f32 %v5984_v59, %v5983_v21  ;;  %v10901_v21 = vld [vmem:[#allocation52_spill] sm:$0xff] }
 0x13b   : > { %v6072_v42 = vpop.f32.mrf.mxu1  ;;  %v5986_v12 = vpop.f32.mrf.mxu0  ;;  %vm10902_vm10 = vnez %v10901_v21  ;;  %v10905_v21 = vld [vmem:[#allocation55_spill] sm:$0xff] }
 0x13c   : > { %v6073_v60 = vadd.f32 %v6072_v42, %v6071_v62  ;;  %v8790_v58 = vadd.f32 %v5985_v17, %v8656_v20  ;;  %v10903_v42 = vld [vmem:[#allocation22_spill] sm:$0xff]  ;;  %vm10906_vm6 = vnez %v10905_v21 }
 0x13d   : > { %v6074_v19 = vpop.f32.mrf.mxu1  ;;  %v5987_v15 = vpop.f32.mrf.mxu0 }
 0x13e   : > { %v8793_v31 = vadd.f32 %v6073_v60, %v8579_v26  ;;  %v8795_v51 = vadd.f32 %v5987_v15, %v5986_v12  ;;  %v7167_v26 = vld [vmem:[%s10358_s2 + $0x110] sm:$0xff]  }
 0x13f   : > { %v6075_v57 = vpop.f32.mrf.mxu1  ;;  %v5989_v9 = vpop.f32.mrf.mxu0  ;;  %5565 = vmatmul.mubr.msk.bf16.gmra.mxu0 %vm10902_vm10, %v10900_v44  ;;  %v7168_v60 = vld [vmem:[%s10358_s2 + $0xd0] sm:$0xff]   ;;  %6337 = vmatprep.subr.bf16.mxu1 %v7167_v26 }
 0x140   : > { %v6076_v10 = vadd.f32 %v6075_v57, %v6074_v19  ;;  %2931 = vmatprep.mubr.bf16.mxu0 %v10903_v42  ;;  %6338 = vmatpush3.bf16.msra.mxu1 %v7168_v60  ;;  %v7170_v60 = vld [vmem:[%s10358_s2 + $0xc8] sm:$0xff]  }
 0x141   : > { %v6077_v59 = vpop.f32.mrf.mxu1  ;;  %v5990_v24 = vpop.f32.mrf.mxu0 }
 0x142   : > { %v8802_v20 = vadd.f32 %v6076_v10, %v8584_v47  ;;  %v5991_v40 = vadd.f32 %v5990_v24, %v5989_v9  ;;  %v10904_v24 = vld [vmem:[#allocation56_spill] sm:$0xff] }
 0x143   : > { %v6078_v62 = vpop.f32.mrf.mxu1  ;;  %v5992_v12 = vpop.f32.mrf.mxu0 }
 0x144   : > { %v6079_v15 = vadd.f32 %v6078_v62, %v6077_v59  ;;  %v8811_v44 = vadd.f32 %v8644_v27, %v5991_v40  ;;  %v10907_v40 = vld [vmem:[#allocation25_spill] sm:$0xff] }
 0x145   : > { %v6080_v19 = vpop.f32.mrf.mxu1  ;;  %v5993_v17 = vpop.f32.mrf.mxu0 }
 0x146   : > { %v8814_v10 = vadd.f32 %v6079_v15, %v8593_v32  ;;  %v5994_v47 = vadd.f32 %v5993_v17, %v5992_v12  ;;  %v7169_v32 = vld [vmem:[%s10358_s2 + $0x108] sm:$0xff]  }
 0x147   : > { %v6081_v57 = vpop.f32.mrf.mxu1  ;;  %v5995_v42 = vpop.f32.mrf.mxu0  ;;  %5567 = vmatmul.mubr.msk.bf16.gmra.mxu0 %vm10906_vm6, %v10904_v24  ;;  %6339 = vmatprep.subr.bf16.mxu1 %v7169_v32  ;;  %v7173_v24 = vld [vmem:[%s10358_s2 + $0xc0] sm:$0xff]  }
 0x148   : > { %v6082_v9 = vadd.f32 %v6081_v57, %v6080_v19  ;;  %v8820_v59 = vadd.f32 %v8661_v52, %v5994_v47  ;;  %2939 = vmatprep.mubr.bf16.mxu0 %v10907_v40  ;;  %v7171_v52 = vld [vmem:[%s10358_s2 + $0x160] sm:$0xff]   ;;  %6340 = vmatpush3.bf16.msra.mxu1 %v7170_v60  ;;  %v10908_v60 = vld [vmem:[#allocation58_spill] sm:$0xff] }
 0x149   : > { %v6083_v27 = vpop.f32.mrf.mxu1  ;;  %v5996_v62 = vpop.f32.mrf.mxu0  ;;  %6885 = vmatprep.subr.bf16.mxu0 %v7171_v52 }
 0x14a   : > { %v8827_v26 = vadd.f32 %v6082_v9, %v8600_v7  ;;  %v5997_v15 = vadd.f32 %v5996_v62, %v5995_v42  ;;  %v7172_v7 = vld [vmem:[%s10358_s2 + $0x100] sm:$0xff]   ;;  %6886 = vmatpush3.bf16.msra.mxu0 %v7171_v52 }
 0x14b   : > { %v6084_v12 = vpop.f32.mrf.mxu1  ;;  %v5998_v17 = vpop.f32.mrf.mxu0  ;;  %6341 = vmatprep.subr.bf16.mxu1 %v7172_v7 }
 0x14c   : > { %v6085_v19 = vadd.f32 %v6084_v12, %v6083_v27  ;;  %v8836_v47 = vadd.f32 %v5997_v15, %v8688_v50  ;;  %v7174_v50 = vld [vmem:[%s10358_s2 + $0x158] sm:$0xff]   ;;  %v10909_v15 = vld [vmem:[#allocation57_spill] sm:$0xff]  ;;  %6342 = vmatpush3.bf16.msra.mxu1 %v7173_v24 }
 0x14d   : > { %v6086_v57 = vpop.f32.mrf.mxu1  ;;  %v5999_v9 = vpop.f32.mrf.mxu0  ;;  %vm10910_vm12 = vnez %v10909_v15  ;;  %v10911_v12 = vld [vmem:[#allocation28_spill] sm:$0xff]  ;;  %6887 = vmatprep.subr.bf16.mxu0 %v7174_v50 }
 0x14e   : > { %v8842_v42 = vadd.f32 %v6085_v19, %v8611_v54  ;;  %v8847_v27 = vadd.f32 %v5999_v9, %v5998_v17  ;;  %6888 = vmatpush3.bf16.msra.mxu0 %v7174_v50 }
 0x14f   : > { %v6087_v40 = vpop.f32.mrf.mxu1  ;;  %v6001_v62 = vpop.f32.mrf.mxu0  ;;  %5569 = vmatmul.mubr.msk.bf16.gmra.mxu0 %vm10910_vm12, %v10908_v60 }
 0x150   : > { %v6088_v32 = vadd.f32 %v6087_v40, %v6086_v57  ;;  %2947 = vmatprep.mubr.bf16.mxu0 %v10911_v12  ;;  %v7176_v57 = vld [vmem:[%s10358_s2 + $0x150] sm:$0xff]  }
 0x151   : > { %v6089_v54 = vpop.f32.mrf.mxu1  ;;  %v6002_v52 = vpop.f32.mrf.mxu0  ;;  %6889 = vmatprep.subr.bf16.mxu0 %v7176_v57 }
 0x152   : > { %v8857_v19 = vadd.f32 %v6088_v32, %v8618_v30  ;;  %v6003_v17 = vadd.f32 %v6002_v52, %v6001_v62  ;;  %6890 = vmatpush3.bf16.msra.mxu0 %v7176_v57  ;;  %v7177_v32 = vld [vmem:[%s10358_s2 + $0x148] sm:$0xff]  }
 0x153   : > { %v6090_v7 = vpop.f32.mrf.mxu1  ;;  %v6004_v40 = vpop.f32.mrf.mxu0  ;;  %6891 = vmatprep.subr.bf16.mxu0 %v7177_v32 }
 0x154   : > { %v6091_v9 = vadd.f32 %v6090_v7, %v6089_v54  ;;  %v8863_v60 = vadd.f32 %v8673_v14, %v6003_v17  ;;  %v10912_v54 = vld [vmem:[#allocation60_spill] sm:$0xff]  ;;  %v298_v14 = vadd.s32 272, %v10882_v13  ;;  %v7178_v13 = vld [vmem:[%s10358_s2 + $0x140] sm:$0xff]  }
 0x155   : > { %v6092_v24 = vpop.f32.mrf.mxu1  ;;  %v6005_v12 = vpop.f32.mrf.mxu0 }
 0x156   : > { %v8866_v15 = vadd.f32 %v6091_v9, %v8637_v23  ;;  %v6006_v30 = vadd.f32 %v6005_v12, %v6004_v40  ;;  %v10914_v9 = vld [vmem:[#allocation32_spill] sm:$0xff]  ;;  %6892 = vmatpush3.bf16.msra.mxu0 %v7177_v32 }
 0x157   : > { %v6093_v50 = vpop.f32.mrf.mxu1  ;;  %v6007_v52 = vpop.f32.mrf.mxu0  ;;  %5571 = vmatmul.mubr.msk.bf16.gmra.mxu0 %vm8369_vm13, %v10912_v54  ;;  %v542_v54 = vand.u32 15, %v298_v14  ;;  %6893 = vmatprep.subr.bf16.mxu0 %v7178_v13  ;;  %v10917_v14 = vld [vmem:[#allocation36_spill] sm:$0xff] }
 0x158   : > { %v6094_v62 = vadd.f32 %v6093_v50, %v6092_v24  ;;  %v8876_v17 = vadd.f32 %v8693_v11, %v6006_v30  ;;  %2955 = vmatprep.mubr.bf16.mxu0 %v10914_v9  ;;  %v8885_v50 = vld [vmem:[%s10358_s2 + $0xb8] sm:$0xff]  }
 0x159   : > { %v6095_v23 = vpop.f32.mrf.mxu1  ;;  %v6008_v57 = vpop.f32.mrf.mxu0  ;;  %6927 = vmatprep.subr.bf16.mxu1 %v8885_v50  ;;  %vm766_vm13 = vcmp.eq.s32.totalorder %v542_v54, 0 }
 0x15a   : > { %v8880_v40 = vadd.f32 %v6094_v62, %v8649_v35  ;;  %v6009_v24 = vadd.f32 %v6008_v57, %v6007_v52  ;;  %6894 = vmatpush3.bf16.msra.mxu0 %v7178_v13  ;;  %vm1164_vm12 = vmpackc.low %vm766_vm13, %vm766_vm13 }
 0x15b   : > { %v6096_v12 = vpop.f32.mrf.mxu1  ;;  %v8890_v30 = vpop.f32.mrf.mxu0 }
 0x15c   : > { %v6097_v11 = vadd.f32 %v6096_v12, %v6095_v23  ;;  %v8893_v9 = vadd.f32 %v6009_v24, %v8729_v1  ;;  %v10915_v23 = vld [vmem:[#allocation62_spill] sm:$0xff] }
 0x15d   : > { %v6098_v35 = vpop.f32.mrf.mxu1  ;;  %v8896_v32 = vpop.f32.mrf.mxu0 }
 0x15e   : > { %v8899_v62 = vadd.f32 %v6097_v11, %v8669_v25 }
 0x15f   : > { %v6099_v52 = vpop.f32.mrf.mxu1  ;;  %v6013_v7 = vpop.f32.mrf.mxu0  ;;  %5573 = vmatmul.mubr.msk.bf16.gmra.mxu0 %vm8388_vm8, %v10915_v23  ;;  %v1200_v23 = vsel %vm1164_vm12, 65537, %v10886_v3  ;;  %vm10923_vm12 = vsmask.f32 256 }
 0x160   : > { %v6100_v57 = vadd.f32 %v6099_v52, %v6098_v35  ;;  %2963 = vmatprep.mubr.bf16.mxu0 %v10917_v14 }
 0x161   : > { %v6101_v1 = vpop.f32.mrf.mxu1  ;;  %v6014_v24 = vpop.f32.mrf.mxu0 }
 0x162   : > { %v8906_v21 = vadd.f32 %v6100_v57, %v8678_v45  ;;  %v6015_v4 = vadd.f32 %v6014_v24, %v6013_v7  ;;  %v10918_v57 = vld [vmem:[#allocation65_spill] sm:$0xff]  ;;  %v10919_v7 = vld [vmem:[#allocation63_spill] sm:$0xff] }
 0x163   : > { %v6102_v16 = vpop.f32.mrf.mxu1  ;;  %v6016_v13 = vpop.f32.mrf.mxu0  ;;  %vm10920_vm8 = vnez %v10919_v7 }
 0x164   : > { %v6103_v25 = vadd.f32 %v6102_v16, %v6101_v1  ;;  %v8909_v11 = vadd.f32 %v8719_v38, %v6015_v4  ;;  %v5327_v38 = vcombine.low %v1200_v23, %v7517_v46 }
 0x165   : > { %v6104_v35 = vpop.f32.mrf.mxu1  ;;  %v6017_v52 = vpop.f32.mrf.mxu0 }
 0x166   : > { %v8913_v54 = vadd.f32 %v6103_v25, %v8705_v34  ;;  %v6018_v14 = vadd.f32 %v6017_v52, %v6016_v13  ;;  %vm8934_vm13 = vcmp.eq.s16.totalorder %v5327_v38, 0 }
 0x167   : > { %v6105_v12 = vpop.f32.mrf.mxu1  ;;  %v6019_v45 = vpop.f32.mrf.mxu0  ;;  %5575 = vmatmul.mubr.msk.bf16.gmra.mxu0 %vm10920_vm8, %v10918_v57  ;;  %vm10938_vm8 = vsmask.f32 256 }
 0x168   : > { %v6106_v43 = vadd.f32 %v6105_v12, %v6104_v35  ;;  %v8919_v16 = vadd.f32 %v8741_v29, %v6018_v14  ;;  %2971 = vmatprep.mubr.bf16.mxu0 %v10886_v3  ;;  %v10921_v29 = vld [vmem:[#allocation6_spill] sm:$0xff]  ;;  %v10922_v14 = vld [vmem:[#allocation53_spill] sm:$0xff]  ;;  %v10924_v3 = vmov 0 }
 0x169   : > { %v6107_v4 = vpop.f32.mrf.mxu1  ;;  %v6020_v1 = vpop.f32.mrf.mxu0  ;;  %v1036_v57 = vsel %vm10923_vm12, %v10922_v14, %v10921_v29  ;;  %v10925_v3 = vsel %vm8934_vm13, 4294967295, %v10924_v3 }
 0x16a   : > { %v8924_v34 = vadd.f32 %v6106_v43, %v8717_v41  ;;  %v6021_v24 = vadd.f32 %v6020_v1, %v6019_v45  ;;  %10926 = vst [vmem:[#allocation13_spill] sm:$0xff] %v10925_v3 }
 0x16b   : > { %v6108_v25 = vpop.f32.mrf.mxu1  ;;  %v8926_v13 = vpop.f32.mrf.mxu0 }
 0x16c   : > { %v6109_v12 = vadd.f32 %v6108_v25, %v6107_v4  ;;  %v8929_v35 = vadd.f32 %v6021_v24, %v8764_v28 }
 0x16d   : > { %v6110_v52 = vpop.f32.mrf.mxu1  ;;  %v8938_v46 = vpop.f32.mrf.mxu0 }
 0x16e   : > { %v8941_v43 = vadd.f32 %v6109_v12, %v8739_v18 }
 0x16f   : > { %v6111_v41 = vpop.f32.mrf.mxu1  ;;  %v6025_v45 = vpop.f32.mrf.mxu0  ;;  %5577 = vmatmul.mubr.msk.bf16.gmra.mxu0 %vm8934_vm13, %v1036_v57 }
 0x170   : > { %v6112_v23 = vadd.f32 %v6111_v41, %v6110_v52 }
 0x171   : > { %v6113_v28 = vpop.f32.mrf.mxu1  ;;  %v6026_v4 = vpop.f32.mrf.mxu0 }
 0x172   : > { %v8946_v1 = vadd.f32 %v6112_v23, %v8756_v56  ;;  %v8948_v38 = vadd.f32 %v6026_v4, %v6025_v45 }
 0x173   : > { %v6114_v24 = vpop.f32.mrf.mxu1  ;;  %v8950_v14 = vpop.f32.mrf.mxu0 }
 0x174   : > { %v6115_v25 = vadd.f32 %v6114_v24, %v6113_v28 }
 0x175   : > { %v6116_v7 = vpop.f32.mrf.mxu1  ;;  %v8952_v18 = vpop.f32.mrf.mxu0 }
 0x176   : > { %v2396_v12 = vadd.f32 %v6115_v25, %v8767_v49 }
 0x177   : > { %v6117_v52 = vpop.f32.mrf.mxu1  ;;  %v6801_v3 = vpop.f32.mrf.mxu0 }
 0x178   : > { %v6118_v41 = vadd.f32 %v6117_v52, %v6116_v7  ;;  %v8956_v5 = vadd.f32 %v6801_v3, %v8814_v10  ;;  %v2102_v3 = vadd.f32 %v8795_v51, %v8671_v55 }
 0x179   : > { %v6119_v57 = vpop.f32.mrf.mxu1  ;;  %v2500_v56 = vpop.f32.mrf.mxu0 }
 0x17a   : > { %v2399_v23 = vadd.f32 %v6118_v41, %v8786_v48  ;;  %v8960_v28 = vadd.f32 %v2500_v56, %v8793_v31 }
 0x17b   : > { %v6120_v45 = vpop.f32.mrf.mxu1  ;;  %v6802_v24 = vpop.f32.mrf.mxu0 }
 0x17c   : > { %v6121_v4 = vadd.f32 %v6120_v45, %v6119_v57  ;;  %v8963_v22 = vadd.f32 %v6802_v24, %v8827_v26 }
 0x17d   : > { %v6122_v6 = vpop.f32.mrf.mxu1  ;;  %v8965_v49 = vpop.f32.mrf.mxu0 }
 0x17e   : > { %v2404_v7 = vadd.f32 %v6121_v4, %v8790_v58 }
 0x17f   : > { %v6123_v25 = vpop.f32.mrf.mxu1  ;;  %v6805_v48 = vpop.f32.mrf.mxu0 }
 0x180   : > { %v6124_v10 = vadd.f32 %v6123_v25, %v6122_v6  ;;  %v8971_v31 = vadd.f32 %v6805_v48, %v8866_v15 }
 0x181   : > { %v6125_v52 = vpop.f32.mrf.mxu1  ;;  %v2516_v41 = vpop.f32.mrf.mxu0 }
 0x182   : > { %v8973_v57 = vadd.f32 %v6124_v10, %v2102_v3  ;;  %v8976_v26 = vadd.f32 %v2516_v41, %v8842_v42 }
 0x183   : > { %v6126_v56 = vpop.f32.mrf.mxu1  ;;  %v6806_v24 = vpop.f32.mrf.mxu0 }
 0x184   : > { %10927 = vst [vmem:[#allocation15_spill] sm:$0xff] %v8973_v57  ;;  %v6127_v45 = vadd.f32 %v6126_v56, %v6125_v52  ;;  %v8979_v4 = vadd.f32 %v6806_v24, %v8880_v40 }
 0x185   : > { %v6128_v58 = vpop.f32.mrf.mxu1  ;;  %v8981_v55 = vpop.f32.mrf.mxu0 }
 0x186   : > { %v2412_v6 = vadd.f32 %v6127_v45, %v8811_v44 }
 0x187   : > { %v6129_v51 = vpop.f32.mrf.mxu1  ;;  %v6809_v25 = vpop.f32.mrf.mxu0 }
 0x188   : > { %v6130_v15 = vadd.f32 %v6129_v51, %v6128_v58  ;;  %v8985_v3 = vadd.f32 %v6809_v25, %v8913_v54  ;;  %v2118_v54 = vadd.f32 %v8847_v27, %v8710_v63 }
 0x189   : > { %v6131_v48 = vpop.f32.mrf.mxu1  ;;  %v2532_v10 = vpop.f32.mrf.mxu0 }
 0x18a   : > { %v2415_v42 = vadd.f32 %v6130_v15, %v8820_v59  ;;  %v8989_v41 = vadd.f32 %v2532_v10, %v8899_v62 }
 0x18b   : > { %v6132_v52 = vpop.f32.mrf.mxu1  ;;  %v6810_v56 = vpop.f32.mrf.mxu0 }
 0x18c   : > { %v6133_v40 = vadd.f32 %v6132_v52, %v6131_v48  ;;  %v8992_v57 = vadd.f32 %v6810_v56, %v8924_v34 }
 0x18d   : > { %v6134_v24 = vpop.f32.mrf.mxu1  ;;  %v8994_v44 = vpop.f32.mrf.mxu0 }
 0x18e   : > { %v2420_v45 = vadd.f32 %v6133_v40, %v8836_v47 }
 0x18f   : > { %v6135_v58 = vpop.f32.mrf.mxu1  ;;  %v6813_v59 = vpop.f32.mrf.mxu0 }
 0x190   : > { %v6136_v51 = vadd.f32 %v6135_v58, %v6134_v24  ;;  %v8999_v25 = vadd.f32 %v6813_v59, %v2396_v12 }
 0x191   : > { %v6137_v15 = vpop.f32.mrf.mxu1  ;;  %v2548_v62 = vpop.f32.mrf.mxu0 }
 0x192   : > { %v9001_v48 = vadd.f32 %v6136_v51, %v2118_v54  ;;  %v9004_v34 = vadd.f32 %v2548_v62, %v8941_v43 }
 0x193   : > { %v6138_v10 = vpop.f32.mrf.mxu1  ;;  %v6814_v56 = vpop.f32.mrf.mxu0 }
 0x194   : > { %10928 = vst [vmem:[#allocation20_spill] sm:$0xff] %v9001_v48  ;;  %v6139_v52 = vadd.f32 %v6138_v10, %v6137_v15  ;;  %v9006_v47 = vadd.f32 %v6814_v56, %v2399_v23  ;;  %v7183_v23 = vld [vmem:[%s10358_s2 + $0x78] sm:$0xff]   ;;  %v6012_v15 = vadd.f32 %v8896_v32, %v8890_v30 }
 0x195   : > { %v6140_v39 = vpop.f32.mrf.mxu1  ;;  %v9008_v40 = vpop.f32.mrf.mxu0  ;;  %6463 = vmatprep.subr.bf16.mxu0 %v7183_v23 }
 0x196   : > { %v2428_v63 = vadd.f32 %v6139_v52, %v8863_v60 }
 0x197   : > { %v6141_v27 = vpop.f32.mrf.mxu1  ;;  %v6817_v12 = vpop.f32.mrf.mxu0 }
 0x198   : > { %v6142_v24 = vadd.f32 %v6141_v27, %v6140_v39  ;;  %v9011_v59 = vadd.f32 %v6817_v12, %v2412_v6 }
 0x199   : > { %v6143_v58 = vpop.f32.mrf.mxu1  ;;  %v2564_v54 = vpop.f32.mrf.mxu0 }
 0x19a   : > { %v2431_v51 = vadd.f32 %v6142_v24, %v8876_v17  ;;  %v9014_v62 = vadd.f32 %v2564_v54, %v2404_v7  ;;  %v2134_v7 = vadd.f32 %v6012_v15, %v8750_v8 }
 0x19b   : > { %v6144_v43 = vpop.f32.mrf.mxu1  ;;  %v6818_v10 = vpop.f32.mrf.mxu0 }
 0x19c   : > { %v6145_v60 = vadd.f32 %v6144_v43, %v6143_v58  ;;  %v9021_v52 = vadd.f32 %v6818_v10, %v2415_v42 }
 0x19d   : > { %v6146_v39 = vpop.f32.mrf.mxu1  ;;  %v9023_v6 = vpop.f32.mrf.mxu0 }
 0x19e   : > { %v2436_v17 = vadd.f32 %v6145_v60, %v8893_v9 }
 0x19f   : > { %v6147_v56 = vpop.f32.mrf.mxu1  ;;  %v6821_v24 = vpop.f32.mrf.mxu0 }
 0x1a0   : > { %v6148_v27 = vadd.f32 %v6147_v56, %v6146_v39  ;;  %v9027_v54 = vadd.f32 %v6821_v24, %v2428_v63 }
 0x1a1   : > { %v6149_v12 = vpop.f32.mrf.mxu1  ;;  %v2580_v48 = vpop.f32.mrf.mxu0 }
 0x1a2   : > { %v9029_v30 = vadd.f32 %v6148_v27, %v2134_v7  ;;  %v9031_v58 = vadd.f32 %v2580_v48, %v2420_v45 }
 0x1a3   : > { %v6150_v32 = vpop.f32.mrf.mxu1  ;;  %v6822_v43 = vpop.f32.mrf.mxu0 }
 0x1a4   : > { %v6151_v42 = vadd.f32 %v6150_v32, %v6149_v12  ;;  %v9033_v10 = vadd.f32 %v6822_v43, %v2431_v51  ;;  %v6024_v51 = vadd.f32 %v8938_v46, %v8926_v13  ;;  %v2155_v46 = vadd.f32 %v8758_v2, %v8948_v38 }
 0x1a5   : > { %v6152_v23 = vpop.f32.mrf.mxu1  ;;  %v9035_v9 = vpop.f32.mrf.mxu0 }
 0x1a6   : > { %v2444_v8 = vadd.f32 %v6151_v42, %v8909_v11 }
 0x1a7   : > { %v6153_v15 = vpop.f32.mrf.mxu1  ;;  %v6825_v39 = vpop.f32.mrf.mxu0 }
 0x1a8   : > { %v6154_v60 = vadd.f32 %v6153_v15, %v6152_v23  ;;  %v9038_v56 = vadd.f32 %v6825_v39, %v2444_v8  ;;  %v2150_v8 = vadd.f32 %v6024_v51, %v8771_v61 }
 0x1a9   : > { %v6155_v63 = vpop.f32.mrf.mxu1  ;;  %v2596_v7 = vpop.f32.mrf.mxu0 }
 0x1aa   : > { %v2447_v27 = vadd.f32 %v6154_v60, %v8919_v16  ;;  %v9041_v48 = vadd.f32 %v2596_v7, %v2436_v17 }
 0x1ab   : > { %v6156_v45 = vpop.f32.mrf.mxu1  ;;  %v6826_v12 = vpop.f32.mrf.mxu0 }
 0x1ac   : > { %v6157_v24 = vadd.f32 %v6156_v45, %v6155_v63  ;;  %v9045_v43 = vadd.f32 %v6826_v12, %v2447_v27  ;;  %v6030_v63 = vadd.f32 %v8952_v18, %v8950_v14 }
 0x1ad   : > { %v6158_v32 = vpop.f32.mrf.mxu1  ;;  %v9047_v11 = vpop.f32.mrf.mxu0 }
 0x1ae   : > { %v2452_v42 = vadd.f32 %v6157_v24, %v8929_v35  ;;  %v2158_v12 = vadd.f32 %v8769_v36, %v6030_v63  ;;  %v9070_v36 = vld [vmem:[%s10359_s3] ss:$0 sm:$0xff] }
 0x1af   : > { %v6159_v23 = vpop.f32.mrf.mxu1  ;;  %v6829_v16 = vpop.f32.mrf.mxu0 }
 0x1b0   : > { %v6160_v15 = vadd.f32 %v6159_v23, %v6158_v32 }
 0x1b1   : > { %v6161_v60 = vpop.f32.mrf.mxu1  ;;  %v2612_v17 = vpop.f32.mrf.mxu0 }
 0x1b2   : > { %v9051_v39 = vadd.f32 %v6160_v15, %v2150_v8  ;;  %v9053_v13 = vadd.f32 %v2612_v17, %v2452_v42 }
 0x1b3   : > { %v6162_v7 = vpop.f32.mrf.mxu1  ;;  %v6830_v35 = vpop.f32.mrf.mxu0 }
 0x1b4   : > { %10929 = vst [vmem:[#allocation23_spill] sm:$0xff] %v9051_v39  ;;  %v6163_v27 = vadd.f32 %v6162_v7, %v6161_v60 }
 0x1b5   : > { %v6164_v45 = vpop.f32.mrf.mxu1  ;;  %v9059_v61 = vpop.f32.mrf.mxu0 }
 0x1b6   : > { %v2460_v24 = vadd.f32 %v6163_v27, %v2155_v46 }
 0x1b7   : > { %v6165_v51 = vpop.f32.mrf.mxu1  ;;  %v6207_v42 = vpop.f32.mrf.mxu0 }
 0x1b8   : > { %v9062_v32 = vadd.f32 %v6829_v16, %v2460_v24  ;;  %v6166_v23 = vadd.f32 %v6165_v51, %v6164_v45  ;;  %v2504_v45 = vadd.f32 %v8965_v49, %v8802_v20 }
 0x1b9   : > { %v6849_v8 = vpop.f32.mrf.mxu1  ;;  %v6208_v17 = vpop.f32.mrf.mxu0 }
 0x1ba   : > { %10930 = vst [vmem:[#allocation27_spill] sm:$0xff] %v9062_v32  ;;  %v2463_v15 = vadd.f32 %v6166_v23, %v2158_v12  ;;  %v6209_v2 = vadd.f32 %v6208_v17, %v6207_v42 }
 0x1bb   : > { %v3014_v38 = vpop.f32.mrf.mxu1  ;;  %v6210_v14 = vpop.f32.mrf.mxu0 }
 0x1bc   : > { %v9064_v39 = vadd.f32 %v6830_v35, %v2463_v15  ;;  %v3015_v18 = vadd.f32 %v6209_v2, %v3014_v38 }
 0x1bd   : > { %v6850_v60 = vpop.f32.mrf.mxu1  ;;  %v6211_v7 = vpop.f32.mrf.mxu0 }
 0x1be   : > { %10931 = vst [vmem:[#allocation30_spill] sm:$0xff] %v9064_v39  ;;  %v3141_v46 = vadd.f32 %v3015_v18, %v8960_v28  ;;  %v6212_v27 = vadd.f32 %v6211_v7, %v6210_v14 }
 0x1bf   : > { %v3017_v16 = vpop.f32.mrf.mxu1  ;;  %v6213_v63 = vpop.f32.mrf.mxu0 }
 0x1c0   : > { %v3018_v24 = vadd.f32 %v6212_v27, %v3017_v16  ;;  %v3178_v51 = vadd.f32 %v9070_v36, %v3141_v46 }
 0x1c1   : > { %v6214_v35 = vpop.f32.mrf.mxu0  ;;  %v6853_v15 = vpop.f32.mrf.mxu1 }
 0x1c2   : > { %v3142_v12 = vadd.f32 %v3018_v24, %v2504_v45  ;;  %v6215_v23 = vadd.f32 %v6214_v35, %v6213_v63  ;;  %v3210_v38 = vmax.f32 %v3178_v51, 0.0 }
 0x1c3   : > { %v6216_v42 = vpop.f32.mrf.mxu0  ;;  %v3030_v39 = vpop.f32.mrf.mxu1 }
 0x1c4   : > { %v3179_v28 = vadd.f32 %v9070_v36, %v3142_v12  ;;  %v3023_v17 = vadd.f32 %v6849_v8, %v6215_v23 }
 0x1c5   : > { %v6217_v2 = vpop.f32.mrf.mxu0  ;;  %v6854_v8 = vpop.f32.mrf.mxu1 }
 0x1c6   : > { %v3211_v14 = vmax.f32 %v3179_v28, 0.0  ;;  %v3143_v18 = vadd.f32 %v3023_v17, %v8956_v5  ;;  %v6218_v7 = vadd.f32 %v6217_v2, %v6216_v42 }
 0x1c7   : > { %v6219_v32 = vpop.f32.mrf.mxu0 }
 0x1c8   : > { %v3026_v20 = vadd.f32 %v6850_v60, %v6218_v7  ;;  %v9077_v49 = vpack.c.bf16 %v3211_v14, %v3210_v38  ;;  %v3180_v46 = vadd.f32 %v9070_v36, %v3143_v18  ;;  %v7179_v38 = vld [vmem:[%s10358_s2 + $0xb0] sm:$0xff]   ;;  %v2520_v14 = vadd.f32 %v8981_v55, %v8857_v19 }
 0x1c9   : > { %v6220_v27 = vpop.f32.mrf.mxu0 }
 0x1ca   : > { %v3144_v16 = vadd.f32 %v3026_v20, %v8963_v22  ;;  %v6221_v63 = vadd.f32 %v6220_v27, %v6219_v32  ;;  %v3259_v45 = vshrl.u32 %v9077_v49, 16  ;;  %3776 = vmatprep.mubr.bf16.mxu1 %v9077_v49  ;;  %v3262_v60 = vshll.u32 %v9077_v49, 16  ;;  %v3033_v32 = vpop.f32.mrf.mxu1 }
 0x1cb   : > { %v6222_v24 = vpop.f32.mrf.mxu0  ;;  %v3212_v12 = vmax.f32 %v3180_v46, 0.0  ;;  %v10932_v46 = vld [vmem:[#allocation8_spill] sm:$0xff] }
 0x1cc   : > { %v3181_v5 = vadd.f32 %v9070_v36, %v3144_v16  ;;  %v3031_v35 = vadd.f32 %v6221_v63, %v3030_v39  ;;  %v3261_v51 = vrot.slane %v3259_v45, 7  ;;  %vm10933_vm13 = vnez %v10932_v46 }
 0x1cd   : > { %v6223_v23 = vpop.f32.mrf.mxu0  ;;  %v9101_v27 = vrot.slane %v3262_v60, 1 }
 0x1ce   : > { %v3213_v42 = vmax.f32 %v3181_v5, 0.0  ;;  %v3145_v28 = vadd.f32 %v3031_v35, %v8976_v26  ;;  %v6224_v17 = vadd.f32 %v6223_v23, %v6222_v24  ;;  %v3264_v22 = vor.u32 %v3262_v60, %v3261_v51  ;;  %v9106_v24 = vpop.f32.mrf.mxu1  ;;  %v7180_v35 = vld [vmem:[%s10358_s2 + $0xa8] sm:$0xff]  }
 0x1cf   : > { %v6225_v2 = vpop.f32.mrf.mxu0 }
 0x1d0   : > { %v9091_v39 = vpack.c.bf16 %v3213_v42, %v3212_v12  ;;  %v3034_v18 = vadd.f32 %v6224_v17, %v3033_v32  ;;  %v9095_v7 = vsel %vm10923_vm12, %v10921_v29, %v3264_v22  ;;  %v3182_v26 = vadd.f32 %v9070_v36, %v3145_v28 }
 0x1d1   : > { %v6226_v20 = vpop.f32.mrf.mxu0  ;;  %5636 = vmatmul.mubr.msk.bf16.vlgmr.msra.gmra.mxu1 %vm10933_vm13, %v9095_v7  ;;  %vm10934_vm12 = vsmask.f32 7424 }
 0x1d2   : > { %v3146_v16 = vadd.f32 %v3034_v18, %v2520_v14  ;;  %v6227_v63 = vadd.f32 %v6226_v20, %v6225_v2  ;;  %3784 = vmatprep.mubr.bf16.mxu1 %v9091_v39  ;;  %6928 = vmatpush3.bf16.msra.mxu1 %v8885_v50  ;;  %v3267_v19 = vshrl.u32 %v9091_v39, 16  ;;  %v3270_v5 = vshll.u32 %v9091_v39, 16  ;;  %v3046_v18 = vpop.f32.mrf.mxu1 }
 0x1d3   : > { %v6228_v55 = vpop.f32.mrf.mxu0  ;;  %6929 = vmatprep.subr.bf16.mxu1 %v7179_v38  ;;  %v3214_v42 = vmax.f32 %v3182_v26, 0.0  ;;  %v3423_v50 = vor.u32 %v9101_v27, %v3259_v45 }
 0x1d4   : > { %v3183_v60 = vadd.f32 %v9070_v36, %v3146_v16  ;;  %v3039_v12 = vadd.f32 %v6853_v15, %v6227_v63  ;;  %v3269_v23 = vrot.slane %v3267_v19, 7  ;;  %v3424_v17 = vrot.slane %v3270_v5, 1  ;;  %v7181_v15 = vld [vmem:[%s10358_s2 + $0xa0] sm:$0xff]   ;;  %v10936_v16 = vld [vmem:[#allocation7_spill] sm:$0xff] }
 0x1d5   : > { %v6229_v28 = vpop.f32.mrf.mxu0  ;;  %vm10937_vm13 = vnez %v10936_v16  ;;  %v7210_v16 = vld [vmem:[%s10358_s2 + $0x1e0] sm:$0xff]  }
 0x1d6   : > { %v3215_v22 = vmax.f32 %v3183_v60, 0.0  ;;  %v3147_v32 = vadd.f32 %v3039_v12, %v8971_v31  ;;  %v6230_v2 = vadd.f32 %v6229_v28, %v6228_v55  ;;  %v3272_v14 = vor.u32 %v3270_v5, %v3269_v23  ;;  %6930 = vmatpush3.bf16.msra.mxu1 %v7179_v38  ;;  %v9136_v12 = vpop.f32.mrf.mxu1  ;;  %v7182_v28 = vld [vmem:[%s10358_s2 + $0x98] sm:$0xff]  }
 0x1d7   : > { %v6231_v20 = vpop.f32.mrf.mxu0  ;;  %v9116_v29 = vsel %vm10934_vm12, %v3423_v50, %v3424_v17  ;;  %6931 = vmatprep.subr.bf16.mxu1 %v7180_v35 }
 0x1d8   : > { %v9121_v26 = vpack.c.bf16 %v3215_v22, %v3214_v42  ;;  %v3042_v45 = vadd.f32 %v6854_v8, %v6230_v2  ;;  %6895 = vmatprep.mubr.msk.bf16.mxu0 %vm10937_vm13, %v9116_v29  ;;  %v9127_v31 = vsel %vm10938_vm8, %v3261_v51, %v3272_v14  ;;  %v3184_v38 = vadd.f32 %v9070_v36, %v3147_v32  ;;  %v7184_v2 = vld [vmem:[%s10358_s2 + $0x38] sm:$0xff]   ;;  %vm10941_vm8 = vmmov %vm10934_vm12 }
 0x1d9   : > { %10939 = vst [vmem:[#allocation37_spill] sm:$0xff] %v9127_v31  ;;  %v6232_v63 = vpop.f32.mrf.mxu0  ;;  %5638 = vmatmul.mubr.msk.bf16.gmra.mxu1 %vm7672_vm4, %v9127_v31  ;;  %v3426_v22 = vor.u32 %v3424_v17, %v3267_v19  ;;  %v3049_v19 = vpop.f32.mrf.mxu1  ;;  %vm10943_vm12 = vsmask.f32 256 }
 0x1da   : > { %10935 = vst [vmem:[#allocation34_spill] sm:$0xff] %v9121_v26  ;;  %v3148_v5 = vadd.f32 %v3042_v45, %v8979_v4  ;;  %v6233_v60 = vadd.f32 %v6232_v63, %v6231_v20  ;;  %3792 = vmatprep.mubr.bf16.mxu1 %v9121_v26  ;;  %v3278_v8 = vshll.u32 %v9121_v26, 16  ;;  %6932 = vmatpush3.bf16.msra.mxu1 %v7180_v35  ;;  %v3275_v51 = vshrl.u32 %v9121_v26, 16  ;;  %v7185_v45 = vld [vmem:[%s10358_s2 + $0x70] sm:$0xff]  }
 0x1db   : > { %v6234_v42 = vpop.f32.mrf.mxu0  ;;  %6933 = vmatprep.subr.bf16.mxu1 %v7181_v15  ;;  %v3216_v35 = vmax.f32 %v3184_v38, 0.0 }
 0x1dc   : > { %v3185_v50 = vadd.f32 %v9070_v36, %v3148_v5  ;;  %v3047_v4 = vadd.f32 %v6233_v60, %v3046_v18  ;;  %v3427_v32 = vrot.slane %v3278_v8, 1  ;;  %v3277_v20 = vrot.slane %v3275_v51, 7 }
 0x1dd   : > { %v6235_v14 = vpop.f32.mrf.mxu0  ;;  %v2536_v60 = vadd.f32 %v8994_v44, %v8906_v21  ;;  %v7188_v21 = vld [vmem:[%s10358_s2 + $0x68] sm:$0xff]  }
 0x1de   : > { %v3217_v63 = vmax.f32 %v3185_v50, 0.0  ;;  %v3149_v26 = vadd.f32 %v3047_v4, %v8989_v41  ;;  %v6236_v55 = vadd.f32 %v6235_v14, %v6234_v42  ;;  %v9151_v5 = vsel %vm10941_vm8, %v3426_v22, %v3427_v32  ;;  %6934 = vmatpush3.bf16.msra.mxu1 %v7181_v15  ;;  %v7186_v41 = vld [vmem:[%s10358_s2 + $0x30] sm:$0xff]  }
 0x1df   : > { %v6237_v17 = vpop.f32.mrf.mxu0  ;;  %6896 = vmatmul.mubr.msk.bf16.vlgmr.msra.gmra.mxu0 %vm10837_vm3, %v9151_v5  ;;  %v3280_v38 = vor.u32 %v3278_v8, %v3277_v20  ;;  %6935 = vmatprep.subr.bf16.mxu1 %v7182_v28  ;;  %v7187_v15 = vld [vmem:[%s10358_s2 + $0x90] sm:$0xff]  }
 0x1e0   : > { %v9158_v31 = vpack.c.bf16 %v3217_v63, %v3216_v35  ;;  %v3050_v50 = vadd.f32 %v6236_v55, %v3049_v19  ;;  %6464 = vmatpush3.bf16.msra.mxu0 %v7184_v2  ;;  %v3186_v42 = vadd.f32 %v9070_v36, %v3149_v26  ;;  %v9178_v2 = vpop.f32.mrf.mxu1 }
 0x1e1   : > { %v6238_v22 = vpop.f32.mrf.mxu0  ;;  %v9168_v8 = vsel %vm10943_vm12, %v3269_v23, %v3280_v38  ;;  %6465 = vmatprep.subr.bf16.mxu0 %v7185_v45 }
 0x1e2   : > { %v3150_v44 = vadd.f32 %v3050_v50, %v2536_v60  ;;  %v6239_v55 = vadd.f32 %v6238_v22, %v6237_v17  ;;  %5640 = vmatmul.mubr.msk.bf16.gmra.mxu1 %vm7760_vm2, %v9168_v8  ;;  %v3283_v4 = vshrl.u32 %v9158_v31, 16  ;;  %v3286_v23 = vshll.u32 %v9158_v31, 16  ;;  %v7189_v60 = vld [vmem:[%s10358_s2 + $0x28] sm:$0xff]  }
 0x1e3   : > { %3800 = vmatprep.mubr.bf16.mxu1 %v9158_v31  ;;  %v6240_v26 = vpop.f32.mrf.mxu0  ;;  %6936 = vmatpush3.bf16.msra.mxu1 %v7182_v28  ;;  %v3218_v63 = vmax.f32 %v3186_v42, 0.0  ;;  %v3429_v17 = vor.u32 %v3427_v32, %v3275_v51  ;;  %v7192_v28 = vld [vmem:[%s10358_s2 + $0x88] sm:$0xff]   ;;  %v7190_v51 = vld [vmem:[%s10358_s2 + $0x60] sm:$0xff]   ;;  %v3062_v32 = vpop.f32.mrf.mxu1 }
 0x1e4   : > { %v3187_v35 = vadd.f32 %v9070_v36, %v3150_v44  ;;  %v3055_v14 = vadd.f32 %v9106_v24, %v6239_v55  ;;  %v9183_v45 = vrot.slane %v3283_v4, 7  ;;  %6466 = vmatpush3.bf16.msra.mxu0 %v7186_v41  ;;  %6937 = vmatprep.subr.bf16.mxu1 %v7187_v15  ;;  %v3430_v38 = vrot.slane %v3286_v23, 1 }
 0x1e5   : > { %v6241_v19 = vpop.f32.mrf.mxu0  ;;  %6467 = vmatprep.subr.bf16.mxu0 %v7188_v21 }
 0x1e6   : > { %v3219_v50 = vmax.f32 %v3187_v35, 0.0  ;;  %v3151_v24 = vadd.f32 %v3055_v14, %v8985_v3  ;;  %v6242_v22 = vadd.f32 %v6241_v19, %v6240_v26  ;;  %v3288_v41 = vor.u32 %v3286_v23, %v9183_v45  ;;  %v7197_v26 = vld [vmem:[%s10358_s2 + $0x80] sm:$0xff]   ;;  %v9223_v19 = vpop.f32.mrf.mxu1 }
 0x1e7   : > { %v6243_v42 = vpop.f32.mrf.mxu0  ;;  %v9197_v21 = vsel %vm10941_vm8, %v3429_v17, %v3430_v38  ;;  %6938 = vmatpush3.bf16.msra.mxu1 %v7187_v15  ;;  %v7191_v15 = vld [vmem:[%s10358_s2 + $0x20] sm:$0xff]  }
 0x1e8   : > { %v9199_v44 = vpack.c.bf16 %v3219_v50, %v3218_v63  ;;  %v3058_v55 = vadd.f32 %v9136_v12, %v6242_v22  ;;  %6899 = vmatprep.mubr.msk.bf16.mxu0 %vm10838_vm5, %v9197_v21  ;;  %v9206_v3 = vsel %vm10943_vm12, %v3277_v20, %v3288_v41  ;;  %v3188_v23 = vadd.f32 %v9070_v36, %v3151_v24  ;;  %v7193_v63 = vld [vmem:[%s10358_s2 + $0x58] sm:$0xff]  }
 0x1e9   : > { %v6244_v35 = vpop.f32.mrf.mxu0  ;;  %6468 = vmatpush3.bf16.msra.mxu0 %v7189_v60  ;;  %6939 = vmatprep.subr.bf16.mxu1 %v7192_v28  ;;  %v3432_v50 = vor.u32 %v3430_v38, %v3283_v4  ;;  %v7202_v41 = vld [vmem:[%s10358_s2 + $0x1f8] sm:$0xff]   ;;  %v7195_v38 = vld [vmem:[%s10358_s2 + $0x50] sm:$0xff]  }
 0x1ea   : > { %10944 = vst [vmem:[#allocation40_spill] sm:$0xff] %v9199_v44  ;;  %v3152_v12 = vadd.f32 %v3058_v55, %v8992_v57  ;;  %v6245_v14 = vadd.f32 %v6244_v35, %v6243_v42  ;;  %5642 = vmatmul.mubr.msk.bf16.gmra.mxu1 %vm7844_vm11, %v9206_v3  ;;  %v3294_v20 = vshll.u32 %v9199_v44, 16  ;;  %6469 = vmatprep.subr.bf16.mxu0 %v7190_v51  ;;  %v3291_v60 = vshrl.u32 %v9199_v44, 16  ;;  %v7194_v35 = vld [vmem:[%s10358_s2 + $0x18] sm:$0xff]  }
 0x1eb   : > { %3808 = vmatprep.mubr.bf16.mxu1 %v9199_v44  ;;  %v6246_v17 = vpop.f32.mrf.mxu0  ;;  %6940 = vmatpush3.bf16.msra.mxu1 %v7192_v28  ;;  %v3220_v51 = vmax.f32 %v3188_v23, 0.0  ;;  %vm10973_vm11 = vsmask.f32 256 }
 0x1ec   : > { %v3189_v57 = vadd.f32 %v9070_v36, %v3152_v12  ;;  %v3063_v24 = vadd.f32 %v6245_v14, %v3062_v32  ;;  %v3433_v22 = vrot.slane %v3294_v20, 1  ;;  %6941 = vmatprep.subr.bf16.mxu1 %v7197_v26  ;;  %v3293_v55 = vrot.slane %v3291_v60, 7  ;;  %v3065_v32 = vpop.f32.mrf.mxu1 }
 0x1ed   : > { %v6247_v42 = vpop.f32.mrf.mxu0  ;;  %6470 = vmatpush3.bf16.msra.mxu0 %v7191_v15 }
 0x1ee   : > { %v3221_v44 = vmax.f32 %v3189_v57, 0.0  ;;  %v3153_v28 = vadd.f32 %v3063_v24, %v9004_v34  ;;  %v6248_v12 = vadd.f32 %v6247_v42, %v6246_v17  ;;  %v9236_v4 = vsel %vm10941_vm8, %v3432_v50, %v3433_v22  ;;  %6471 = vmatprep.subr.bf16.mxu0 %v7193_v63 }
 0x1ef   : > { %v6249_v23 = vpop.f32.mrf.mxu0  ;;  %6900 = vmatmul.mubr.msk.bf16.gmra.mxu0 %vm10840_vm1, %v9236_v4  ;;  %v3296_v15 = vor.u32 %v3294_v20, %v3293_v55  ;;  %6942 = vmatpush3.bf16.msra.mxu1 %v7197_v26  ;;  %v2552_v34 = vadd.f32 %v9008_v40, %v8946_v1  ;;  %v7196_v20 = vld [vmem:[%s10358_s2 + $0x10] sm:$0xff]  }
 0x1f0   : > { %v9246_v14 = vpack.c.bf16 %v3221_v44, %v3220_v51  ;;  %v3066_v17 = vadd.f32 %v6248_v12, %v3065_v32  ;;  %6599 = vmatprep.subr.bf16.mxu1 %v7202_v41  ;;  %v3190_v63 = vadd.f32 %v9070_v36, %v3153_v28  ;;  %v7198_v44 = vld [vmem:[%s10358_s2 + $0x48] sm:$0xff]   ;;  %v9264_v41 = vpop.f32.mrf.mxu1 }
 0x1f1   : > { %v6250_v57 = vpop.f32.mrf.mxu0  ;;  %v9251_v50 = vsel %vm10943_vm12, %v9183_v45, %v3296_v15  ;;  %6472 = vmatpush3.bf16.msra.mxu0 %v7194_v35  ;;  %v7199_v15 = vld [vmem:[%s10358_s2 + $0x8] sm:$0xff]  }
 0x1f2   : > { %10945 = vst [vmem:[#allocation42_spill] sm:$0xff] %v9246_v14  ;;  %10946 = vst [vmem:[#allocation5_spill] sm:$0xff] %v9251_v50  ;;  %v3154_v26 = vadd.f32 %v3066_v17, %v2552_v34  ;;  %v6251_v24 = vadd.f32 %v6250_v57, %v6249_v23  ;;  %5644 = vmatmul.mubr.msk.bf16.gmra.mxu1 %vm10878_vm7, %v9251_v50  ;;  %v3299_v40 = vshrl.u32 %v9246_v14, 16  ;;  %6473 = vmatprep.subr.bf16.mxu0 %v7195_v38  ;;  %vm10964_vm7 = vsmask.f32 256 }
 0x1f3   : > { %3816 = vmatprep.mubr.bf16.mxu1 %v9246_v14  ;;  %v6252_v45 = vpop.f32.mrf.mxu0  ;;  %v3302_v51 = vshll.u32 %v9246_v14, 16  ;;  %v3222_v12 = vmax.f32 %v3190_v63, 0.0  ;;  %v3435_v23 = vor.u32 %v3433_v22, %v3291_v60 }
 0x1f4   : > { %v3191_v42 = vadd.f32 %v9070_v36, %v3154_v26  ;;  %v3071_v35 = vadd.f32 %v9178_v2, %v6251_v24  ;;  %v3301_v28 = vrot.slane %v3299_v40, 7  ;;  %v7200_v2 = vld [vmem:[%s10358_s2 + $0x40] sm:$0xff]   ;;  %v3078_v26 = vpop.f32.mrf.mxu1 }
 0x1f5   : > { %v6253_v32 = vpop.f32.mrf.mxu0  ;;  %v3436_v38 = vrot.slane %v3302_v51, 1  ;;  %6474 = vmatpush3.bf16.msra.mxu0 %v7196_v20 }
 0x1f6   : > { %v3223_v34 = vmax.f32 %v3191_v42, 0.0  ;;  %v3155_v17 = vadd.f32 %v3071_v35, %v8999_v25  ;;  %v6254_v57 = vadd.f32 %v6253_v32, %v6252_v45  ;;  %v3304_v1 = vor.u32 %v3302_v51, %v3301_v28  ;;  %6475 = vmatprep.subr.bf16.mxu0 %v7198_v44  ;;  %v7201_v51 = vld [vmem:[%s10358_s2] sm:$0xff]  }
 0x1f7   : > { %v6255_v63 = vpop.f32.mrf.mxu0  ;;  %v9277_v60 = vsel %vm10941_vm8, %v3435_v23, %v3436_v38 }
 0x1f8   : > { %v9279_v22 = vpack.c.bf16 %v3223_v34, %v3222_v12  ;;  %v3074_v20 = vadd.f32 %v9223_v19, %v6254_v57  ;;  %6903 = vmatprep.mubr.msk.bf16.mxu0 %vm10844_vm9, %v9277_v60  ;;  %v9286_v25 = vsel %vm10943_vm12, %v3293_v55, %v3304_v1  ;;  %v3192_v44 = vadd.f32 %v9070_v36, %v3155_v17  ;;  %v9300_v55 = vld [vmem:[%s10358_s2 + $0x238] sm:$0xff]   ;;  %v6866_v1 = vpop.f32.mrf.mxu1 }
 0x1f9   : > { %10950 = vst [vmem:[#allocation18_spill] sm:$0xff] %v9286_v25  ;;  %v6256_v45 = vpop.f32.mrf.mxu0  ;;  %6476 = vmatpush3.bf16.msra.mxu0 %v7199_v15  ;;  %v3438_v15 = vor.u32 %v3436_v38, %v3299_v40  ;;  %v10954_v38 = vld [vmem:[#allocation15_spill] sm:$0xff] }
 0x1fa   : > { %10948 = vst [vmem:[#allocation46_spill] sm:$0xff] %v9279_v22  ;;  %v3156_v42 = vadd.f32 %v3074_v20, %v9006_v47  ;;  %v6257_v35 = vadd.f32 %v6256_v45, %v6255_v63  ;;  %5646 = vmatmul.mubr.msk.bf16.gmra.mxu1 %vm10880_vm0, %v9286_v25  ;;  %v3310_v12 = vshll.u32 %v9279_v22, 16  ;;  %6477 = vmatprep.subr.bf16.mxu0 %v7200_v2  ;;  %v3307_v23 = vshrl.u32 %v9279_v22, 16  ;;  %v3081_v14 = vpop.f32.mrf.mxu1 }
 0x1fb   : > { %3824 = vmatprep.mubr.bf16.mxu1 %v9279_v22  ;;  %v6258_v32 = vpop.f32.mrf.mxu0  ;;  %v3224_v57 = vmax.f32 %v3192_v44, 0.0 }
 0x1fc   : > { %v3193_v47 = vadd.f32 %v9070_v36, %v3156_v42  ;;  %v3079_v34 = vadd.f32 %v6257_v35, %v3078_v26  ;;  %v3439_v17 = vrot.slane %v3310_v12, 1  ;;  %v3309_v20 = vrot.slane %v3307_v23, 7  ;;  %v10952_v42 = vld [vmem:[#allocation14_spill] sm:$0xff] }
 0x1fd   : > { %v6259_v63 = vpop.f32.mrf.mxu0  ;;  %6478 = vmatpush3.bf16.msra.mxu0 %v7201_v51  ;;  %vm10953_vm12 = vnez %v10952_v42  ;;  %v2568_v26 = vadd.f32 %v9023_v6, %v10954_v38 }
 0x1fe   : > { %v3225_v2 = vmax.f32 %v3193_v47, 0.0  ;;  %v3157_v45 = vadd.f32 %v3079_v34, %v9014_v62  ;;  %v6260_v19 = vadd.f32 %v6259_v63, %v6258_v32  ;;  %v9307_v25 = vsel %vm10941_vm8, %v3438_v15, %v3439_v17  ;;  %6975 = vmatprep.subr.bf16.mxu0 %v9300_v55  ;;  %v10958_v34 = vld [vmem:[#allocation39_spill] sm:$0xff] }
 0x1ff   : > { %v6261_v22 = vpop.f32.mrf.mxu0  ;;  %6904 = vmatmul.mubr.msk.bf16.gmra.mxu0 %vm10953_vm12, %v9307_v25  ;;  %v3312_v40 = vor.u32 %v3310_v12, %v3309_v20  ;;  %vm10956_vm8 = vsmask.f32 256  ;;  %vm10959_vm0 = vnez %v10958_v34 }
 0x200   : > { %v9315_v44 = vpack.c.bf16 %v3225_v2, %v3224_v57  ;;  %v3082_v51 = vadd.f32 %v6260_v19, %v3081_v14  ;;  %v3194_v62 = vadd.f32 %v9070_v36, %v3157_v45  ;;  %v6869_v57 = vpop.f32.mrf.mxu1 }
 0x201   : > { %v6262_v35 = vpop.f32.mrf.mxu0  ;;  %v9319_v32 = vsel %vm10956_vm8, %v3301_v28, %v3312_v40  ;;  %vm10960_vm8 = vsmask.f32 7424 }
 0x202   : > { %10955 = vst [vmem:[#allocation54_spill] sm:$0xff] %v9315_v44  ;;  %10957 = vst [vmem:[#allocation22_spill] sm:$0xff] %v9319_v32  ;;  %v3158_v47 = vadd.f32 %v3082_v51, %v2568_v26  ;;  %v6263_v15 = vadd.f32 %v6262_v35, %v6261_v22  ;;  %5648 = vmatmul.mubr.msk.bf16.gmra.mxu1 %vm10959_vm0, %v9319_v32  ;;  %v3315_v12 = vshrl.u32 %v9315_v44, 16  ;;  %v3318_v14 = vshll.u32 %v9315_v44, 16  ;;  %v3094_v34 = vpop.f32.mrf.mxu1 }
 0x203   : > { %3832 = vmatprep.mubr.bf16.mxu1 %v9315_v44  ;;  %v6264_v6 = vpop.f32.mrf.mxu0  ;;  %v3226_v2 = vmax.f32 %v3194_v62, 0.0  ;;  %v3441_v22 = vor.u32 %v3439_v17, %v3307_v23 }
 0x204   : > { %v3195_v19 = vadd.f32 %v9070_v36, %v3158_v47  ;;  %v3087_v63 = vadd.f32 %v9264_v41, %v6263_v15  ;;  %v3317_v28 = vrot.slane %v3315_v12, 7  ;;  %v3442_v40 = vrot.slane %v3318_v14, 1  ;;  %v10962_v41 = vld [vmem:[#allocation17_spill] sm:$0xff] }
 0x205   : > { %v6265_v45 = vpop.f32.mrf.mxu0  ;;  %vm10963_vm0 = vnez %v10962_v41 }
 0x206   : > { %v3227_v38 = vmax.f32 %v3195_v19, 0.0  ;;  %v3159_v26 = vadd.f32 %v3087_v63, %v9011_v59  ;;  %v6266_v51 = vadd.f32 %v6265_v45, %v6264_v6  ;;  %v3320_v35 = vor.u32 %v3318_v14, %v3317_v28  ;;  %v10966_v6 = vld [vmem:[#allocation45_spill] sm:$0xff] }
 0x207   : > { %v6267_v32 = vpop.f32.mrf.mxu0  ;;  %v9331_v50 = vsel %vm10960_vm8, %v3441_v22, %v3442_v40  ;;  %vm10967_vm8 = vnez %v10966_v6 }
 0x208   : > { %v9333_v44 = vpack.c.bf16 %v3227_v38, %v3226_v2  ;;  %v3090_v47 = vadd.f32 %v6866_v1, %v6266_v51  ;;  %6907 = vmatprep.mubr.msk.bf16.mxu0 %vm10963_vm0, %v9331_v50  ;;  %v9339_v23 = vsel %vm10964_vm7, %v3309_v20, %v3320_v35  ;;  %v3196_v17 = vadd.f32 %v9070_v36, %v3159_v26  ;;  %v6870_v1 = vpop.f32.mrf.mxu1 }
 0x209   : > { %10965 = vst [vmem:[#allocation25_spill] sm:$0xff] %v9339_v23  ;;  %v6268_v59 = vpop.f32.mrf.mxu0  ;;  %v3444_v2 = vor.u32 %v3442_v40, %v3315_v12  ;;  %vm10968_vm7 = vsmask.f32 7424  ;;  %v10971_v12 = vld [vmem:[#allocation20_spill] sm:$0xff] }
 0x20a   : > { %10961 = vst [vmem:[#allocation56_spill] sm:$0xff] %v9333_v44  ;;  %v3160_v62 = vadd.f32 %v3090_v47, %v9021_v52  ;;  %v6269_v15 = vadd.f32 %v6268_v59, %v6267_v32  ;;  %5650 = vmatmul.mubr.msk.bf16.gmra.mxu1 %vm10967_vm8, %v9339_v23  ;;  %v3326_v14 = vshll.u32 %v9333_v44, 16  ;;  %v3323_v63 = vshrl.u32 %v9333_v44, 16  ;;  %v3097_v59 = vpop.f32.mrf.mxu1  ;;  %v10969_v23 = vld [vmem:[#allocation21_spill] sm:$0xff] }
 0x20b   : > { %3840 = vmatprep.mubr.bf16.mxu1 %v9333_v44  ;;  %v6270_v19 = vpop.f32.mrf.mxu0  ;;  %v3228_v38 = vmax.f32 %v3196_v17, 0.0  ;;  %vm10970_vm8 = vnez %v10969_v23 }
 0x20c   : > { %v3197_v20 = vadd.f32 %v9070_v36, %v3160_v62  ;;  %v3095_v45 = vadd.f32 %v6269_v15, %v3094_v34  ;;  %v3445_v22 = vrot.slane %v3326_v14, 1  ;;  %v3325_v32 = vrot.slane %v3323_v63, 7 }
 0x20d   : > { %v6271_v52 = vpop.f32.mrf.mxu0  ;;  %v2584_v34 = vadd.f32 %v9035_v9, %v10971_v12 }
 0x20e   : > { %v3229_v26 = vmax.f32 %v3197_v20, 0.0  ;;  %v3161_v51 = vadd.f32 %v3095_v45, %v9031_v58  ;;  %v6272_v35 = vadd.f32 %v6271_v52, %v6270_v19  ;;  %v9352_v47 = vsel %vm10968_vm7, %v3444_v2, %v3445_v22 }
 0x20f   : > { %v6273_v6 = vpop.f32.mrf.mxu0  ;;  %6908 = vmatmul.mubr.msk.bf16.gmra.mxu0 %vm10970_vm8, %v9352_v47  ;;  %v3328_v62 = vor.u32 %v3326_v14, %v3325_v32 }
 0x210   : > { %v9359_v40 = vpack.c.bf16 %v3229_v26, %v3228_v38  ;;  %v3098_v17 = vadd.f32 %v6272_v35, %v3097_v59  ;;  %v3198_v15 = vadd.f32 %v9070_v36, %v3161_v51  ;;  %v6873_v38 = vpop.f32.mrf.mxu1 }
 0x211   : > { %v6274_v58 = vpop.f32.mrf.mxu0  ;;  %v9363_v19 = vsel %vm10973_vm11, %v3317_v28, %v3328_v62  ;;  %v3447_v62 = vor.u32 %v3445_v22, %v3323_v63  ;;  %vm10976_vm11 = vmmov %vm10968_vm7 }
 0x212   : > { %10972 = vst [vmem:[#allocation58_spill] sm:$0xff] %v9359_v40  ;;  %10974 = vst [vmem:[#allocation28_spill] sm:$0xff] %v9363_v19  ;;  %v3162_v20 = vadd.f32 %v3098_v17, %v2584_v34  ;;  %v6275_v2 = vadd.f32 %v6274_v58, %v6273_v6  ;;  %5652 = vmatmul.mubr.msk.bf16.gmra.mxu1 %vm10896_vm14, %v9363_v19  ;;  %v3331_v14 = vshrl.u32 %v9359_v40, 16  ;;  %v3334_v52 = vshll.u32 %v9359_v40, 16  ;;  %v3110_v45 = vpop.f32.mrf.mxu1 }
 0x213   : > { %3848 = vmatprep.mubr.bf16.mxu1 %v9359_v40  ;;  %v6276_v9 = vpop.f32.mrf.mxu0  ;;  %v3230_v28 = vmax.f32 %v3198_v15, 0.0  ;;  %vm10980_vm14 = vsmask.f32 256 }
 0x214   : > { %v3199_v26 = vadd.f32 %v9070_v36, %v3162_v20  ;;  %v3103_v51 = vadd.f32 %v6869_v57, %v6275_v2  ;;  %v3333_v35 = vrot.slane %v3331_v14, 7  ;;  %v3448_v6 = vrot.slane %v3334_v52, 1  ;;  %v10978_v57 = vld [vmem:[#allocation24_spill] sm:$0xff]  ;;  %v10983_v2 = vld [vmem:[#allocation29_spill] sm:$0xff] }
 0x215   : > { %v6277_v59 = vpop.f32.mrf.mxu0  ;;  %vm10979_vm7 = vnez %v10978_v57 }
 0x216   : > { %v3231_v12 = vmax.f32 %v3199_v26, 0.0  ;;  %v3163_v34 = vadd.f32 %v3103_v51, %v9027_v54  ;;  %v6278_v17 = vadd.f32 %v6277_v59, %v6276_v9  ;;  %v3336_v58 = vor.u32 %v3334_v52, %v3333_v35 }
 0x217   : > { %v6279_v19 = vpop.f32.mrf.mxu0  ;;  %v9374_v44 = vsel %vm10976_vm11, %v3447_v62, %v3448_v6  ;;  %v3450_v51 = vor.u32 %v3448_v6, %v3331_v14 }
 0x218   : > { %v9376_v0 = vpack.c.bf16 %v3231_v12, %v3230_v28  ;;  %v3106_v40 = vadd.f32 %v6870_v1, %v6278_v17  ;;  %6911 = vmatprep.mubr.msk.bf16.mxu0 %vm10979_vm7, %v9374_v44  ;;  %v9382_v63 = vsel %vm10980_vm14, %v3325_v32, %v3336_v58  ;;  %v3200_v22 = vadd.f32 %v9070_v36, %v3163_v34  ;;  %v6874_v1 = vpop.f32.mrf.mxu1  ;;  %vm10982_vm14 = vmmov %vm10976_vm11 }
 0x219   : > { %v6280_v54 = vpop.f32.mrf.mxu0  ;;  %vm10984_vm11 = vnez %v10983_v2 }
 0x21a   : > { %10977 = vst [vmem:[#allocation60_spill] sm:$0xff] %v9376_v0  ;;  %v3164_v15 = vadd.f32 %v3106_v40, %v9033_v10  ;;  %v6281_v20 = vadd.f32 %v6280_v54, %v6279_v19  ;;  %5654 = vmatmul.mubr.msk.bf16.gmra.mxu1 %vm10898_vm15, %v9382_v63  ;;  %v3342_v9 = vshll.u32 %v9376_v0, 16  ;;  %v3339_v26 = vshrl.u32 %v9376_v0, 16  ;;  %v3113_v58 = vpop.f32.mrf.mxu1 }
 0x21b   : > { %3856 = vmatprep.mubr.bf16.mxu1 %v9376_v0  ;;  %v6282_v52 = vpop.f32.mrf.mxu0  ;;  %v3232_v62 = vmax.f32 %v3200_v22, 0.0  ;;  %vm10986_vm15 = vsmask.f32 256 }
 0x21c   : > { %v3201_v32 = vadd.f32 %v9070_v36, %v3164_v15  ;;  %v3111_v28 = vadd.f32 %v6281_v20, %v3110_v45  ;;  %v3451_v59 = vrot.slane %v3342_v9, 1  ;;  %v3341_v40 = vrot.slane %v3339_v26, 7 }
 0x21d   : > { %v6283_v10 = vpop.f32.mrf.mxu0  ;;  %v2600_v45 = vadd.f32 %v9047_v11, %v9029_v30  ;;  %v6877_v11 = vpop.f32.mrf.mxu1 }
 0x21e   : > { %v3233_v19 = vmax.f32 %v3201_v32, 0.0  ;;  %v3165_v12 = vadd.f32 %v3111_v28, %v9041_v48  ;;  %v6284_v34 = vadd.f32 %v6283_v10, %v6282_v52  ;;  %v9395_v17 = vsel %vm10982_vm14, %v3450_v51, %v3451_v59 }
 0x21f   : > { %v6285_v54 = vpop.f32.mrf.mxu0  ;;  %6912 = vmatmul.mubr.msk.bf16.gmra.mxu0 %vm10984_vm11, %v9395_v17  ;;  %v3344_v15 = vor.u32 %v3342_v9, %v3341_v40 }
 0x220   : > { %v9402_v14 = vpack.c.bf16 %v3233_v19, %v3232_v62  ;;  %v3114_v6 = vadd.f32 %v6284_v34, %v3113_v58  ;;  %v3202_v22 = vadd.f32 %v9070_v36, %v3165_v12  ;;  %v3453_v34 = vor.u32 %v3451_v59, %v3339_v26 }
 0x221   : > { %v6286_v48 = vpop.f32.mrf.mxu0  ;;  %v9406_v20 = vsel %vm10986_vm15, %v3333_v35, %v3344_v15  ;;  %vm10989_vm15 = vmmov %vm10982_vm14 }
 0x222   : > { %10985 = vst [vmem:[#allocation32_spill] sm:$0xff] %v9402_v14  ;;  %10987 = vst [vmem:[#allocation62_spill] sm:$0xff] %v9406_v20  ;;  %v3166_v52 = vadd.f32 %v3114_v6, %v2600_v45  ;;  %v6287_v32 = vadd.f32 %v6286_v48, %v6285_v54  ;;  %5656 = vmatmul.mubr.msk.bf16.gmra.mxu1 %vm10902_vm10, %v9406_v20  ;;  %v3347_v9 = vshrl.u32 %v9402_v14, 16  ;;  %v3350_v28 = vshll.u32 %v9402_v14, 16  ;;  %v3126_v48 = vpop.f32.mrf.mxu1 }
 0x223   : > { %3864 = vmatprep.mubr.bf16.mxu1 %v9402_v14  ;;  %v6288_v30 = vpop.f32.mrf.mxu0  ;;  %v3234_v35 = vmax.f32 %v3202_v22, 0.0  ;;  %vm10993_vm10 = vsmask.f32 256 }
 0x224   : > { %v3203_v62 = vadd.f32 %v9070_v36, %v3166_v52  ;;  %v3119_v10 = vadd.f32 %v6873_v38, %v6287_v32  ;;  %v3349_v19 = vrot.slane %v3347_v9, 7  ;;  %v3454_v58 = vrot.slane %v3350_v28, 1  ;;  %v10991_v38 = vld [vmem:[#allocation31_spill] sm:$0xff] }
 0x225   : > { %v6289_v12 = vpop.f32.mrf.mxu0  ;;  %vm10992_vm14 = vnez %v10991_v38  ;;  %v10996_v32 = vld [vmem:[#allocation35_spill] sm:$0xff] }
 0x226   : > { %v3235_v54 = vmax.f32 %v3203_v62, 0.0  ;;  %v3167_v15 = vadd.f32 %v3119_v10, %v9038_v56  ;;  %v6290_v45 = vadd.f32 %v6289_v12, %v6288_v30  ;;  %v3352_v6 = vor.u32 %v3350_v28, %v3349_v19 }
 0x227   : > { %v6291_v51 = vpop.f32.mrf.mxu0  ;;  %v9417_v20 = vsel %vm10989_vm15, %v3453_v34, %v3454_v58  ;;  %v3456_v10 = vor.u32 %v3454_v58, %v3347_v9  ;;  %v10998_v9 = vld [vmem:[#allocation23_spill] sm:$0xff] }
 0x228   : > { %v9419_v0 = vpack.c.bf16 %v3235_v54, %v3234_v35  ;;  %v3122_v14 = vadd.f32 %v6874_v1, %v6290_v45  ;;  %6915 = vmatprep.mubr.msk.bf16.mxu0 %vm10992_vm14, %v9417_v20  ;;  %v9425_v26 = vsel %vm10993_vm10, %v3341_v40, %v3352_v6  ;;  %v3204_v59 = vadd.f32 %v9070_v36, %v3167_v15  ;;  %v6878_v1 = vpop.f32.mrf.mxu1  ;;  %vm10995_vm10 = vmmov %vm10989_vm15 }
 0x229   : > { %v6292_v56 = vpop.f32.mrf.mxu0  ;;  %vm10997_vm15 = vnez %v10996_v32  ;;  %v2616_v58 = vadd.f32 %v9059_v61, %v10998_v9  ;;  %v11004_v9 = vld [vmem:[#allocation27_spill] sm:$0xff] }
 0x22a   : > { %10990 = vst [vmem:[#allocation36_spill] sm:$0xff] %v9419_v0  ;;  %v3168_v22 = vadd.f32 %v3122_v14, %v9045_v43  ;;  %v6293_v52 = vadd.f32 %v6292_v56, %v6291_v51  ;;  %5658 = vmatmul.mubr.msk.bf16.gmra.mxu1 %vm10906_vm6, %v9425_v26  ;;  %v3358_v30 = vshll.u32 %v9419_v0, 16  ;;  %v3355_v62 = vshrl.u32 %v9419_v0, 16  ;;  %v3129_v6 = vpop.f32.mrf.mxu1 }
 0x22b   : > { %3872 = vmatprep.mubr.bf16.mxu1 %v9419_v0  ;;  %v6294_v28 = vpop.f32.mrf.mxu0  ;;  %v3236_v34 = vmax.f32 %v3204_v59, 0.0  ;;  %vm11000_vm6 = vsmask.f32 256 }
 0x22c   : > { %v3205_v40 = vadd.f32 %v9070_v36, %v3168_v22  ;;  %v3127_v35 = vadd.f32 %v6293_v52, %v3126_v48  ;;  %v3457_v12 = vrot.slane %v3358_v30, 1  ;;  %v3357_v14 = vrot.slane %v3355_v62, 7 }
 0x22d   : > { %v6295_v43 = vpop.f32.mrf.mxu0 }
 0x22e   : > { %v3237_v51 = vmax.f32 %v3205_v40, 0.0  ;;  %v3169_v54 = vadd.f32 %v3127_v35, %v9053_v13  ;;  %v6296_v15 = vadd.f32 %v6295_v43, %v6294_v28  ;;  %v9438_v45 = vsel %vm10995_vm10, %v3456_v10, %v3457_v12  ;;  %v11002_v35 = vld [vmem:[#allocation57_spill] sm:$0xff] }
 0x22f   : > { %v6297_v56 = vpop.f32.mrf.mxu0  ;;  %6916 = vmatmul.mubr.msk.bf16.gmra.mxu0 %vm10997_vm15, %v9438_v45  ;;  %v3360_v22 = vor.u32 %v3358_v30, %v3357_v14  ;;  %vm11003_vm10 = vnez %v11002_v35  ;;  %vm11008_vm15 = vsmask.f32 256 }
 0x230   : > { %v9445_v48 = vpack.c.bf16 %v3237_v51, %v3236_v34  ;;  %v3130_v59 = vadd.f32 %v6296_v15, %v3129_v6  ;;  %v3206_v52 = vadd.f32 %v9070_v36, %v3169_v54  ;;  %v3459_v6 = vor.u32 %v3457_v12, %v3355_v62  ;;  %v11009_v12 = vld [vmem:[#allocation30_spill] sm:$0xff] }
 0x231   : > { %v6298_v13 = vpop.f32.mrf.mxu0  ;;  %v9449_v28 = vsel %vm11000_vm6, %v3349_v19, %v3360_v22  ;;  %vm11005_vm6 = vsmask.f32 7424 }
 0x232   : > { %10999 = vst [vmem:[#allocation65_spill] sm:$0xff] %v9445_v48  ;;  %11001 = vst [vmem:[#allocation53_spill] sm:$0xff] %v9449_v28  ;;  %v3170_v40 = vadd.f32 %v3130_v59, %v2616_v58  ;;  %v6299_v10 = vadd.f32 %v6298_v13, %v6297_v56  ;;  %5660 = vmatmul.mubr.msk.bf16.gmra.mxu1 %vm11003_vm10, %v9449_v28  ;;  %v3363_v30 = vshrl.u32 %v9445_v48, 16  ;;  %v3366_v34 = vshll.u32 %v9445_v48, 16 }
 0x233   : > { %3880 = vmatprep.mubr.bf16.mxu1 %v9445_v48  ;;  %v6300_v61 = vpop.f32.mrf.mxu0  ;;  %v3238_v15 = vmax.f32 %v3206_v52, 0.0  ;;  %v11006_v48 = vld [vmem:[#allocation38_spill] sm:$0xff] }
 0x234   : > { %v3207_v43 = vadd.f32 %v9070_v36, %v3170_v40  ;;  %v3135_v51 = vadd.f32 %v6877_v11, %v6299_v10  ;;  %v3365_v54 = vrot.slane %v3363_v30, 7  ;;  %v3460_v22 = vrot.slane %v3366_v34, 1  ;;  %v11010_v40 = vld [vmem:[#allocation59_spill] sm:$0xff] }
 0x235   : > { %v6301_v19 = vpop.f32.mrf.mxu0  ;;  %vm11007_vm10 = vnez %v11006_v48  ;;  %vm11011_vm14 = vnez %v11010_v40 }
 0x236   : > { %v3239_v56 = vmax.f32 %v3207_v43, 0.0  ;;  %v3171_v58 = vadd.f32 %v3135_v51, %v11004_v9  ;;  %v6302_v59 = vadd.f32 %v6301_v19, %v6300_v61  ;;  %v3368_v13 = vor.u32 %v3366_v34, %v3365_v54 }
 0x237   : > { %v9460_v35 = vsel %vm11005_vm6, %v3459_v6, %v3460_v22  ;;  %v3462_v34 = vor.u32 %v3460_v22, %v3363_v30  ;;  %v11014_v6 = vld [vmem:[#allocation41_spill] sm:$0xff] }
 0x238   : > { %v9462_v28 = vpack.c.bf16 %v3239_v56, %v3238_v15  ;;  %v3138_v0 = vadd.f32 %v6878_v1, %v6302_v59  ;;  %6919 = vmatprep.mubr.msk.bf16.mxu0 %vm11007_vm10, %v9460_v35  ;;  %v9468_v11 = vsel %vm11008_vm15, %v3357_v14, %v3368_v13  ;;  %v3208_v62 = vadd.f32 %v9070_v36, %v3171_v58  ;;  %vm11012_vm15 = vmmov %vm11005_vm6 }
 0x239   : > { %vm11015_vm6 = vnez %v11014_v6 }
 0x23a   : > { %v3172_v52 = vadd.f32 %v3138_v0, %v11009_v12  ;;  %5662 = vmatmul.mubr.msk.bf16.gmra.mxu1 %vm11011_vm14, %v9468_v11  ;;  %v3374_v10 = vshll.u32 %v9462_v28, 16  ;;  %v3371_v61 = vshrl.u32 %v9462_v28, 16  ;;  %v3240_v51 = vmax.f32 %v3208_v62, 0.0 }
 0x23b   : > { %3888 = vmatprep.mubr.bf16.mxu1 %v9462_v28  ;;  %vm11016_vm14 = vsmask.f32 256 }
 0x23c   : > { %v3209_v1 = vadd.f32 %v9070_v36, %v3172_v52  ;;  %v3463_v43 = vrot.slane %v3374_v10, 1  ;;  %v3373_v14 = vrot.slane %v3371_v61, 7  ;;  %v11018_v36 = vld [vmem:[#allocation61_spill] sm:$0xff]  ;;  %v11022_v52 = vld [vmem:[#allocation44_spill] sm:$0xff] }
 0x23d   : > { %vm11019_vm10 = vnez %v11018_v36 }
 0x23e   : > { %v3241_v15 = vmax.f32 %v3209_v1, 0.0  ;;  %v9480_v19 = vsel %vm11012_vm15, %v3462_v34, %v3463_v43  ;;  %v3376_v0 = vor.u32 %v3374_v10, %v3373_v14  ;;  %v3465_v58 = vor.u32 %v3463_v43, %v3371_v61  ;;  %v11026_v1 = vld [vmem:[#allocation43_spill] sm:$0xff] }
 0x23f   : > { %11013 = vst [vmem:[#allocation8_spill] sm:$0xff] %v9480_v19  ;;  %6920 = vmatmul.mubr.msk.bf16.gmra.mxu0 %vm11015_vm6, %v9480_v19  ;;  %vm11027_vm6 = vmmov %vm11012_vm15  ;;  %v11029_v61 = vld [vmem:[#allocation47_spill] sm:$0xff] }
 0x240   : > { %v9486_v56 = vsel %vm11016_vm14, %v3365_v54, %v3376_v0  ;;  %v9488_v9 = vpack.c.bf16 %v3241_v15, %v3240_v51  ;;  %vm11023_vm14 = vnez %v11022_v52  ;;  %vm11030_vm11 = vnez %v11029_v61  ;;  %v11031_v43 = vld [vmem:[#allocation63_spill] sm:$0xff]  ;;  %vm11033_vm7 = vmmov %vm11027_vm6  ;;  %v7203_v0 = vld [vmem:[%s10358_s2 + $0x1b8] sm:$0xff]  }
 0x241   : > { %v3422_v51 = vsel %vm11033_vm7, %v11026_v1, %v9101_v27  ;;  %v11034_v15 = vmov 0   ;;  %v7209_v27 = vld [vmem:[%s10358_s2 + $0x230] sm:$0xff]   ;;  %v11070_v52 = vld [vmem:[#allocation28_spill] sm:$0xff] }
 0x242   : > { %11017 = vst [vmem:[#allocation7_spill] sm:$0xff] %v9488_v9  ;;  %5664 = vmatmul.mubr.msk.bf16.gmra.mxu1 %vm11019_vm10, %v9486_v56  ;;  %v3379_v30 = vshrl.u32 %v9488_v9, 16  ;;  %v3382_v22 = vshll.u32 %v9488_v9, 16  ;;  %vm11024_vm10 = vsmask.f32 256 }
 0x243   : > { %3896 = vmatprep.mubr.bf16.mxu1 %v9488_v9 }
 0x244   : > { %v3466_v59 = vrot.slane %v3382_v22, 1  ;;  %v9496_v13 = vrot.slane %v3379_v30, 7 }
 0x246   : > { %11020 = vst [vmem:[#allocation9_spill] sm:$0xff] %v9496_v13  ;;  %v9499_v62 = vsel %vm11012_vm15, %v3465_v58, %v3466_v59  ;;  %v3468_v54 = vor.u32 %v3466_v59, %v3379_v30  ;;  %v3384_v12 = vor.u32 %v3382_v22, %v9496_v13  ;;  %vm11032_vm15 = vnez %v11031_v43  ;;  %v7205_v30 = vld [vmem:[%s10358_s2 + $0x1f0] sm:$0xff]   ;;  %v11037_v22 = vld [vmem:[#allocation49_spill] sm:$0xff]  ;;  %v11038_v58 = vld [vmem:[#allocation50_spill] sm:$0xff] }
 0x247   : > { %11021 = vst [vmem:[#allocation12_spill] sm:$0xff] %v9499_v62  ;;  %6923 = vmatprep.mubr.msk.bf16.mxu0 %vm11023_vm14, %v9499_v62  ;;  %v7206_v59 = vld [vmem:[%s10358_s2 + $0x1b0] sm:$0xff]   ;;  %v11068_v13 = vld [vmem:[#allocation56_spill] sm:$0xff] }
 0x248   : > { %v9506_v10 = vsel %vm11024_vm10, %v3373_v14, %v3384_v12  ;;  %v9510_v34 = vsel %vm11027_vm6, %v3468_v54, %v11026_v1  ;;  %v11035_v14 = vld [vmem:[#allocation64_spill] sm:$0xff]  ;;  %vm11039_vm6 = vnez %v11038_v58  ;;  %v7207_v54 = vld [vmem:[%s10358_s2 + $0x1e8] sm:$0xff]   ;;  %v7216_v58 = vld [vmem:[%s10358_s2 + $0x190] sm:$0xff]  }
 0x249   : > { %11025 = vst [vmem:[#allocation14_spill] sm:$0xff] %v9506_v10  ;;  %11028 = vst [vmem:[#allocation15_spill] sm:$0xff] %v9510_v34  ;;  %6924 = vmatmul.mubr.msk.bf16.gmra.mxu0 %vm11030_vm11, %v9510_v34  ;;  %vm11036_vm10 = vnez %v11035_v14  ;;  %v7222_v12 = vld [vmem:[%s10358_s2 + $0x218] sm:$0xff]   ;;  %v11041_v14 = vld [vmem:[#allocation37_spill] sm:$0xff]  ;;  %vm11052_vm11 = vnez %v10991_v38 }
 0x24a   : > { %5666 = vmatmul.mubr.msk.bf16.gmra.mxu1 %vm11032_vm15, %v9506_v10  ;;  %4242 = vmatprep.mubr.bf16.mxu0 %v11034_v15  ;;  %v7213_v1 = vld [vmem:[%s10358_s2 + $0x198] sm:$0xff]   ;;  %vm11054_vm15 = vnez %v10996_v32 }
 0x24b   : > { %6943 = vmatprep.mubr.msk.bf16.mxu1 %vm11036_vm10, %v3422_v51  ;;  %v7215_v51 = vld [vmem:[%s10358_s2 + $0x1d0] sm:$0xff]   ;;  %vm11046_vm10 = vnez %v10978_v57  ;;  %v11102_v32 = vld [vmem:[#allocation8_spill] sm:$0xff] }
 0x251   : > { %5724 = vmatmul.mubr.msk.bf16.vlgmr.msra.gmra.mxu0 %vm11039_vm6, %v11037_v22  ;;  %v11043_v22 = vld [vmem:[#allocation34_spill] sm:$0xff]  ;;  %vm11048_vm6 = vnez %v10983_v2 }
 0x252   : > { %6944 = vmatmul.mubr.msk.bf16.vlgmr.msra.gmra.mxu1 %vm10937_vm13, %v9116_v29  ;;  %4250 = vmatprep.mubr.bf16.mxu0 %v9077_v49  ;;  %v7214_v29 = vld [vmem:[%s10358_s2 + $0x228] sm:$0xff]   ;;  %vm11040_vm13 = vnez %v10932_v46  ;;  %v7212_v46 = vld [vmem:[%s10358_s2 + $0x1d8] sm:$0xff]  }
 0x253   : > { %6947 = vmatprep.mubr.msk.bf16.mxu1 %vm10837_vm3, %v9151_v5  ;;  %6600 = vmatpush3.bf16.msra.mxu1 %v7203_v0  ;;  %v7208_v49 = vld [vmem:[%s10358_s2 + $0x1a8] sm:$0xff]  }
 0x254   : > { %6976 = vmatpush3.bf16.msra.mxu0 %v9300_v55  ;;  %6601 = vmatprep.subr.bf16.mxu1 %v7205_v30  ;;  %v7219_v55 = vld [vmem:[%s10358_s2 + $0x220] sm:$0xff]   ;;  %v7223_v30 = vld [vmem:[%s10358_s2 + $0x210] sm:$0xff]  }
 0x255   : > { %6977 = vmatprep.subr.bf16.mxu0 %v7209_v27 }
 0x257   : > { %6602 = vmatpush3.bf16.msra.mxu1 %v7206_v59  ;;  %v7224_v59 = vld [vmem:[%s10358_s2 + $0x208] sm:$0xff]  }
 0x258   : > { %6603 = vmatprep.subr.bf16.mxu1 %v7207_v54  ;;  %6978 = vmatpush3.bf16.msra.mxu0 %v7209_v27  ;;  %v7217_v27 = vld [vmem:[%s10358_s2 + $0x1c8] sm:$0xff]  }
 0x259   : > { %5726 = vmatmul.mubr.msk.bf16.gmra.mxu0 %vm11040_vm13, %v9095_v7  ;;  %6979 = vmatprep.subr.bf16.mxu0 %v7214_v29  ;;  %v7211_v7 = vld [vmem:[%s10358_s2 + $0x1a0] sm:$0xff]   ;;  %v7218_v54 = vld [vmem:[%s10358_s2 + $0x188] sm:$0xff]  }
 0x25a   : > { %6948 = vmatmul.mubr.msk.bf16.gmra.mxu1 %vm10838_vm5, %v9197_v21  ;;  %4258 = vmatprep.mubr.bf16.mxu0 %v9091_v39 }
 0x25b   : > { %6951 = vmatprep.mubr.msk.bf16.mxu1 %vm10840_vm1, %v9236_v4  ;;  %6604 = vmatpush3.bf16.msra.mxu1 %v7208_v49  ;;  %v7225_v49 = vld [vmem:[%s10358_s2 + $0x200] sm:$0xff]  }
 0x25c   : > { %6605 = vmatprep.subr.bf16.mxu1 %v7210_v16  ;;  %6980 = vmatpush3.bf16.msra.mxu0 %v7214_v29  ;;  %v7220_v29 = vld [vmem:[%s10358_s2 + $0x1c0] sm:$0xff]  }
 0x25d   : > { %6981 = vmatprep.subr.bf16.mxu0 %v7219_v55  ;;  %v7221_v16 = vld [vmem:[%s10358_s2 + $0x180] sm:$0xff]  }
 0x25f   : > { %6606 = vmatpush3.bf16.msra.mxu1 %v7211_v7  ;;  %v11047_v7 = vld [vmem:[#allocation40_spill] sm:$0xff] }
 0x260   : > { %6607 = vmatprep.subr.bf16.mxu1 %v7212_v46  ;;  %6982 = vmatpush3.bf16.msra.mxu0 %v7219_v55  ;;  %v11044_v55 = vld [vmem:[#allocation19_spill] sm:$0xff]  ;;  %v11049_v46 = vld [vmem:[#allocation5_spill] sm:$0xff] }
 0x261   : > { %5728 = vmatmul.mubr.msk.bf16.gmra.mxu0 %vm7672_vm4, %v11041_v14  ;;  %6983 = vmatprep.subr.bf16.mxu0 %v7222_v12  ;;  %vm11045_vm7 = vnez %v11044_v55 }
 0x262   : > { %6952 = vmatmul.mubr.msk.bf16.gmra.mxu1 %vm10844_vm9, %v9277_v60  ;;  %4266 = vmatprep.mubr.bf16.mxu0 %v11043_v22 }
 0x263   : > { %6955 = vmatprep.mubr.msk.bf16.mxu1 %vm10953_vm12, %v9307_v25  ;;  %6608 = vmatpush3.bf16.msra.mxu1 %v7213_v1  ;;  %v11053_v1 = vld [vmem:[#allocation42_spill] sm:$0xff] }
 0x264   : > { %6609 = vmatprep.subr.bf16.mxu1 %v7215_v51  ;;  %6984 = vmatpush3.bf16.msra.mxu0 %v7222_v12  ;;  %v11050_v12 = vld [vmem:[#allocation26_spill] sm:$0xff] }
 0x265   : > { %6985 = vmatprep.subr.bf16.mxu0 %v7223_v30  ;;  %vm11051_vm13 = vnez %v11050_v12  ;;  %v11055_v51 = vld [vmem:[#allocation18_spill] sm:$0xff] }
 0x267   : > { %6610 = vmatpush3.bf16.msra.mxu1 %v7216_v58  ;;  %v11059_v58 = vld [vmem:[#allocation46_spill] sm:$0xff] }
 0x268   : > { %6611 = vmatprep.subr.bf16.mxu1 %v7217_v27  ;;  %6986 = vmatpush3.bf16.msra.mxu0 %v7223_v30  ;;  %v11056_v30 = vld [vmem:[#allocation33_spill] sm:$0xff]  ;;  %v11061_v27 = vld [vmem:[#allocation22_spill] sm:$0xff] }
 0x269   : > { %5730 = vmatmul.mubr.msk.bf16.gmra.mxu0 %vm7760_vm2, %v9168_v8  ;;  %6987 = vmatprep.subr.bf16.mxu0 %v7224_v59 }
 0x26a   : > { %6956 = vmatmul.mubr.msk.bf16.gmra.mxu1 %vm10963_vm0, %v9331_v50  ;;  %4274 = vmatprep.mubr.bf16.mxu0 %v9158_v31 }
 0x26b   : > { %6959 = vmatprep.mubr.msk.bf16.mxu1 %vm10970_vm8, %v9352_v47  ;;  %6612 = vmatpush3.bf16.msra.mxu1 %v7218_v54  ;;  %vm11060_vm8 = vnez %v11014_v6  ;;  %v11064_v54 = vld [vmem:[#allocation54_spill] sm:$0xff]  ;;  %v11075_v6 = vld [vmem:[#allocation51_spill] sm:$0xff] }
 0x26c   : > { %6613 = vmatprep.subr.bf16.mxu1 %v7220_v29  ;;  %6988 = vmatpush3.bf16.msra.mxu0 %v7224_v59  ;;  %v11062_v59 = vld [vmem:[#allocation39_spill] sm:$0xff] }
 0x26d   : > { %6989 = vmatprep.subr.bf16.mxu0 %v7225_v49 }
 0x26f   : > { %6614 = vmatpush3.bf16.msra.mxu1 %v7221_v16  ;;  %v11066_v16 = vld [vmem:[#allocation45_spill] sm:$0xff] }
 0x270   : > { %6990 = vmatpush3.bf16.msra.mxu0 %v7225_v49  ;;  %v11065_v49 = vld [vmem:[#allocation25_spill] sm:$0xff] }
 0x271   : > { %5732 = vmatmul.mubr.msk.bf16.gmra.mxu0 %vm11045_vm7, %v9206_v3 }
 0x272   : > { %6960 = vmatmul.mubr.msk.bf16.gmra.mxu1 %vm11046_vm10, %v9374_v44  ;;  %4282 = vmatprep.mubr.bf16.mxu0 %v11047_v7  ;;  %vm11057_vm10 = vnez %v11056_v30 }
 0x273   : > { %6963 = vmatprep.mubr.msk.bf16.mxu1 %vm11048_vm6, %v9395_v17  ;;  %vm11058_vm6 = vnez %v11006_v48 }
 0x279   : > { %5734 = vmatmul.mubr.msk.bf16.gmra.mxu0 %vm11051_vm13, %v11049_v46 }
 0x27a   : > { %6964 = vmatmul.mubr.msk.bf16.gmra.mxu1 %vm11052_vm11, %v9417_v20  ;;  %4290 = vmatprep.mubr.bf16.mxu0 %v11053_v1  ;;  %vm11063_vm11 = vnez %v11062_v59 }
 0x27b   : > { %6967 = vmatprep.mubr.msk.bf16.mxu1 %vm11054_vm15, %v9438_v45 }
 0x281   : > { %5736 = vmatmul.mubr.msk.bf16.gmra.mxu0 %vm11057_vm10, %v11055_v51 }
 0x282   : > { %6968 = vmatmul.mubr.msk.bf16.gmra.mxu1 %vm11058_vm6, %v9460_v35  ;;  %4298 = vmatprep.mubr.bf16.mxu0 %v11059_v58  ;;  %vm11067_vm6 = vnez %v11066_v16 }
 0x283   : > { %6971 = vmatprep.mubr.msk.bf16.mxu1 %vm11060_vm8, %v9480_v19 }
 0x289   : > { %5738 = vmatmul.mubr.msk.bf16.gmra.mxu0 %vm11063_vm11, %v11061_v27 }
 0x28a   : > { %6972 = vmatmul.mubr.msk.bf16.gmra.mxu1 %vm11023_vm14, %v9499_v62  ;;  %4306 = vmatprep.mubr.bf16.mxu0 %v11064_v54  ;;  %v11071_v62 = vld [vmem:[#allocation48_spill] sm:$0xff] }
 0x28b   : > { %4756 = vmatprep.mubr.bf16.mxu1 %v9091_v39  ;;  %vm11072_vm14 = vnez %v11071_v62 }
 0x291   : > { %v6343_v29 = vpop.f32.mrf.mxu1  ;;  %5740 = vmatmul.mubr.msk.bf16.gmra.mxu0 %vm11067_vm6, %v11065_v49 }
 0x292   : > { %5812 = vmatmul.mubr.msk.bf16.vlgmr.msra.gmra.mxu1 %vm7672_vm4, %v11041_v14  ;;  %4314 = vmatprep.mubr.bf16.mxu0 %v11068_v13  ;;  %v11073_v14 = vld [vmem:[#allocation58_spill] sm:$0xff]  ;;  %vm11076_vm4 = vnez %v11075_v6 }
 0x293   : > { %4764 = vmatprep.mubr.bf16.mxu1 %v11043_v22  ;;  %v6344_v15 = vpop.f32.mrf.mxu1 }
 0x294   : > { %v6345_v61 = vadd.f32 %v6344_v15, %v6343_v29 }
 0x295   : > { %v6346_v34 = vpop.f32.mrf.mxu1 }
 0x297   : > { %v6347_v43 = vpop.f32.mrf.mxu1 }
 0x298   : > { %v9677_v10 = vadd.f32 %v6347_v43, %v6346_v34 }
 0x299   : > { %v6349_v39 = vpop.f32.mrf.mxu1  ;;  %5742 = vmatmul.mubr.msk.bf16.gmra.mxu0 %vm11072_vm14, %v11070_v52 }
 0x29a   : > { %11069 = vst [vmem:[#allocation17_spill] sm:$0xff] %v9677_v10  ;;  %5814 = vmatmul.mubr.msk.bf16.gmra.mxu1 %vm7760_vm2, %v9168_v8  ;;  %4322 = vmatprep.mubr.bf16.mxu0 %v11073_v14 }
 0x29b   : > { %4772 = vmatprep.mubr.bf16.mxu1 %v9158_v31  ;;  %v6350_v0 = vpop.f32.mrf.mxu1  ;;  %v11078_v31 = vld [vmem:[#allocation60_spill] sm:$0xff] }
 0x29c   : > { %v6351_v22 = vadd.f32 %v6350_v0, %v6349_v39 }
 0x29d   : > { %v6352_v15 = vpop.f32.mrf.mxu1 }
 0x29f   : > { %v6353_v29 = vpop.f32.mrf.mxu1  ;;  %v6897_v9 = vpop.f32.mrf.mxu0 }
 0x2a0   : > { %v6354_v34 = vadd.f32 %v6353_v29, %v6352_v15  ;;  %v9687_v43 = vadd.f32 %v6897_v9, %v6351_v22 }
 0x2a1   : > { %v3939_v10 = vpop.f32.mrf.mxu0  ;;  %5744 = vmatmul.mubr.msk.bf16.gmra.mxu0 %vm11076_vm4, %v9382_v63 }
 0x2a2   : > { %11074 = vst [vmem:[#allocation21_spill] sm:$0xff] %v9687_v43  ;;  %v6355_v19 = vpop.f32.mrf.mxu1  ;;  %v9692_v33 = vadd.f32 %v6345_v61, %v3939_v10  ;;  %5816 = vmatmul.mubr.msk.bf16.gmra.mxu1 %vm11045_vm7, %v9206_v3  ;;  %4330 = vmatprep.mubr.bf16.mxu0 %v11078_v31  ;;  %v11081_v43 = vld [vmem:[#allocation62_spill] sm:$0xff]  ;;  %v11082_v10 = vld [vmem:[#allocation52_spill] sm:$0xff] }
 0x2a3   : > { %4780 = vmatprep.mubr.bf16.mxu1 %v11047_v7  ;;  %v6898_v8 = vpop.f32.mrf.mxu0  ;;  %vm11083_vm2 = vnez %v11082_v10  ;;  %v11084_v3 = vld [vmem:[#allocation32_spill] sm:$0xff] }
 0x2a4   : > { %11077 = vst [vmem:[#allocation20_spill] sm:$0xff] %v9692_v33  ;;  %v6356_v39 = vpop.f32.mrf.mxu1  ;;  %v9699_v9 = vadd.f32 %v6898_v8, %v6354_v34  ;;  %v11091_v33 = vld [vmem:[#allocation57_spill] sm:$0xff] }
 0x2a5   : > { %v6357_v0 = vadd.f32 %v6356_v39, %v6355_v19  ;;  %v9711_v7 = vpop.f32.mrf.mxu0 }
 0x2a6   : > { %11079 = vst [vmem:[#allocation24_spill] sm:$0xff] %v9699_v9  ;;  %v6358_v22 = vpop.f32.mrf.mxu1  ;;  %11085 = vst [vmem:[#allocation31_spill] sm:$0xff] %v9711_v7  ;;  %v11087_v9 = vld [vmem:[#allocation55_spill] sm:$0xff]  ;;  %v11090_v7 = vld [vmem:[#allocation53_spill] sm:$0xff] }
 0x2a7   : > { %vm11088_vm7 = vnez %v11087_v9 }
 0x2a8   : > { %v6359_v15 = vpop.f32.mrf.mxu1 }
 0x2a9   : > { %v9701_v29 = vadd.f32 %v6359_v15, %v6358_v22  ;;  %5746 = vmatmul.mubr.msk.bf16.gmra.mxu0 %vm11083_vm2, %v11081_v43 }
 0x2aa   : > { %v6361_v61 = vpop.f32.mrf.mxu1  ;;  %5818 = vmatmul.mubr.msk.bf16.gmra.mxu1 %vm11051_vm13, %v11049_v46  ;;  %4338 = vmatprep.mubr.bf16.mxu0 %v11084_v3  ;;  %vm11092_vm13 = vnez %v11091_v33 }
 0x2ab   : > { %11080 = vst [vmem:[#allocation29_spill] sm:$0xff] %v9701_v29  ;;  %4788 = vmatprep.mubr.bf16.mxu1 %v11053_v1  ;;  %v11089_v1 = vld [vmem:[#allocation36_spill] sm:$0xff] }
 0x2ac   : > { %v6362_v55 = vpop.f32.mrf.mxu1 }
 0x2ad   : > { %v6363_v19 = vadd.f32 %v6362_v55, %v6361_v61 }
 0x2ae   : > { %v6364_v34 = vpop.f32.mrf.mxu1 }
 0x2af   : > { %v6901_v8 = vpop.f32.mrf.mxu0 }
 0x2b0   : > { %v6365_v39 = vpop.f32.mrf.mxu1  ;;  %v9713_v22 = vadd.f32 %v6901_v8, %v6363_v19 }
 0x2b1   : > { %v6366_v15 = vadd.f32 %v6365_v39, %v6364_v34  ;;  %v3955_v29 = vpop.f32.mrf.mxu0  ;;  %5748 = vmatmul.mubr.msk.bf16.gmra.mxu0 %vm11088_vm7, %v9425_v26 }
 0x2b2   : > { %11086 = vst [vmem:[#allocation35_spill] sm:$0xff] %v9713_v22  ;;  %v6367_v46 = vpop.f32.mrf.mxu1  ;;  %v9718_v12 = vadd.f32 %v6357_v0, %v3955_v29  ;;  %5820 = vmatmul.mubr.msk.bf16.gmra.mxu1 %vm11057_vm10, %v11055_v51  ;;  %4346 = vmatprep.mubr.bf16.mxu0 %v11089_v1  ;;  %v11093_v51 = vld [vmem:[#allocation65_spill] sm:$0xff]  ;;  %vm11095_vm10 = vnez %v11010_v40 }
 0x2b3   : > { %4796 = vmatprep.mubr.bf16.mxu1 %v11059_v58  ;;  %v6902_v61 = vpop.f32.mrf.mxu0 }
 0x2b4   : > { %v6368_v55 = vpop.f32.mrf.mxu1  ;;  %v9725_v19 = vadd.f32 %v6902_v61, %v6366_v15 }
 0x2b5   : > { %v6369_v34 = vadd.f32 %v6368_v55, %v6367_v46  ;;  %v9735_v58 = vpop.f32.mrf.mxu0 }
 0x2b6   : > { %v6370_v8 = vpop.f32.mrf.mxu1 }
 0x2b8   : > { %v6371_v39 = vpop.f32.mrf.mxu1 }
 0x2b9   : > { %v6372_v22 = vadd.f32 %v6371_v39, %v6370_v8  ;;  %5750 = vmatmul.mubr.msk.bf16.gmra.mxu0 %vm11092_vm13, %v11090_v7 }
 0x2ba   : > { %v6373_v0 = vpop.f32.mrf.mxu1  ;;  %5822 = vmatmul.mubr.msk.bf16.gmra.mxu1 %vm11063_vm11, %v11061_v27  ;;  %4354 = vmatprep.mubr.bf16.mxu0 %v11093_v51  ;;  %vm11096_vm11 = vnez %v11018_v36 }
 0x2bb   : > { %4804 = vmatprep.mubr.bf16.mxu1 %v11064_v54 }
 0x2bc   : > { %v6374_v30 = vpop.f32.mrf.mxu1 }
 0x2bd   : > { %v6375_v29 = vadd.f32 %v6374_v30, %v6373_v0 }
 0x2be   : > { %v6376_v15 = vpop.f32.mrf.mxu1 }
 0x2bf   : > { %v6905_v46 = vpop.f32.mrf.mxu0 }
 0x2c0   : > { %v6377_v61 = vpop.f32.mrf.mxu1  ;;  %v9737_v55 = vadd.f32 %v6905_v46, %v6375_v29 }
 0x2c1   : > { %v6378_v8 = vadd.f32 %v6377_v61, %v6376_v15  ;;  %v3971_v39 = vpop.f32.mrf.mxu0  ;;  %5752 = vmatmul.mubr.msk.bf16.gmra.mxu0 %vm11095_vm10, %v9468_v11 }
 0x2c2   : > { %11094 = vst [vmem:[#allocation23_spill] sm:$0xff] %v9737_v55  ;;  %v6379_v27 = vpop.f32.mrf.mxu1  ;;  %v9742_v59 = vadd.f32 %v6369_v34, %v3971_v39  ;;  %5824 = vmatmul.mubr.msk.bf16.gmra.mxu1 %vm11067_vm6, %v11065_v49  ;;  %4362 = vmatprep.mubr.bf16.mxu0 %v9462_v28 }
 0x2c3   : > { %4812 = vmatprep.mubr.bf16.mxu1 %v11068_v13  ;;  %v6906_v54 = vpop.f32.mrf.mxu0 }
 0x2c4   : > { %v6380_v0 = vpop.f32.mrf.mxu1  ;;  %v9749_v30 = vadd.f32 %v6906_v54, %v6378_v8 }
 0x2c5   : > { %v6381_v29 = vadd.f32 %v6380_v0, %v6379_v27  ;;  %v3974_v15 = vpop.f32.mrf.mxu0 }
 0x2c6   : > { %v6382_v46 = vpop.f32.mrf.mxu1  ;;  %v9751_v61 = vadd.f32 %v6372_v22, %v3974_v15 }
 0x2c8   : > { %v6383_v55 = vpop.f32.mrf.mxu1 }
 0x2c9   : > { %v6384_v34 = vadd.f32 %v6383_v55, %v6382_v46  ;;  %5754 = vmatmul.mubr.msk.bf16.gmra.mxu0 %vm11096_vm11, %v9486_v56 }
 0x2ca   : > { %v6385_v49 = vpop.f32.mrf.mxu1  ;;  %5826 = vmatmul.mubr.msk.bf16.gmra.mxu1 %vm11072_vm14, %v11070_v52  ;;  %6991 = vmatprep.mubr.msk.bf16.mxu0 %vm10837_vm3, %v9151_v5  ;;  %vm11101_vm3 = vnez %v11006_v48 }
 0x2cb   : > { %4820 = vmatprep.mubr.bf16.mxu1 %v11073_v14 }
 0x2cc   : > { %v6386_v13 = vpop.f32.mrf.mxu1 }
 0x2cd   : > { %v6387_v16 = vadd.f32 %v6386_v13, %v6385_v49 }
 0x2ce   : > { %v6388_v22 = vpop.f32.mrf.mxu1 }
 0x2cf   : > { %v6909_v8 = vpop.f32.mrf.mxu0 }
 0x2d0   : > { %v6389_v55 = vpop.f32.mrf.mxu1  ;;  %v9763_v39 = vadd.f32 %v6909_v8, %v6387_v16 }
 0x2d1   : > { %v6390_v27 = vadd.f32 %v6389_v55, %v6388_v22  ;;  %v3987_v54 = vpop.f32.mrf.mxu0  ;;  %6992 = vmatmul.mubr.msk.bf16.vlgmr.msra.gmra.mxu0 %vm10838_vm5, %v9197_v21  ;;  %vm11099_vm5 = vnez %v10983_v2 }
 0x2d2   : > { %v6391_v62 = vpop.f32.mrf.mxu1  ;;  %v9768_v52 = vadd.f32 %v6381_v29, %v3987_v54  ;;  %5828 = vmatmul.mubr.msk.bf16.gmra.mxu1 %vm11076_vm4, %v9382_v63  ;;  %6995 = vmatprep.mubr.msk.bf16.mxu0 %vm10840_vm1, %v9236_v4  ;;  %vm11097_vm1 = vnez %v10969_v23 }
 0x2d3   : > { %4828 = vmatprep.mubr.bf16.mxu1 %v11078_v31  ;;  %v6910_v5 = vpop.f32.mrf.mxu0 }
 0x2d4   : > { %v6392_v18 = vpop.f32.mrf.mxu1  ;;  %v9777_v14 = vadd.f32 %v6910_v5, %v6390_v27 }
 0x2d5   : > { %v6393_v0 = vadd.f32 %v6392_v18, %v6391_v62  ;;  %v3990_v37 = vpop.f32.mrf.mxu0 }
 0x2d6   : > { %v6394_v21 = vpop.f32.mrf.mxu1  ;;  %v9779_v15 = vadd.f32 %v6384_v34, %v3990_v37 }
 0x2d8   : > { %v6395_v29 = vpop.f32.mrf.mxu1 }
 0x2d9   : > { %v6396_v46 = vadd.f32 %v6395_v29, %v6394_v21  ;;  %6996 = vmatmul.mubr.msk.bf16.gmra.mxu0 %vm10844_vm9, %v9277_v60  ;;  %vm11100_vm9 = vnez %v10991_v38 }
 0x2da   : > { %v6397_v63 = vpop.f32.mrf.mxu1  ;;  %5830 = vmatmul.mubr.msk.bf16.gmra.mxu1 %vm11083_vm2, %v11081_v43  ;;  %6999 = vmatprep.mubr.msk.bf16.mxu0 %vm10953_vm12, %v9307_v25 }
 0x2db   : > { %4836 = vmatprep.mubr.bf16.mxu1 %v11084_v3 }
 0x2dc   : > { %v6398_v53 = vpop.f32.mrf.mxu1 }
 0x2dd   : > { %v6399_v4 = vadd.f32 %v6398_v53, %v6397_v63  ;;  %v11105_v63 = vld [vmem:[#allocation12_spill] sm:$0xff] }
 0x2de   : > { %v6400_v6 = vpop.f32.mrf.mxu1  ;;  %v11106_v53 = vld [vmem:[#allocation44_spill] sm:$0xff] }
 0x2df   : > { %v6913_v31 = vpop.f32.mrf.mxu0  ;;  %vm11107_vm12 = vnez %v11106_v53 }
 0x2e0   : > { %v6401_v34 = vpop.f32.mrf.mxu1  ;;  %v9791_v49 = vadd.f32 %v6913_v31, %v6399_v4  ;;  %v11108_v4 = vld [vmem:[#allocation14_spill] sm:$0xff]  ;;  %v11111_v31 = vld [vmem:[#allocation15_spill] sm:$0xff] }
 0x2e1   : > { %v6402_v24 = vadd.f32 %v6401_v34, %v6400_v6  ;;  %v4003_v60 = vpop.f32.mrf.mxu0  ;;  %7000 = vmatmul.mubr.msk.bf16.gmra.mxu0 %vm10963_vm0, %v9331_v50  ;;  %vm11098_vm0 = vnez %v10978_v57  ;;  %v11109_v6 = vld [vmem:[#allocation63_spill] sm:$0xff] }
 0x2e2   : > { %v6403_v43 = vpop.f32.mrf.mxu1  ;;  %v9796_v10 = vadd.f32 %v6393_v0, %v4003_v60  ;;  %5832 = vmatmul.mubr.msk.bf16.gmra.mxu1 %vm11088_vm7, %v9425_v26  ;;  %7003 = vmatprep.mubr.msk.bf16.mxu0 %vm11097_vm1, %v9352_v47  ;;  %v11112_v34 = vld [vmem:[#allocation47_spill] sm:$0xff]  ;;  %v11114_v60 = vmov 0  }
 0x2e3   : > { %4844 = vmatprep.mubr.bf16.mxu1 %v11089_v1  ;;  %v6914_v25 = vpop.f32.mrf.mxu0  ;;  %vm11113_vm14 = vnez %v11112_v34 }
 0x2e4   : > { %v6404_v42 = vpop.f32.mrf.mxu1  ;;  %v9805_v3 = vadd.f32 %v6914_v25, %v6402_v24 }
 0x2e5   : > { %v6405_v13 = vadd.f32 %v6404_v42, %v6403_v43  ;;  %v4006_v41 = vpop.f32.mrf.mxu0 }
 0x2e6   : > { %v6406_v50 = vpop.f32.mrf.mxu1  ;;  %v9807_v16 = vadd.f32 %v6396_v46, %v4006_v41 }
 0x2e8   : > { %v6407_v22 = vpop.f32.mrf.mxu1 }
 0x2e9   : > { %v6408_v8 = vadd.f32 %v6407_v22, %v6406_v50  ;;  %7004 = vmatmul.mubr.msk.bf16.gmra.mxu0 %vm11098_vm0, %v9374_v44 }
 0x2ea   : > { %v6409_v26 = vpop.f32.mrf.mxu1  ;;  %5834 = vmatmul.mubr.msk.bf16.gmra.mxu1 %vm11092_vm13, %v11090_v7  ;;  %7007 = vmatprep.mubr.msk.bf16.mxu0 %vm11099_vm5, %v9395_v17 }
 0x2eb   : > { %4852 = vmatprep.mubr.bf16.mxu1 %v11093_v51 }
 0x2ec   : > { %v6410_v23 = vpop.f32.mrf.mxu1 }
 0x2ed   : > { %v6411_v47 = vadd.f32 %v6410_v23, %v6409_v26  ;;  %v11115_v23 = vld [vmem:[#allocation6_spill] sm:$0xff] }
 0x2ee   : > { %v6412_v9 = vpop.f32.mrf.mxu1 }
 0x2ef   : > { %v6917_v1 = vpop.f32.mrf.mxu0 }
 0x2f0   : > { %v6413_v55 = vpop.f32.mrf.mxu1  ;;  %v9819_v27 = vadd.f32 %v6917_v1, %v6411_v47  ;;  %v11116_v47 = vld [vmem:[#allocation9_spill] sm:$0xff]  ;;  %v11118_v1 = vld [vmem:[#allocation16_spill] sm:$0xff] }
 0x2f1   : > { %v6414_v57 = vadd.f32 %v6413_v55, %v6412_v9  ;;  %v4019_v44 = vpop.f32.mrf.mxu0  ;;  %7008 = vmatmul.mubr.msk.bf16.gmra.mxu0 %vm11100_vm9, %v9417_v20  ;;  %v11119_v55 = vld [vmem:[#allocation11_spill] sm:$0xff] }
 0x2f2   : > { %v6415_v33 = vpop.f32.mrf.mxu1  ;;  %v9824_v7 = vadd.f32 %v6405_v13, %v4019_v44  ;;  %5836 = vmatmul.mubr.msk.bf16.gmra.mxu1 %vm11095_vm10, %v9468_v11  ;;  %7011 = vmatprep.mubr.msk.bf16.mxu0 %vm11054_vm15, %v9438_v45  ;;  %vm11117_vm15 = vsmask.f32 256  ;;  %vm11120_vm6 = vnez %v11119_v55  ;;  %v11121_v44 = vld [vmem:[#allocation13_spill] sm:$0xff] }
 0x2f3   : > { %4860 = vmatprep.mubr.bf16.mxu1 %v9462_v28  ;;  %v6918_v2 = vpop.f32.mrf.mxu0  ;;  %v11104_v28 = vld [vmem:[#allocation7_spill] sm:$0xff]  ;;  %v3386_v9 = vsel %vm11117_vm15, %v11116_v47, %v11115_v23  ;;  %vm11122_vm4 = vnez %v11121_v44  ;;  %v11126_v47 = vld [vmem:[#allocation21_spill] sm:$0xff] }
 0x2f4   : > { %v6416_v17 = vpop.f32.mrf.mxu1  ;;  %v9833_v51 = vadd.f32 %v6918_v2, %v6414_v57 }
 0x2f5   : > { %v6417_v54 = vadd.f32 %v6416_v17, %v6415_v33  ;;  %v4022_v38 = vpop.f32.mrf.mxu0 }
 0x2f6   : > { %v6418_v20 = vpop.f32.mrf.mxu1  ;;  %v9835_v62 = vadd.f32 %v6408_v8, %v4022_v38 }
 0x2f8   : > { %v6419_v5 = vpop.f32.mrf.mxu1 }
 0x2f9   : > { %v6420_v18 = vadd.f32 %v6419_v5, %v6418_v20  ;;  %7012 = vmatmul.mubr.msk.bf16.gmra.mxu0 %vm11101_vm3, %v9460_v35 }
 0x2fa   : > { %v6421_v11 = vpop.f32.mrf.mxu1  ;;  %5838 = vmatmul.mubr.msk.bf16.gmra.mxu1 %vm11096_vm11, %v9486_v56  ;;  %7015 = vmatprep.mubr.msk.bf16.mxu0 %vm11060_vm8, %v11102_v32  ;;  %vm11110_vm8 = vnez %v11109_v6  ;;  %v11125_v6 = vld [vmem:[#allocation17_spill] sm:$0xff] }
 0x2fb   : > { %4868 = vmatprep.mubr.bf16.mxu1 %v11104_v28 }
 0x2fc   : > { %v6422_v40 = vpop.f32.mrf.mxu1 }
 0x2fd   : > { %v6423_v0 = vadd.f32 %v6422_v40, %v6421_v11 }
 0x2fe   : > { %v6424_v37 = vpop.f32.mrf.mxu1 }
 0x2ff   : > { %v6921_v21 = vpop.f32.mrf.mxu0 }
 0x300   : > { %v6425_v29 = vpop.f32.mrf.mxu1  ;;  %v9847_v46 = vadd.f32 %v6921_v21, %v6423_v0 }
 0x301   : > { %v6426_v48 = vadd.f32 %v6425_v29, %v6424_v37  ;;  %v4035_v35 = vpop.f32.mrf.mxu0  ;;  %7016 = vmatmul.mubr.msk.bf16.gmra.mxu0 %vm11107_vm12, %v11105_v63 }
 0x302   : > { %v6427_v56 = vpop.f32.mrf.mxu1  ;;  %v9852_v36 = vadd.f32 %v6417_v54, %v4035_v35  ;;  %5840 = vmatmul.mubr.msk.bf16.gmra.mxu1 %vm11110_vm8, %v11108_v4  ;;  %7019 = vmatprep.mubr.msk.bf16.mxu0 %vm11113_vm14, %v11111_v31  ;;  %v11123_v35 = vld [vmem:[#allocation20_spill] sm:$0xff]  ;;  %v11124_v4 = vld [vmem:[#allocation31_spill] sm:$0xff] }
 0x303   : > { %v6922_v24 = vpop.f32.mrf.mxu0  ;;  %4876 = vmatprep.mubr.bf16.mxu1 %v11114_v60  ;;  %v3943_v31 = vadd.f32 %v11125_v6, %v11124_v4 }
 0x304   : > { %v6428_v43 = vpop.f32.mrf.mxu1  ;;  %v9861_v25 = vadd.f32 %v6922_v24, %v6426_v48 }
 0x305   : > { %v6429_v42 = vadd.f32 %v6428_v43, %v6427_v56  ;;  %v4038_v13 = vpop.f32.mrf.mxu0 }
 0x306   : > { %v6430_v41 = vpop.f32.mrf.mxu1  ;;  %v9863_v50 = vadd.f32 %v6420_v18, %v4038_v13 }
 0x308   : > { %v6431_v22 = vpop.f32.mrf.mxu1 }
 0x309   : > { %v6432_v8 = vadd.f32 %v6431_v22, %v6430_v41  ;;  %v6925_v26 = vpop.f32.mrf.mxu0  ;;  %7020 = vmatmul.mubr.msk.bf16.gmra.mxu0 %vm11120_vm6, %v11118_v1 }
 0x30a   : > { %v6433_v57 = vpop.f32.mrf.mxu1  ;;  %5842 = vmatmul.mubr.msk.bf16.gmra.mxu1 %vm11122_vm4, %v3386_v9 }
 0x30b   : > { %v4051_v33 = vpop.f32.mrf.mxu0 }
 0x30c   : > { %v6434_v2 = vpop.f32.mrf.mxu1  ;;  %v9873_v17 = vadd.f32 %v6429_v42, %v4051_v33 }
 0x30d   : > { %v6435_v54 = vadd.f32 %v6434_v2, %v6433_v57  ;;  %v6926_v38 = vpop.f32.mrf.mxu0 }
 0x30e   : > { %v6436_v20 = vpop.f32.mrf.mxu1 }
 0x30f   : > { %v9875_v5 = vadd.f32 %v6925_v26, %v6435_v54  ;;  %v4054_v18 = vpop.f32.mrf.mxu0  ;;  %v11127_v54 = vld [vmem:[#allocation24_spill] sm:$0xff] }
 0x310   : > { %v6437_v11 = vpop.f32.mrf.mxu1  ;;  %v9877_v32 = vadd.f32 %v6432_v8, %v4054_v18 }
 0x311   : > { %v6438_v45 = vadd.f32 %v6437_v11, %v6436_v20  ;;  %v6479_v28 = vpop.f32.mrf.mxu0 }
 0x312   : > { %v6945_v40 = vpop.f32.mrf.mxu1 }
 0x313   : > { %v9879_v0 = vadd.f32 %v6926_v38, %v6438_v45  ;;  %v6480_v37 = vpop.f32.mrf.mxu0 }
 0x314   : > { %v6481_v21 = vadd.f32 %v6480_v37, %v6479_v28  ;;  %v4405_v29 = vpop.f32.mrf.mxu1 }
 0x315   : > { %v6482_v48 = vpop.f32.mrf.mxu0 }
 0x316   : > { %v4245_v63 = vadd.f32 %v6481_v21, %v11123_v35  ;;  %v6946_v53 = vpop.f32.mrf.mxu1  ;;  %v11128_v35 = vld [vmem:[#allocation29_spill] sm:$0xff] }
 0x317   : > { %v6483_v56 = vpop.f32.mrf.mxu0 }
 0x318   : > { %v9884_v34 = vadd.f32 %v4405_v29, %v4245_v63  ;;  %v6484_v24 = vadd.f32 %v6483_v56, %v6482_v48  ;;  %v4408_v60 = vpop.f32.mrf.mxu1  ;;  %v3959_v63 = vadd.f32 %v11128_v35, %v9735_v58 }
 0x319   : > { %v6485_v43 = vpop.f32.mrf.mxu0 }
 0x31a   : > { %v4248_v42 = vadd.f32 %v6484_v24, %v3943_v31  ;;  %v6949_v13 = vpop.f32.mrf.mxu1 }
 0x31b   : > { %v6486_v41 = vpop.f32.mrf.mxu0 }
 0x31c   : > { %v9886_v22 = vadd.f32 %v4408_v60, %v4248_v42  ;;  %v6487_v8 = vadd.f32 %v6486_v41, %v6485_v43  ;;  %v4421_v26 = vpop.f32.mrf.mxu1 }
 0x31d   : > { %v6488_v23 = vpop.f32.mrf.mxu0 }
 0x31e   : > { %v4253_v9 = vadd.f32 %v6487_v8, %v11126_v47  ;;  %v6950_v1 = vpop.f32.mrf.mxu1 }
 0x31f   : > { %v6489_v55 = vpop.f32.mrf.mxu0 }
 0x320   : > { %v6490_v57 = vadd.f32 %v6489_v55, %v6488_v23  ;;  %v4424_v44 = vpop.f32.mrf.mxu1  ;;  %v9889_v33 = vadd.f32 %v6945_v40, %v4253_v9 }
 0x321   : > { %v6491_v2 = vpop.f32.mrf.mxu0 }
 0x322   : > { %v4256_v38 = vadd.f32 %v6490_v57, %v11127_v54  ;;  %v6953_v20 = vpop.f32.mrf.mxu1 }
 0x323   : > { %v6492_v18 = vpop.f32.mrf.mxu0 }
 0x324   : > { %v6493_v11 = vadd.f32 %v6492_v18, %v6491_v2  ;;  %v4437_v45 = vpop.f32.mrf.mxu1  ;;  %v9892_v28 = vadd.f32 %v6946_v53, %v4256_v38 }
 0x325   : > { %v6494_v37 = vpop.f32.mrf.mxu0 }
 0x326   : > { %v4261_v21 = vadd.f32 %v6493_v11, %v9718_v12  ;;  %v6954_v29 = vpop.f32.mrf.mxu1  ;;  %v11129_v12 = vld [vmem:[#allocation35_spill] sm:$0xff] }
 0x327   : > { %v6495_v48 = vpop.f32.mrf.mxu0 }
 0x328   : > { %v6496_v56 = vadd.f32 %v6495_v48, %v6494_v37  ;;  %v4440_v40 = vpop.f32.mrf.mxu1  ;;  %v9897_v4 = vadd.f32 %v4421_v26, %v4261_v21 }
 0x329   : > { %v6497_v6 = vpop.f32.mrf.mxu0 }
 0x32a   : > { %v4264_v31 = vadd.f32 %v6496_v56, %v3959_v63  ;;  %v9899_v24 = vpop.f32.mrf.mxu1 }
 0x32b   : > { %v6498_v60 = vpop.f32.mrf.mxu0 }
 0x32c   : > { %v6499_v43 = vadd.f32 %v6498_v60, %v6497_v6  ;;  %v4453_v53 = vpop.f32.mrf.mxu1  ;;  %v9901_v42 = vadd.f32 %v4424_v44, %v4264_v31 }
 0x32d   : > { %v6500_v41 = vpop.f32.mrf.mxu0 }
 0x32e   : > { %v4269_v8 = vadd.f32 %v6499_v43, %v11129_v12  ;;  %v9904_v23 = vpop.f32.mrf.mxu1 }
 0x32f   : > { %v6501_v47 = vpop.f32.mrf.mxu0 }
 0x330   : > { %v6502_v58 = vadd.f32 %v6501_v47, %v6500_v41  ;;  %v4456_v9 = vpop.f32.mrf.mxu1  ;;  %v9906_v55 = vadd.f32 %v6949_v13, %v4269_v8  ;;  %v11130_v41 = vld [vmem:[#allocation23_spill] sm:$0xff] }
 0x331   : > { %v6503_v26 = vpop.f32.mrf.mxu0 }
 0x332   : > { %v4272_v57 = vadd.f32 %v6502_v58, %v9725_v19  ;;  %v9909_v2 = vpop.f32.mrf.mxu1 }
 0x333   : > { %v6504_v54 = vpop.f32.mrf.mxu0 }
 0x334   : > { %v6505_v38 = vadd.f32 %v6504_v54, %v6503_v26  ;;  %v9911_v18 = vpop.f32.mrf.mxu1  ;;  %v9913_v44 = vadd.f32 %v6950_v1, %v4272_v57 }
 0x335   : > { %v6506_v11 = vpop.f32.mrf.mxu0 }
 0x336   : > { %v4277_v37 = vadd.f32 %v6505_v38, %v9742_v59  ;;  %v9916_v21 = vpop.f32.mrf.mxu1 }
 0x337   : > { %v6507_v48 = vpop.f32.mrf.mxu0 }
 0x338   : > { %v6508_v35 = vadd.f32 %v6507_v48, %v6506_v11  ;;  %v9918_v13 = vpop.f32.mrf.mxu1  ;;  %v9920_v63 = vadd.f32 %v4437_v45, %v4277_v37 }
 0x339   : > { %v6509_v19 = vpop.f32.mrf.mxu0 }
 0x33a   : > { %v4280_v56 = vadd.f32 %v6508_v35, %v9751_v61  ;;  %v9923_v6 = vpop.f32.mrf.mxu1 }
 0x33b   : > { %v6510_v31 = vpop.f32.mrf.mxu0 }
 0x33c   : > { %v6511_v60 = vadd.f32 %v6510_v31, %v6509_v19  ;;  %v9925_v1 = vpop.f32.mrf.mxu1  ;;  %v9927_v43 = vadd.f32 %v4440_v40, %v4280_v56 }
 0x33d   : > { %v6512_v59 = vpop.f32.mrf.mxu0 }
 0x33e   : > { %v4285_v12 = vadd.f32 %v6511_v60, %v11130_v41  ;;  %v9930_v8 = vpop.f32.mrf.mxu1 }
 0x33f   : > { %v6513_v47 = vpop.f32.mrf.mxu0 }
 0x340   : > { %v6514_v58 = vadd.f32 %v6513_v47, %v6512_v59  ;;  %v9932_v45 = vpop.f32.mrf.mxu1  ;;  %v9934_v26 = vadd.f32 %v6953_v20, %v4285_v12 }
 0x341   : > { %v6515_v61 = vpop.f32.mrf.mxu0 }
 0x342   : > { %v4288_v57 = vadd.f32 %v6514_v58, %v9749_v30  ;;  %v9937_v54 = vpop.f32.mrf.mxu1 }
 0x343   : > { %v6516_v38 = vpop.f32.mrf.mxu0 }
 0x344   : > { %v6517_v11 = vadd.f32 %v6516_v38, %v6515_v61  ;;  %v9939_v40 = vpop.f32.mrf.mxu1  ;;  %v9941_v37 = vadd.f32 %v6954_v29, %v4288_v57 }
 0x345   : > { %v6518_v48 = vpop.f32.mrf.mxu0 }
 0x346   : > { %v4293_v35 = vadd.f32 %v6517_v11, %v9768_v52  ;;  %v9944_v19 = vpop.f32.mrf.mxu1 }
 0x347   : > { %v6519_v56 = vpop.f32.mrf.mxu0 }
 0x348   : > { %v6520_v31 = vadd.f32 %v6519_v56, %v6518_v48  ;;  %v9946_v20 = vpop.f32.mrf.mxu1  ;;  %v9948_v60 = vadd.f32 %v4453_v53, %v4293_v35 }
 0x349   : > { %v6521_v30 = vpop.f32.mrf.mxu0 }
 0x34a   : > { %v4296_v59 = vadd.f32 %v6520_v31, %v9779_v15  ;;  %v9951_v41 = vpop.f32.mrf.mxu1 }
 0x34b   : > { %11131 = vst [vmem:[#allocation27_spill] sm:$0xff] %v9951_v41  ;;  %v6522_v12 = vpop.f32.mrf.mxu0 }
 0x34c   : > { %v6523_v47 = vadd.f32 %v6522_v12, %v6521_v30  ;;  %v9953_v29 = vpop.f32.mrf.mxu1  ;;  %v9955_v58 = vadd.f32 %v4456_v9, %v4296_v59 }
 0x34d   : > { %v6524_v52 = vpop.f32.mrf.mxu0 }
 0x34e   : > { %v4301_v61 = vadd.f32 %v6523_v47, %v9763_v39  ;;  %v9958_v57 = vpop.f32.mrf.mxu1 }
 0x34f   : > { %11132 = vst [vmem:[#allocation38_spill] sm:$0xff] %v9958_v57  ;;  %v6525_v38 = vpop.f32.mrf.mxu0 }
 0x350   : > { %v6526_v11 = vadd.f32 %v6525_v38, %v6524_v52  ;;  %v9960_v53 = vpop.f32.mrf.mxu1  ;;  %v9963_v48 = vadd.f32 %v9899_v24, %v4301_v61 }
 0x351   : > { %v6527_v15 = vpop.f32.mrf.mxu0 }
 0x352   : > { %v4304_v35 = vadd.f32 %v6526_v11, %v9777_v14  ;;  %v9966_v56 = vpop.f32.mrf.mxu1 }
 0x353   : > { %v6528_v31 = vpop.f32.mrf.mxu0 }
 0x354   : > { %v6529_v9 = vadd.f32 %v6528_v31, %v6527_v15  ;;  %v9968_v30 = vpop.f32.mrf.mxu1  ;;  %v9971_v39 = vadd.f32 %v9904_v23, %v4304_v35 }
 0x355   : > { %v6530_v59 = vpop.f32.mrf.mxu0 }
 0x356   : > { %v4309_v12 = vadd.f32 %v6529_v9, %v9796_v10  ;;  %v9974_v47 = vpop.f32.mrf.mxu1 }
 0x357   : > { %v6531_v52 = vpop.f32.mrf.mxu0 }
 0x358   : > { %v6532_v24 = vadd.f32 %v6531_v52, %v6530_v59  ;;  %v9976_v61 = vpop.f32.mrf.mxu1  ;;  %v9979_v14 = vadd.f32 %v9911_v18, %v4309_v12 }
 0x359   : > { %v6533_v38 = vpop.f32.mrf.mxu0 }
 0x35a   : > { %11133 = vst [vmem:[#allocation30_spill] sm:$0xff] %v9979_v14  ;;  %v4312_v11 = vadd.f32 %v6532_v24, %v9807_v16  ;;  %v9982_v15 = vpop.f32.mrf.mxu1 }
 0x35b   : > { %v6534_v31 = vpop.f32.mrf.mxu0 }
 0x35c   : > { %v6535_v23 = vadd.f32 %v6534_v31, %v6533_v38  ;;  %v9984_v35 = vpop.f32.mrf.mxu1  ;;  %v9987_v10 = vadd.f32 %v9918_v13, %v4312_v11 }
 0x35d   : > { %v6536_v9 = vpop.f32.mrf.mxu0 }
 0x35e   : > { %11134 = vst [vmem:[#allocation59_spill] sm:$0xff] %v9987_v10  ;;  %v4317_v59 = vadd.f32 %v6535_v23, %v9791_v49  ;;  %v9990_v52 = vpop.f32.mrf.mxu1 }
 0x35f   : > { %v6537_v57 = vpop.f32.mrf.mxu0 }
 0x360   : > { %v6538_v18 = vadd.f32 %v6537_v57, %v6536_v9  ;;  %v9992_v12 = vpop.f32.mrf.mxu1  ;;  %v9995_v16 = vadd.f32 %v9909_v2, %v4317_v59 }
 0x361   : > { %v6539_v24 = vpop.f32.mrf.mxu0 }
 0x362   : > { %11135 = vst [vmem:[#allocation61_spill] sm:$0xff] %v9995_v16  ;;  %v4320_v38 = vadd.f32 %v6538_v18, %v9805_v3  ;;  %v9998_v31 = vpop.f32.mrf.mxu1 }
 0x363   : > { %v6540_v41 = vpop.f32.mrf.mxu0 }
 0x364   : > { %v6541_v13 = vadd.f32 %v6540_v41, %v6539_v24  ;;  %v10000_v11 = vpop.f32.mrf.mxu1  ;;  %v10003_v49 = vadd.f32 %v9916_v21, %v4320_v38 }
 0x365   : > { %v6542_v23 = vpop.f32.mrf.mxu0 }
 0x366   : > { %11136 = vst [vmem:[#allocation43_spill] sm:$0xff] %v10003_v49  ;;  %v4325_v57 = vadd.f32 %v6541_v13, %v9824_v7  ;;  %v10006_v9 = vpop.f32.mrf.mxu1 }
 0x367   : > { %v6543_v10 = vpop.f32.mrf.mxu0 }
 0x368   : > { %v6544_v2 = vadd.f32 %v6543_v10, %v6542_v23  ;;  %v10008_v59 = vpop.f32.mrf.mxu1  ;;  %v10011_v3 = vadd.f32 %v9925_v1, %v4325_v57 }
 0x369   : > { %v6545_v18 = vpop.f32.mrf.mxu0 }
 0x36a   : > { %11137 = vst [vmem:[#allocation64_spill] sm:$0xff] %v10011_v3  ;;  %v4328_v41 = vadd.f32 %v6544_v2, %v9835_v62  ;;  %v10014_v24 = vpop.f32.mrf.mxu1 }
 0x36b   : > { %v6546_v14 = vpop.f32.mrf.mxu0 }
 0x36c   : > { %v6547_v21 = vadd.f32 %v6546_v14, %v6545_v18  ;;  %v10016_v38 = vpop.f32.mrf.mxu1  ;;  %v10019_v7 = vadd.f32 %v9932_v45, %v4328_v41 }
 0x36d   : > { %v6548_v13 = vpop.f32.mrf.mxu0 }
 0x36e   : > { %11138 = vst [vmem:[#allocation49_spill] sm:$0xff] %v10019_v7  ;;  %v4333_v10 = vadd.f32 %v6547_v21, %v9819_v27  ;;  %v10022_v23 = vpop.f32.mrf.mxu1 }
 0x36f   : > { %v6549_v49 = vpop.f32.mrf.mxu0 }
 0x370   : > { %v6550_v1 = vadd.f32 %v6549_v49, %v6548_v13  ;;  %v10024_v57 = vpop.f32.mrf.mxu1  ;;  %v10027_v62 = vadd.f32 %v9923_v6, %v4333_v10 }
 0x371   : > { %v6551_v2 = vpop.f32.mrf.mxu0 }
 0x372   : > { %11139 = vst [vmem:[#allocation50_spill] sm:$0xff] %v10027_v62  ;;  %v4336_v14 = vadd.f32 %v6550_v1, %v9833_v51  ;;  %v10030_v18 = vpop.f32.mrf.mxu1 }
 0x373   : > { %v6552_v3 = vpop.f32.mrf.mxu0 }
 0x374   : > { %v6553_v45 = vadd.f32 %v6552_v3, %v6551_v2  ;;  %v10032_v41 = vpop.f32.mrf.mxu1  ;;  %v10035_v27 = vadd.f32 %v9930_v8, %v4336_v14 }
 0x375   : > { %v6554_v21 = vpop.f32.mrf.mxu0 }
 0x376   : > { %11140 = vst [vmem:[#allocation37_spill] sm:$0xff] %v10035_v27  ;;  %v4341_v49 = vadd.f32 %v6553_v45, %v9852_v36  ;;  %v10038_v13 = vpop.f32.mrf.mxu1 }
 0x377   : > { %v6555_v7 = vpop.f32.mrf.mxu0 }
 0x378   : > { %v6556_v6 = vadd.f32 %v6555_v7, %v6554_v21  ;;  %v10040_v10 = vpop.f32.mrf.mxu1  ;;  %v10043_v51 = vadd.f32 %v9939_v40, %v4341_v49 }
 0x379   : > { %v6557_v1 = vpop.f32.mrf.mxu0 }
 0x37a   : > { %11141 = vst [vmem:[#allocation10_spill] sm:$0xff] %v10043_v51  ;;  %v4344_v3 = vadd.f32 %v6556_v6, %v9863_v50  ;;  %v10046_v2 = vpop.f32.mrf.mxu1 }
 0x37b   : > { %v6558_v62 = vpop.f32.mrf.mxu0 }
 0x37c   : > { %v6559_v8 = vadd.f32 %v6558_v62, %v6557_v1  ;;  %v10048_v14 = vpop.f32.mrf.mxu1  ;;  %v10051_v36 = vadd.f32 %v9946_v20, %v4344_v3 }
 0x37d   : > { %v6560_v45 = vpop.f32.mrf.mxu0 }
 0x37e   : > { %11142 = vst [vmem:[#allocation34_spill] sm:$0xff] %v10051_v36  ;;  %v4349_v7 = vadd.f32 %v6559_v8, %v9847_v46  ;;  %v10054_v21 = vpop.f32.mrf.mxu1 }
 0x37f   : > { %v6561_v27 = vpop.f32.mrf.mxu0 }
 0x380   : > { %v6562_v40 = vadd.f32 %v6561_v27, %v6560_v45  ;;  %v10056_v49 = vpop.f32.mrf.mxu1  ;;  %v10059_v50 = vadd.f32 %v9937_v54, %v4349_v7 }
 0x381   : > { %v6563_v6 = vpop.f32.mrf.mxu0 }
 0x382   : > { %11143 = vst [vmem:[#allocation19_spill] sm:$0xff] %v10059_v50  ;;  %v4352_v62 = vadd.f32 %v6562_v40, %v9861_v25  ;;  %v10062_v1 = vpop.f32.mrf.mxu1 }
 0x383   : > { %v6564_v51 = vpop.f32.mrf.mxu0 }
 0x384   : > { %v6565_v20 = vadd.f32 %v6564_v51, %v6563_v6  ;;  %v10064_v3 = vpop.f32.mrf.mxu1  ;;  %v10067_v46 = vadd.f32 %v9944_v19, %v4352_v62 }
 0x385   : > { %v6566_v8 = vpop.f32.mrf.mxu0 }
 0x386   : > { %11144 = vst [vmem:[#allocation40_spill] sm:$0xff] %v10067_v46  ;;  %v4357_v27 = vadd.f32 %v6565_v20, %v9873_v17  ;;  %v10070_v45 = vpop.f32.mrf.mxu1 }
 0x387   : > { %v6567_v36 = vpop.f32.mrf.mxu0 }
 0x388   : > { %v6568_v54 = vadd.f32 %v6567_v36, %v6566_v8  ;;  %v10072_v7 = vpop.f32.mrf.mxu1  ;;  %v10075_v25 = vadd.f32 %v9953_v29, %v4357_v27 }
 0x389   : > { %v6569_v40 = vpop.f32.mrf.mxu0 }
 0x38a   : > { %11145 = vst [vmem:[#allocation5_spill] sm:$0xff] %v10075_v25  ;;  %v4360_v51 = vadd.f32 %v6568_v54, %v9877_v32  ;;  %v10078_v6 = vpop.f32.mrf.mxu1  ;;  %v6623_v32 = vadd.f32 %v9984_v35, %v9982_v15  ;;  %v10105_v15 = vld [vmem:[%s10359_s3 + $0x1] ss:$0 sm:$0xff] }
 0x38b   : > { %v6570_v50 = vpop.f32.mrf.mxu0 }
 0x38c   : > { %v6571_v19 = vadd.f32 %v6570_v50, %v6569_v40  ;;  %v10080_v62 = vpop.f32.mrf.mxu1  ;;  %v10083_v17 = vadd.f32 %v9960_v53, %v4360_v51  ;;  %v6617_v53 = vadd.f32 %v9968_v30, %v9966_v56 }
 0x38d   : > { %v6572_v20 = vpop.f32.mrf.mxu0 }
 0x38e   : > { %11146 = vst [vmem:[#allocation26_spill] sm:$0xff] %v10083_v17  ;;  %v10086_v36 = vadd.f32 %v6571_v19, %v9875_v5  ;;  %v10088_v29 = vpop.f32.mrf.mxu1  ;;  %v6626_v19 = vadd.f32 %v9992_v12, %v9990_v52 }
 0x38f   : > { %v6573_v8 = vpop.f32.mrf.mxu0 }
 0x390   : > { %11147 = vst [vmem:[#allocation42_spill] sm:$0xff] %v10086_v36  ;;  %v6574_v27 = vadd.f32 %v6573_v8, %v6572_v20  ;;  %v10092_v54 = vpop.f32.mrf.mxu1  ;;  %v7242_v20 = vld [vmem:[%s7495_s13 + $0x8] sm:$0xff]  }
 0x391   : > { %v6993_v50 = vpop.f32.mrf.mxu0  ;;  %v233_v8 = vunpack.c.l.bf16 %v7242_v20  ;;  %v234_v25 = vunpack.c.h.bf16 %v7242_v20  ;;  %v6638_v20 = vadd.f32 %v10024_v57, %v10022_v23 }
 0x392   : > { %v10097_v40 = vadd.f32 %v6574_v27, %v9879_v0  ;;  %v10099_v5 = vpop.f32.mrf.mxu1  ;;  %v4928_v51 = vadd.f32 %v6993_v50, %v6623_v32  ;;  %v7243_v27 = vld [vmem:[%s7495_s13] sm:$0xff]   ;;  %v6620_v50 = vadd.f32 %v9976_v61, %v9974_v47  ;;  %v6629_v47 = vadd.f32 %v10000_v11, %v9998_v31 }
 0x393   : > { %v4919_v35 = vpop.f32.mrf.mxu0  ;;  %v6635_v61 = vadd.f32 %v10016_v38, %v10014_v24 }
 0x394   : > { %11148 = vst [vmem:[#allocation18_spill] sm:$0xff] %v10097_v40  ;;  %v5048_v56 = vadd.f32 %v4928_v51, %v9889_v33  ;;  %v10111_v0 = vpop.f32.mrf.mxu1  ;;  %v4920_v30 = vadd.f32 %v6617_v53, %v4919_v35  ;;  %v231_v40 = vunpack.c.l.bf16 %v7243_v27 }
 0x395   : > { %v6994_v32 = vpop.f32.mrf.mxu0 }
 0x396   : > { %v5085_v17 = vadd.f32 %v10105_v15, %v5048_v56  ;;  %v5046_v36 = vadd.f32 %v4920_v30, %v9884_v34  ;;  %v10120_v52 = vpop.f32.mrf.mxu1  ;;  %v4931_v12 = vadd.f32 %v6994_v32, %v6626_v19  ;;  %v232_v34 = vunpack.c.h.bf16 %v7243_v27  ;;  %v7244_v27 = vld [vmem:[%s7495_s13 + $0x18] sm:$0xff]   ;;  %v7245_v32 = vld [vmem:[%s7495_s13 + $0x10] sm:$0xff]  }
 0x397   : > { %v4922_v33 = vpop.f32.mrf.mxu0  ;;  %v237_v23 = vunpack.c.l.bf16 %v7244_v27 }
 0x398   : > { %v5117_v51 = vadd.f32 %v5085_v17, %v233_v8  ;;  %v5083_v53 = vadd.f32 %v10105_v15, %v5046_v36  ;;  %v5049_v35 = vadd.f32 %v4931_v12, %v9892_v28  ;;  %v10124_v46 = vpop.f32.mrf.mxu1  ;;  %v4923_v16 = vadd.f32 %v6620_v50, %v4922_v33 }
 0x399   : > { %v6997_v56 = vpop.f32.mrf.mxu0  ;;  %v235_v50 = vunpack.c.l.bf16 %v7245_v32 }
 0x39a   : > { %v5149_v30 = vmax.f32 %v5117_v51, 0.0  ;;  %v5115_v19 = vadd.f32 %v5083_v53, %v231_v40  ;;  %v5086_v17 = vadd.f32 %v10105_v15, %v5049_v35  ;;  %v5047_v36 = vadd.f32 %v4923_v16, %v9886_v22  ;;  %v10132_v28 = vpop.f32.mrf.mxu1 }
 0x39b   : > { %v4944_v8 = vadd.f32 %v6997_v56, %v6635_v61  ;;  %v4935_v31 = vpop.f32.mrf.mxu0  ;;  %v6632_v16 = vadd.f32 %v10008_v59, %v10006_v9  ;;  %v6647_v9 = vadd.f32 %v10048_v14, %v10046_v2 }
 0x39c   : > { %5181 = vst [vmem:[%s10136_s11 + $0x10] sm:$0xff] %v5149_v30  ;;  %v5147_v11 = vmax.f32 %v5115_v19, 0.0  ;;  %v5118_v24 = vadd.f32 %v5086_v17, %v234_v25  ;;  %v5084_v38 = vadd.f32 %v10105_v15, %v5047_v36  ;;  %v10140_v40 = vpop.f32.mrf.mxu1  ;;  %v4936_v22 = vadd.f32 %v6629_v47, %v4935_v31 }
 0x39d   : > { %v5052_v57 = vadd.f32 %v4944_v8, %v9906_v55  ;;  %v6998_v12 = vpop.f32.mrf.mxu0  ;;  %v238_v47 = vunpack.c.h.bf16 %v7244_v27  ;;  %v236_v17 = vunpack.c.h.bf16 %v7245_v32 }
 0x39e   : > { %5179 = vst [vmem:[%s10136_s11] sm:$0xff] %v5147_v11  ;;  %v5150_v33 = vmax.f32 %v5118_v24, 0.0  ;;  %v5116_v51 = vadd.f32 %v5084_v38, %v232_v34  ;;  %v5050_v25 = vadd.f32 %v4936_v22, %v9897_v4  ;;  %v10149_v53 = vpop.f32.mrf.mxu1  ;;  %v4947_v35 = vadd.f32 %v6998_v12, %v6638_v20  ;;  %v7246_v38 = vld [vmem:[%s7495_s13 + $0x28] sm:$0xff]  }
 0x39f   : > { %v5089_v59 = vadd.f32 %v10105_v15, %v5052_v57  ;;  %v4938_v61 = vpop.f32.mrf.mxu0  ;;  %v6650_v11 = vadd.f32 %v10056_v49, %v10054_v21  ;;  %v241_v22 = vunpack.c.l.bf16 %v7246_v38 }
 0x3a0   : > { %5182 = vst [vmem:[%s10136_s11 + $0x18] sm:$0xff] %v5150_v33  ;;  %v5148_v55 = vmax.f32 %v5116_v51, 0.0  ;;  %v5087_v56 = vadd.f32 %v10105_v15, %v5050_v25  ;;  %v5053_v34 = vadd.f32 %v4947_v35, %v9913_v44  ;;  %v10157_v30 = vpop.f32.mrf.mxu1  ;;  %v4939_v4 = vadd.f32 %v6632_v16, %v4938_v61  ;;  %v7247_v25 = vld [vmem:[%s7495_s13 + $0x20] sm:$0xff]  }
 0x3a1   : > { %v5121_v19 = vadd.f32 %v5089_v59, %v237_v23  ;;  %v7001_v36 = vpop.f32.mrf.mxu0  ;;  %v6641_v44 = vadd.f32 %v10032_v41, %v10030_v18  ;;  %v239_v35 = vunpack.c.l.bf16 %v7247_v25 }
 0x3a2   : > { %5180 = vst [vmem:[%s10136_s11 + $0x8] sm:$0xff] %v5148_v55  ;;  %v5119_v20 = vadd.f32 %v5087_v56, %v235_v50  ;;  %v5090_v2 = vadd.f32 %v10105_v15, %v5053_v34  ;;  %v5051_v14 = vadd.f32 %v4939_v4, %v9901_v42  ;;  %v10162_v8 = vpop.f32.mrf.mxu1  ;;  %v4960_v31 = vadd.f32 %v7001_v36, %v6647_v9 }
 0x3a3   : > { %v5153_v24 = vmax.f32 %v5121_v19, 0.0  ;;  %v4951_v16 = vpop.f32.mrf.mxu0  ;;  %v6644_v50 = vadd.f32 %v10040_v10, %v10038_v13  ;;  %v242_v10 = vunpack.c.h.bf16 %v7246_v38  ;;  %v240_v34 = vunpack.c.h.bf16 %v7247_v25 }
 0x3a4   : > { %v5151_v27 = vmax.f32 %v5119_v20, 0.0  ;;  %v5122_v23 = vadd.f32 %v5090_v2, %v238_v47  ;;  %v5088_v57 = vadd.f32 %v10105_v15, %v5051_v14  ;;  %v5056_v42 = vadd.f32 %v4960_v31, %v9934_v26  ;;  %v10171_v32 = vpop.f32.mrf.mxu1  ;;  %v7248_v2 = vld [vmem:[%s7495_s13 + $0x38] sm:$0xff]  }
 0x3a5   : > { %5185 = vst [vmem:[%s10136_s11 + $0x30] sm:$0xff] %v5153_v24  ;;  %v4952_v18 = vadd.f32 %v6641_v44, %v4951_v16  ;;  %v7002_v41 = vpop.f32.mrf.mxu0  ;;  %v6659_v26 = vadd.f32 %v10080_v62, %v10078_v6  ;;  %v6653_v6 = vadd.f32 %v10064_v3, %v10062_v1  ;;  %v245_v14 = vunpack.c.l.bf16 %v7248_v2  ;;  %v7249_v16 = vld [vmem:[%s7495_s13 + $0x30] sm:$0xff]  }
 0x3a6   : > { %5183 = vst [vmem:[%s10136_s11 + $0x20] sm:$0xff] %v5151_v27  ;;  %v5154_v21 = vmax.f32 %v5122_v23, 0.0  ;;  %v5120_v49 = vadd.f32 %v5088_v57, %v236_v17  ;;  %v5093_v12 = vadd.f32 %v10105_v15, %v5056_v42  ;;  %v10178_v33 = vpop.f32.mrf.mxu1  ;;  %v4963_v51 = vadd.f32 %v7002_v41, %v6650_v11 }
 0x3a7   : > { %v5054_v13 = vadd.f32 %v4952_v18, %v9920_v63  ;;  %v4954_v9 = vpop.f32.mrf.mxu0  ;;  %v6662_v38 = vadd.f32 %v10092_v54, %v10088_v29  ;;  %v243_v27 = vunpack.c.l.bf16 %v7249_v16  ;;  %v6671_v41 = vadd.f32 %v10140_v40, %v10132_v28 }
 0x3a8   : > { %5186 = vst [vmem:[%s10136_s11 + $0x38] sm:$0xff] %v5154_v21  ;;  %v5152_v59 = vmax.f32 %v5120_v49, 0.0  ;;  %v5125_v47 = vadd.f32 %v5093_v12, %v241_v22  ;;  %v5057_v61 = vadd.f32 %v4963_v51, %v9941_v37  ;;  %v10186_v55 = vpop.f32.mrf.mxu1  ;;  %v4955_v56 = vadd.f32 %v6644_v50, %v4954_v9 }
 0x3a9   : > { %v5091_v62 = vadd.f32 %v10105_v15, %v5054_v13  ;;  %v7005_v4 = vpop.f32.mrf.mxu0  ;;  %v246_v51 = vunpack.c.h.bf16 %v7248_v2  ;;  %v244_v25 = vunpack.c.h.bf16 %v7249_v16  ;;  %v11151_v16 = vld [vmem:[#allocation43_spill] sm:$0xff] }
 0x3aa   : > { %5184 = vst [vmem:[%s10136_s11 + $0x28] sm:$0xff] %v5152_v59  ;;  %v5157_v63 = vmax.f32 %v5125_v47, 0.0  ;;  %v5094_v19 = vadd.f32 %v10105_v15, %v5057_v61  ;;  %v5055_v17 = vadd.f32 %v4955_v56, %v9927_v43  ;;  %v10194_v36 = vpop.f32.mrf.mxu1  ;;  %v4976_v37 = vadd.f32 %v7005_v4, %v6659_v26 }
 0x3ab   : > { %v5123_v20 = vadd.f32 %v5091_v62, %v239_v35  ;;  %v4967_v31 = vpop.f32.mrf.mxu0  ;;  %v6656_v43 = vadd.f32 %v10072_v7, %v10070_v45  ;;  %v6674_v59 = vadd.f32 %v10157_v30, %v10149_v53 }
 0x3ac   : > { %5189 = vst [vmem:[%s10136_s11 + $0x50] sm:$0xff] %v5157_v63  ;;  %v5126_v1 = vadd.f32 %v5094_v19, %v242_v10  ;;  %v5092_v3 = vadd.f32 %v10105_v15, %v5055_v17  ;;  %v5060_v44 = vadd.f32 %v4976_v37, %v9963_v48  ;;  %v6682_v11 = vpop.f32.mrf.mxu1  ;;  %v4968_v24 = vadd.f32 %v6653_v6, %v4967_v31  ;;  %v11149_v6 = vld [vmem:[#allocation61_spill] sm:$0xff]  ;;  %v11150_v37 = vld [vmem:[#allocation30_spill] sm:$0xff] }
 0x3ad   : > { %v5155_v22 = vmax.f32 %v5123_v20, 0.0  ;;  %v7006_v23 = vpop.f32.mrf.mxu0  ;;  %v7251_v63 = vld [vmem:[%s7495_s13 + $0x40] sm:$0xff]   ;;  %v6668_v31 = vadd.f32 %v10124_v46, %v10120_v52 }
 0x3ae   : > { %v5158_v57 = vmax.f32 %v5126_v1, 0.0  ;;  %v5124_v42 = vadd.f32 %v5092_v3, %v240_v34  ;;  %v5097_v50 = vadd.f32 %v10105_v15, %v5060_v44  ;;  %v5058_v18 = vadd.f32 %v4968_v24, %v9948_v60  ;;  %v10207_v48 = vpop.f32.mrf.mxu1 }
 0x3af   : > { %5187 = vst [vmem:[%s10136_s11 + $0x40] sm:$0xff] %v5155_v22  ;;  %v4979_v45 = vadd.f32 %v7006_v23, %v6662_v38  ;;  %v4970_v7 = vpop.f32.mrf.mxu0  ;;  %v6665_v60 = vadd.f32 %v10111_v0, %v10099_v5  ;;  %v7250_v0 = vld [vmem:[%s7495_s13 + $0x48] sm:$0xff]   ;;  %v247_v19 = vunpack.c.l.bf16 %v7251_v63  ;;  %v6683_v1 = vadd.f32 %v6682_v11, %v10194_v36 }
 0x3b0   : > { %5190 = vst [vmem:[%s10136_s11 + $0x58] sm:$0xff] %v5158_v57  ;;  %v5156_v29 = vmax.f32 %v5124_v42, 0.0  ;;  %v5129_v54 = vadd.f32 %v5097_v50, %v245_v14  ;;  %v5095_v21 = vadd.f32 %v10105_v15, %v5058_v18  ;;  %v6685_v49 = vpop.f32.mrf.mxu1  ;;  %v4971_v12 = vadd.f32 %v6656_v43, %v4970_v7  ;;  %v11152_v7 = vld [vmem:[#allocation59_spill] sm:$0xff] }
 0x3b1   : > { %v5061_v26 = vadd.f32 %v4979_v45, %v9971_v39  ;;  %v7009_v28 = vpop.f32.mrf.mxu0  ;;  %v249_v47 = vunpack.c.l.bf16 %v7250_v0  ;;  %v250_v44 = vunpack.c.h.bf16 %v7250_v0  ;;  %v6677_v57 = vadd.f32 %v10171_v32, %v10162_v8 }
 0x3b2   : > { %5188 = vst [vmem:[%s10136_s11 + $0x48] sm:$0xff] %v5156_v29  ;;  %v5161_v40 = vmax.f32 %v5129_v54, 0.0  ;;  %v5127_v35 = vadd.f32 %v5095_v21, %v243_v27  ;;  %v5059_v13 = vadd.f32 %v4971_v12, %v9955_v58  ;;  %v10219_v10 = vpop.f32.mrf.mxu1  ;;  %v4992_v9 = vadd.f32 %v7009_v28, %v6671_v41  ;;  %v7252_v54 = vld [vmem:[%s7495_s13 + $0x58] sm:$0xff]  }
 0x3b3   : > { %v5098_v5 = vadd.f32 %v10105_v15, %v5061_v26  ;;  %v4983_v39 = vpop.f32.mrf.mxu0  ;;  %v6686_v41 = vadd.f32 %v6685_v49, %v10207_v48  ;;  %v248_v45 = vunpack.c.h.bf16 %v7251_v63  ;;  %v253_v8 = vunpack.c.l.bf16 %v7252_v54  ;;  %v7253_v49 = vld [vmem:[%s7495_s13 + $0x50] sm:$0xff]  }
 0x3b4   : > { %5193 = vst [vmem:[%s10136_s11 + $0x70] sm:$0xff] %v5161_v40  ;;  %v5159_v61 = vmax.f32 %v5127_v35, 0.0  ;;  %v5096_v56 = vadd.f32 %v10105_v15, %v5059_v13  ;;  %v5064_v62 = vadd.f32 %v4992_v9, %v11149_v6  ;;  %v10228_v34 = vpop.f32.mrf.mxu1  ;;  %v4984_v58 = vadd.f32 %v6665_v60, %v4983_v39  ;;  %v11153_v60 = vld [vmem:[#allocation50_spill] sm:$0xff] }
 0x3b5   : > { %v5130_v4 = vadd.f32 %v5098_v5, %v246_v51  ;;  %v7010_v17 = vpop.f32.mrf.mxu0  ;;  %v6680_v28 = vadd.f32 %v10186_v55, %v10178_v33  ;;  %v251_v40 = vunpack.c.l.bf16 %v7253_v49  ;;  %v11155_v55 = vld [vmem:[#allocation37_spill] sm:$0xff]  ;;  %v6689_v63 = vadd.f32 %v10228_v34, %v10219_v10 }
 0x3b6   : > { %5191 = vst [vmem:[%s10136_s11 + $0x60] sm:$0xff] %v5159_v61  ;;  %v5128_v53 = vadd.f32 %v5096_v56, %v244_v25  ;;  %v5101_v30 = vadd.f32 %v10105_v15, %v5064_v62  ;;  %v5062_v20 = vadd.f32 %v4984_v58, %v11150_v37  ;;  %v10234_v2 = vpop.f32.mrf.mxu1  ;;  %v4995_v14 = vadd.f32 %v7010_v17, %v6674_v59  ;;  %v11154_v59 = vld [vmem:[#allocation64_spill] sm:$0xff] }
 0x3b7   : > { %v5162_v3 = vmax.f32 %v5130_v4, 0.0  ;;  %v4986_v24 = vpop.f32.mrf.mxu0  ;;  %v254_v61 = vunpack.c.h.bf16 %v7252_v54 }
 0x3b8   : > { %v5160_v43 = vmax.f32 %v5128_v53, 0.0  ;;  %v5133_v38 = vadd.f32 %v5101_v30, %v249_v47  ;;  %v5099_v22 = vadd.f32 %v10105_v15, %v5062_v20  ;;  %v5065_v27 = vadd.f32 %v4995_v14, %v11151_v16  ;;  %v10241_v23 = vpop.f32.mrf.mxu1 }
 0x3b9   : > { %5194 = vst [vmem:[%s10136_s11 + $0x78] sm:$0xff] %v5162_v3  ;;  %v4987_v46 = vadd.f32 %v6668_v31, %v4986_v24  ;;  %v7013_v52 = vpop.f32.mrf.mxu0  ;;  %v252_v53 = vunpack.c.h.bf16 %v7253_v49  ;;  %v11156_v31 = vld [vmem:[#allocation49_spill] sm:$0xff] }
 0x3ba   : > { %5192 = vst [vmem:[%s10136_s11 + $0x68] sm:$0xff] %v5160_v43  ;;  %v5165_v36 = vmax.f32 %v5133_v38, 0.0  ;;  %v5131_v11 = vadd.f32 %v5099_v22, %v247_v19  ;;  %v5102_v42 = vadd.f32 %v10105_v15, %v5065_v27  ;;  %v6693_v50 = vpop.f32.mrf.mxu1  ;;  %v5008_v18 = vadd.f32 %v7013_v52, %v6683_v1  ;;  %v11157_v52 = vld [vmem:[#allocation19_spill] sm:$0xff] }
 0x3bb   : > { %v5063_v29 = vadd.f32 %v4987_v46, %v11152_v7  ;;  %v4999_v32 = vpop.f32.mrf.mxu0  ;;  %v6692_v27 = vadd.f32 %v10241_v23, %v10234_v2 }
 0x3bc   : > { %5197 = vst [vmem:[%s10136_s11 + $0x90] sm:$0xff] %v5165_v36  ;;  %v5163_v21 = vmax.f32 %v5131_v11, 0.0  ;;  %v5134_v12 = vadd.f32 %v5102_v42, %v250_v44  ;;  %v5068_v51 = vadd.f32 %v5008_v18, %v11153_v60  ;;  %v6694_v26 = vpop.f32.mrf.mxu1  ;;  %v5000_v25 = vadd.f32 %v6677_v57, %v4999_v32  ;;  %v7254_v57 = vld [vmem:[%s7495_s13 + $0x68] sm:$0xff]   ;;  %v7255_v11 = vld [vmem:[%s7495_s13 + $0x60] sm:$0xff]  }
 0x3bd   : > { %v5100_v48 = vadd.f32 %v10105_v15, %v5063_v29  ;;  %v7014_v35 = vpop.f32.mrf.mxu0  ;;  %v6695_v17 = vadd.f32 %v6694_v26, %v6693_v50  ;;  %v257_v46 = vunpack.c.l.bf16 %v7254_v57  ;;  %v255_v42 = vunpack.c.l.bf16 %v7255_v11 }
 0x3be   : > { %5195 = vst [vmem:[%s10136_s11 + $0x80] sm:$0xff] %v5163_v21  ;;  %v5166_v13 = vmax.f32 %v5134_v12, 0.0  ;;  %v5105_v9 = vadd.f32 %v10105_v15, %v5068_v51  ;;  %v5066_v5 = vadd.f32 %v5000_v25, %v11154_v59  ;;  %v6696_v0 = vpop.f32.mrf.mxu1  ;;  %v5011_v47 = vadd.f32 %v7014_v35, %v6686_v41  ;;  %v11159_v12 = vld [vmem:[#allocation40_spill] sm:$0xff] }
 0x3bf   : > { %v5132_v39 = vadd.f32 %v5100_v48, %v248_v45  ;;  %v5002_v56 = vpop.f32.mrf.mxu0  ;;  %v11158_v45 = vld [vmem:[#allocation10_spill] sm:$0xff]  ;;  %v258_v32 = vunpack.c.h.bf16 %v7254_v57 }
 0x3c0   : > { %5198 = vst [vmem:[%s10136_s11 + $0x98] sm:$0xff] %v5166_v13  ;;  %v5137_v6 = vadd.f32 %v5105_v9, %v253_v8  ;;  %v5103_v33 = vadd.f32 %v10105_v15, %v5066_v5  ;;  %v5069_v62 = vadd.f32 %v5011_v47, %v11155_v55  ;;  %v6697_v58 = vpop.f32.mrf.mxu1  ;;  %v5003_v4 = vadd.f32 %v6680_v28, %v5002_v56  ;;  %v11160_v13 = vld [vmem:[#allocation34_spill] sm:$0xff]  ;;  %v7256_v55 = vld [vmem:[%s7495_s13 + $0x70] sm:$0xff]  }
 0x3c1   : > { %v5164_v19 = vmax.f32 %v5132_v39, 0.0  ;;  %v7017_v30 = vpop.f32.mrf.mxu0  ;;  %v6698_v44 = vadd.f32 %v6697_v58, %v6696_v0  ;;  %v256_v28 = vunpack.c.h.bf16 %v7255_v11  ;;  %v11164_v57 = vld [vmem:[#allocation26_spill] sm:$0xff] }
 0x3c2   : > { %v5169_v37 = vmax.f32 %v5137_v6, 0.0  ;;  %v5135_v20 = vadd.f32 %v5103_v33, %v251_v40  ;;  %v5106_v14 = vadd.f32 %v10105_v15, %v5069_v62  ;;  %v5067_v1 = vadd.f32 %v5003_v4, %v11156_v31  ;;  %v6699_v3 = vpop.f32.mrf.mxu1 }
 0x3c3   : > { %5196 = vst [vmem:[%s10136_s11 + $0x88] sm:$0xff] %v5164_v19  ;;  %v5024_v24 = vadd.f32 %v7017_v30, %v6695_v17  ;;  %v5015_v43 = vpop.f32.mrf.mxu0  ;;  %v259_v62 = vunpack.c.l.bf16 %v7256_v55  ;;  %v11161_v17 = vld [vmem:[#allocation5_spill] sm:$0xff] }
 0x3c4   : > { %5201 = vst [vmem:[%s10136_s11 + $0xb0] sm:$0xff] %v5169_v37  ;;  %v5167_v10 = vmax.f32 %v5135_v20, 0.0  ;;  %v5138_v34 = vadd.f32 %v5106_v14, %v254_v61  ;;  %v5104_v38 = vadd.f32 %v10105_v15, %v5067_v1  ;;  %v6700_v22 = vpop.f32.mrf.mxu1  ;;  %v5016_v16 = vadd.f32 %v6689_v63, %v5015_v43  ;;  %v11162_v37 = vld [vmem:[#allocation42_spill] sm:$0xff]  ;;  %v11163_v20 = vld [vmem:[#allocation27_spill] sm:$0xff] }
 0x3c5   : > { %v5072_v36 = vadd.f32 %v5024_v24, %v11157_v52  ;;  %v7018_v50 = vpop.f32.mrf.mxu0  ;;  %v6701_v49 = vadd.f32 %v6700_v22, %v6699_v3  ;;  %v4526_v14 = vadd.f32 %v11163_v20, %v11162_v37  ;;  %v11165_v52 = vld [vmem:[#allocation18_spill] sm:$0xff] }
 0x3c6   : > { %5199 = vst [vmem:[%s10136_s11 + $0xa0] sm:$0xff] %v5167_v10  ;;  %v5170_v18 = vmax.f32 %v5138_v34, 0.0  ;;  %v5136_v41 = vadd.f32 %v5104_v38, %v252_v53  ;;  %v5070_v7 = vadd.f32 %v5016_v16, %v11158_v45  ;;  %v6702_v29 = vpop.f32.mrf.mxu1  ;;  %v5027_v54 = vadd.f32 %v7018_v50, %v6698_v44  ;;  %v7257_v10 = vld [vmem:[%s7495_s13 + $0x78] sm:$0xff]   ;;  %s5882_s13 = sshll.u32 %s7371_s19, 12  ;;  %s7258_s19 = scalar_lea.vmem %s10311_s12, 4096 }
 0x3c7   : > { %v5109_v8 = vadd.f32 %v10105_v15, %v5072_v36  ;;  %v5018_v2 = vpop.f32.mrf.mxu0  ;;  %v261_v34 = vunpack.c.l.bf16 %v7257_v10  ;;  %v11166_v36 = vld [vmem:[#allocation38_spill] sm:$0xff]  ;;  %s10309_s22 = scalar_lea.hbm %s10360_s4, %s5882_s13  ;;  %p7259_p11 = scmp.ne.s32.totalorder %s10311_s12, %s7258_s19 }
 0x3c8   : > { %5202 = vst [vmem:[%s10136_s11 + $0xb8] sm:$0xff] %v5170_v18  ;;  %v5168_v23 = vmax.f32 %v5136_v41, 0.0  ;;  %v5107_v21 = vadd.f32 %v10105_v15, %v5070_v7  ;;  %v5073_v60 = vadd.f32 %v5027_v54, %v11159_v12  ;;  %v6703_v51 = vpop.f32.mrf.mxu1  ;;  %v5019_v26 = vadd.f32 %v6692_v27, %v5018_v2  ;;  %p7266_p1 = scmp.lt.s32.totalorder %s7264_s9, %s7258_s19 }
 0x3c9   : > { %v5141_v25 = vadd.f32 %v5109_v8, %v257_v46  ;;  %v7021_v48 = vpop.f32.mrf.mxu0  ;;  %v6704_v63 = vadd.f32 %v6703_v51, %v6702_v29  ;;  %v260_v27 = vunpack.c.h.bf16 %v7256_v55  ;;  %v4529_v11 = vadd.f32 %v11166_v36, %v11165_v52  ;;  %p7260_p12 = pnand %p7259_p11, %p7388_p5 }
 0x3ca   : > { %5200 = vst [vmem:[%s10136_s11 + $0xa8] sm:$0xff] %v5168_v23  ;;  %v5139_v40 = vadd.f32 %v5107_v21, %v255_v42  ;;  %v5110_v35 = vadd.f32 %v10105_v15, %v5073_v60  ;;  %v5071_v9 = vadd.f32 %v5019_v26, %v11160_v13  ;;  %v6705_v59 = vpop.f32.mrf.mxu1  ;;  %v262_v7 = vunpack.c.h.bf16 %v7257_v10  ;;  %p7267_p2 = por %p7266_p1, %p7265_p0 }
 0x3cb   : > { %v5173_v5 = vmax.f32 %v5141_v25, 0.0  ;;  %v5031_v0 = vpop.f32.mrf.mxu0  ;;  %p7261_p13 = pneg %p7260_p12 }
 0x3cc   : > { %v5171_v47 = vmax.f32 %v5139_v40, 0.0  ;;  %v5142_v39 = vadd.f32 %v5110_v35, %v258_v32  ;;  %v5108_v61 = vadd.f32 %v10105_v15, %v5071_v9  ;;  %v6706_v56 = vpop.f32.mrf.mxu1  ;;  %v5032_v6 = vadd.f32 %v6701_v49, %v5031_v0 }
 0x3cd   : > { %5205 = vst [vmem:[%s10136_s11 + $0xd0] sm:$0xff] %v5173_v5  ;;  %v6707_v33 = vadd.f32 %v6706_v56, %v6705_v59  ;;  %v7022_v58 = vpop.f32.mrf.mxu0  ;;  %p7268_p3 = pnand %p7267_p2, %p7261_p13 }
 0x3ce   : > { %5203 = vst [vmem:[%s10136_s11 + $0xc0] sm:$0xff] %v5171_v47  ;;  %v5174_v4 = vmax.f32 %v5142_v39, 0.0  ;;  %v5140_v19 = vadd.f32 %v5108_v61, %v256_v28  ;;  %v5074_v53 = vadd.f32 %v5032_v6, %v11161_v17  ;;  %v6708_v30 = vpop.f32.mrf.mxu1 }
 0x3cf   : > { %v5040_v31 = vadd.f32 %v7021_v48, %v6707_v33  ;;  %v5034_v1 = vpop.f32.mrf.mxu0 }
 0x3d0   : > { %5206 = vst [vmem:[%s10136_s11 + $0xd8] sm:$0xff] %v5174_v4  ;;  %v5172_v3 = vmax.f32 %v5140_v19, 0.0  ;;  %v5111_v44 = vadd.f32 %v10105_v15, %v5074_v53  ;;  %v6709_v24 = vpop.f32.mrf.mxu1  ;;  %v5035_v43 = vadd.f32 %v6704_v63, %v5034_v1 }
 0x3d1   : > { %v5076_v38 = vadd.f32 %v5040_v31, %v4526_v14  ;;  %v6710_v22 = vadd.f32 %v6709_v24, %v6708_v30 }
 0x3d2   : > { %5204 = vst [vmem:[%s10136_s11 + $0xc8] sm:$0xff] %v5172_v3  ;;  %v5143_v16 = vadd.f32 %v5111_v44, %v259_v62  ;;  %v5075_v46 = vadd.f32 %v5035_v43, %v11164_v57 }
 0x3d3   : > { %v5113_v42 = vadd.f32 %v10105_v15, %v5076_v38  ;;  %v5043_v50 = vadd.f32 %v7022_v58, %v6710_v22 }
 0x3d4   : > { %v5175_v18 = vmax.f32 %v5143_v16, 0.0  ;;  %v5112_v41 = vadd.f32 %v10105_v15, %v5075_v46 }
 0x3d5   : > { %v5145_v45 = vadd.f32 %v5113_v42, %v261_v34  ;;  %v5077_v29 = vadd.f32 %v5043_v50, %v4529_v11 }
 0x3d6   : > { %5207 = vst [vmem:[%s10136_s11 + $0xe0] sm:$0xff] %v5175_v18  ;;  %v5144_v54 = vadd.f32 %v5112_v41, %v260_v27 }
 0x3d7   : > { %v5177_v8 = vmax.f32 %v5145_v45, 0.0  ;;  %v5114_v32 = vadd.f32 %v10105_v15, %v5077_v29 }
 0x3d8   : > { %v5176_v2 = vmax.f32 %v5144_v54, 0.0 }
 0x3d9   : > { %5209 = vst [vmem:[%s10136_s11 + $0xf0] sm:$0xff] %v5177_v8  ;;  %v5146_v23 = vadd.f32 %v5114_v32, %v262_v7 }
 0x3da   : > { %5208 = vst [vmem:[%s10136_s11 + $0xe8] sm:$0xff] %v5176_v2 }
 0x3db   : > { %v5178_v21 = vmax.f32 %v5146_v23, 0.0 }
 0x3dd   : > { %5210 = vst [vmem:[%s10136_s11 + $0xf8] sm:$0xff] %v5178_v21 }
 0x3de   : > { %7271 = shalt.err (!%p7268_p3)
}
 0x3df   : > { %s7272_s29 = scalar_lea.hbm %s10309_s22, 4096  ;;  %s7276_s6 = scalar_lea.hbm %s10360_s4, 8192 }
 0x3e0   : > { %p7273_p4 = scmp.ne.s32.totalorder %s10309_s22, %s7272_s29  ;;  %p7277_p9 = scmp.lt.s32.totalorder %s10309_s22, %s10360_s4 }
 0x3e1   : > { %p7278_p10 = scmp.lt.s32.totalorder %s7276_s6, %s7272_s29 }
 0x3e2   : > { %p7274_p7 = pnand %p7273_p4, %p7388_p5 }
 0x3e3   : > { %p7279_p11 = por %p7278_p10, %p7277_p9 }
 0x3e4   : > { %p7275_p8 = pneg %p7274_p7 }
 0x3e6   : > { %p7280_p12 = pnand %p7279_p11, %p7275_p8 }
 0x3e8   : > { %7283 = shalt.err (!%p7280_p12)
}
 0x3e9   : > { %s7323_s10 = smov 128   ;;  %s7324_s11 = smov 8  }
 0x3ea   : > { %7023 = dma.vmem_to_hbm [thread:$0]  (%p7388_p5), %s10311_s12, 4096, %s10309_s22, %s10316_s27, %s7323_s10, %s7323_s10, %s7324_s11  }
 0x3eb PF: > { %p7029_p13 = scmp.ge.s32.totalorder %s7318_s18, 2  ;;  %s5240_s13 = sand.u32 1, %s7306_s15  }
 0x3ec   : > { %s5241_s14 = scalar_lea.sflag [#allocation3], %s5240_s13 }
 0x3ed   : > { %p7026_p0 = pnand %p7029_p13, %p7392_p6 }
 0x3ef   : > { %p7027_p1 = pneg %p7026_p0 }
 0x3f1   : > { %7301 = dma.done.wait (%p7027_p1), %s5241_s14, 4096  }
 0x3f2   : > { %7303 = vsyncadd (%p7027_p1), %s5241_s14, 4294963200  ;;  %p14_p2 = scmp.ge.s32.totalorder %s7375_s21, 4   ;;  %s11167_s15 = smov %s7310_s16 }
 0x3f3   : > { %s11168_s16 = smov %s7314_s17  ;;  %s11169_s17 = smov %s7386_s24 }
 0x3f4   : > { %s11170_s18 = smov %s7375_s21  ;;  %16 = sbr.rel (!%p14_p2) target bundleno = 3 (0x3), region = 71 }
 0x3f9   :  { %5246 = vsyncpa [#allocation3], 1 }
 0x3fa   :  { %5248 = vsyncpa [#allocation3 + $0x1], 1 }

</bundles_post_ra>
